<compile_context>
chip_gen: v6e
topology: v6e:2x2x1
jax: 0.10.0
libtpu: 0.0.40
codegen_flags: <defaults>
</compile_context>

<pallas_src>
import functools

import jax
import jax.numpy as jnp
from jax.experimental import pallas as pl
from jax.experimental.pallas import tpu as pltpu

LANE = 128
NEG_SLOPE = 0.2
BN_EPS = 1e-5


def _round_up(x, m):
    return (x + m - 1) // m * m


def _pick_tile_m(m, cap=512):
    """Largest row tile <= cap that evenly divides m (multiple of 8), else m."""
    if m <= cap:
        return m
    for t in range(cap, 7, -8):
        if m % t == 0:
            return t
    return m


# ----------------------------------------------------------------------------
# Pallas kernels
# ----------------------------------------------------------------------------
def _conv_act_kernel(a_ref, w_ref, o_ref, *, activation):
    """One M-tile of act(patches @ W); f32 accumulate, f32 epilogue."""
    acc = jnp.dot(a_ref[...], w_ref[...], preferred_element_type=jnp.float32)
    if activation == "leaky":
        acc = jnp.where(acc > 0, acc, NEG_SLOPE * acc)
    elif activation == "sigmoid":
        acc = pl.reciprocal(1.0 + jnp.exp(-acc), approx=True)
    o_ref[...] = acc.astype(o_ref.dtype)


def _conv_bn_lrelu_kernel(a_ref, w_ref, g_ref, b_ref, o_ref, sum_ref, ssq_ref,
                          *, m_total, eps):
    """Fused conv + (training-mode) BatchNorm + LeakyReLU.

    grid = (2, M_tiles).  Phase 0 accumulates per-channel sum / sum-of-squares
    over the FULL M dimension into persistent VMEM scratch; phase 1 recomputes
    the (cheap) matmul tile and applies normalize + affine + LeakyReLU.
    """
    phase = pl.program_id(0)
    mtile = pl.program_id(1)

    acc = jnp.dot(a_ref[...], w_ref[...], preferred_element_type=jnp.float32)

    @pl.when(jnp.logical_and(phase == 0, mtile == 0))
    def _():
        sum_ref[...] = jnp.zeros_like(sum_ref)
        ssq_ref[...] = jnp.zeros_like(ssq_ref)

    @pl.when(phase == 0)
    def _():
        sum_ref[...] += jnp.sum(acc, axis=0, keepdims=True)
        ssq_ref[...] += jnp.sum(acc * acc, axis=0, keepdims=True)
        o_ref[...] = acc.astype(o_ref.dtype)  # placeholder, overwritten in phase 1

    @pl.when(phase == 1)
    def _():
        inv_m = 1.0 / m_total
        mean = sum_ref[...] * inv_m
        var = ssq_ref[...] * inv_m - mean * mean        # biased, like PyTorch fwd
        scale = jax.lax.rsqrt(var + eps) * g_ref[...]
        y = (acc - mean) * scale + b_ref[...]
        o_ref[...] = jnp.where(y > 0, y, NEG_SLOPE * y).astype(o_ref.dtype)


# ----------------------------------------------------------------------------
# pallas_call wrappers
# ----------------------------------------------------------------------------
def conv_matmul_act(a_bf16, w_kc_bf16, activation, *, tile_cap=512):
    """(M, Kp)bf16 @ (Kp, Cp)bf16 -> (M, Cp)f32 with fused activation."""
    M, Kp = a_bf16.shape
    _, Cp = w_kc_bf16.shape
    tm = _pick_tile_m(M, tile_cap)
    grid = (M // tm,)
    return pl.pallas_call(
        functools.partial(_conv_act_kernel, activation=activation),
        out_shape=jax.ShapeDtypeStruct((M, Cp), jnp.float32),
        grid_spec=pltpu.PrefetchScalarGridSpec(
            num_scalar_prefetch=0,
            grid=grid,
            in_specs=[pl.BlockSpec((tm, Kp), lambda i: (i, 0)),
                      pl.BlockSpec((Kp, Cp), lambda i: (0, 0))],
            out_specs=pl.BlockSpec((tm, Cp), lambda i: (i, 0)),
        ),
        compiler_params=pltpu.CompilerParams(dimension_semantics=("parallel",)),
    )(a_bf16, w_kc_bf16)


def conv_bn_lrelu(a_bf16, w_kc_bf16, gamma_pad, beta_pad, *, tile_cap=512):
    """Fused conv + BatchNorm(batch stats) + LeakyReLU, M-tiled, full-M stats."""
    M, Kp = a_bf16.shape
    _, Cp = w_kc_bf16.shape
    tm = _pick_tile_m(M, tile_cap)
    grid = (2, M // tm)                       # (phase, m-tile); stats need all m
    return pl.pallas_call(
        functools.partial(_conv_bn_lrelu_kernel, m_total=float(M), eps=BN_EPS),
        out_shape=jax.ShapeDtypeStruct((M, Cp), jnp.float32),
        grid_spec=pltpu.PrefetchScalarGridSpec(
            num_scalar_prefetch=0,
            grid=grid,
            in_specs=[pl.BlockSpec((tm, Kp), lambda p, i: (i, 0)),
                      pl.BlockSpec((Kp, Cp), lambda p, i: (0, 0)),
                      pl.BlockSpec((1, Cp), lambda p, i: (0, 0)),
                      pl.BlockSpec((1, Cp), lambda p, i: (0, 0))],
            out_specs=pl.BlockSpec((tm, Cp), lambda p, i: (i, 0)),
            scratch_shapes=[pltpu.VMEM((1, Cp), jnp.float32),
                            pltpu.VMEM((1, Cp), jnp.float32)],
        ),
        compiler_params=pltpu.CompilerParams(
            dimension_semantics=("arbitrary", "arbitrary")),
    )(a_bf16, w_kc_bf16, gamma_pad, beta_pad)


# ----------------------------------------------------------------------------
# Glue (im2col + weight packing) in plain JAX, NHWC throughout
# ----------------------------------------------------------------------------
def _im2col_nhwc(x, k, stride, pad):
    N, H, W, C = x.shape
    if pad:
        x = jnp.pad(x, ((0, 0), (pad, pad), (pad, pad), (0, 0)))
    OH = (H + 2 * pad - k) // stride + 1
    OW = (W + 2 * pad - k) // stride + 1
    cols = []
    for i in range(k):
        for j in range(k):
            cols.append(x[:, i:i + stride * OH:stride, j:j + stride * OW:stride, :])
    patches = jnp.stack(cols, axis=3)                 # (N, OH, OW, k*k, C)
    return patches.reshape(N * OH * OW, k * k * C), OH, OW


def _pack_weight(w_oihw):
    """OIHW -> (Kp, Cp) bf16, matching the (kh, kw, C_in) patch ordering,
    zero-padded so K and C_out are lane multiples (128)."""
    c_out, c_in, k, _ = w_oihw.shape
    K = k * k * c_in
    Kp, Cp = _round_up(K, LANE), _round_up(c_out, LANE)
    w = jnp.transpose(w_oihw, (0, 2, 3, 1)).reshape(c_out, K)     # (O, K)
    w = jnp.pad(w, ((0, Cp - c_out), (0, Kp - K)))
    return jnp.transpose(w).astype(jnp.bfloat16)                  # (Kp, Cp)


def _conv_block(x_nhwc, w_oihw, stride, pad, *, bn=None, activation="leaky"):
    N = x_nhwc.shape[0]
    c_out = w_oihw.shape[0]
    k = w_oihw.shape[2]

    patches, OH, OW = _im2col_nhwc(x_nhwc, k, stride, pad)
    w_kc = _pack_weight(w_oihw)
    Kp, Cp = w_kc.shape
    K = patches.shape[1]
    if K != Kp:
        patches = jnp.pad(patches, ((0, 0), (0, Kp - K)))
    a = patches.astype(jnp.bfloat16)

    if bn is None:
        out = conv_matmul_act(a, w_kc, activation)
    else:
        gamma, beta = bn
        g = jnp.pad(gamma.astype(jnp.float32), (0, Cp - c_out),
                    constant_values=1.0).reshape(1, Cp)
        b = jnp.pad(beta.astype(jnp.float32), (0, Cp - c_out)).reshape(1, Cp)
        out = conv_bn_lrelu(a, w_kc, g, b)

    return out[:, :c_out].reshape(N, OH, OW, c_out)   # stay NHWC


# ----------------------------------------------------------------------------
# Discriminator forward (Pallas)
# ----------------------------------------------------------------------------
def discriminator_forward(x_nchw, params, ndf):
    h = jnp.transpose(x_nchw, (0, 2, 3, 1))           # single boundary transpose
    h = _conv_block(h, params["w1"], 2, 1, activation="leaky")
    h = _conv_block(h, params["w2"], 2, 1, bn=(params["g2"], params["b2"]))
    h = _conv_block(h, params["w3"], 2, 1, bn=(params["g3"], params["b3"]))
    h = _conv_block(h, params["w4"], 2, 1, bn=(params["g4"], params["b4"]))
    h = _conv_block(h, params["w5"], 1, 0, activation="sigmoid")  # (N,1,1,1)
    return h.reshape(-1)                               # == .view(-1,1).squeeze(1)


# ----------------------------------------------------------------------------
# Pure-JAX reference (f32, highest precision)
# ----------------------------------------------------------------------------
def reference_forward(x, params, ndf):
    def conv(h, w, s, p):
        return jax.lax.conv_general_dilated(
            h, w, (s, s), ((p, p), (p, p)),
            dimension_numbers=("NCHW", "OIHW", "NCHW"),
            precision=jax.lax.Precision.HIGHEST,
            preferred_element_type=jnp.float32)

    def bn(h, g, b):
        mean = jnp.mean(h, axis=(0, 2, 3), keepdims=True)
        var = jnp.mean((h - mean) ** 2, axis=(0, 2, 3), keepdims=True)
        return (h - mean) * jax.lax.rsqrt(var + BN_EPS) * g.reshape(1, -1, 1, 1) \
            + b.reshape(1, -1, 1, 1)

    def lrelu(h):
        return jnp.where(h > 0, h, NEG_SLOPE * h)

    h = lrelu(conv(x, params["w1"], 2, 1))
    h = lrelu(bn(conv(h, params["w2"], 2, 1), params["g2"], params["b2"]))
    h = lrelu(bn(conv(h, params["w3"], 2, 1), params["g3"], params["b3"]))
    h = lrelu(bn(conv(h, params["w4"], 2, 1), params["g4"], params["b4"]))
    out = jax.nn.sigmoid(conv(h, params["w5"], 1, 0))
    return out.reshape(-1)


# ----------------------------------------------------------------------------
# Main
# ----------------------------------------------------------------------------
if __name__ == "__main__":
    nc, ndf, batch = 3, 8, 2          # small channel counts; DCGAN needs 64x64 spatial
    H = W = 64

    key = jax.random.PRNGKey(0)
    keys = jax.random.split(key, 12)

    def w(k, shape):
        return (0.02 * jax.random.normal(k, shape)).astype(jnp.float32)

    params = {
        "w1": w(keys[0], (ndf, nc, 4, 4)),
        "w2": w(keys[1], (ndf * 2, ndf, 4, 4)),
        "w3": w(keys[2], (ndf * 4, ndf * 2, 4, 4)),
        "w4": w(keys[3], (ndf * 8, ndf * 4, 4, 4)),
        "w5": w(keys[4], (1, ndf * 8, 4, 4)),
        "g2": (1.0 + 0.02 * jax.random.normal(keys[5], (ndf * 2,))).astype(jnp.float32),
        "b2": (0.02 * jax.random.normal(keys[6], (ndf * 2,))).astype(jnp.float32),
        "g3": (1.0 + 0.02 * jax.random.normal(keys[7], (ndf * 4,))).astype(jnp.float32),
        "b3": (0.02 * jax.random.normal(keys[8], (ndf * 4,))).astype(jnp.float32),
        "g4": (1.0 + 0.02 * jax.random.normal(keys[9], (ndf * 8,))).astype(jnp.float32),
        "b4": (0.02 * jax.random.normal(keys[10], (ndf * 8,))).astype(jnp.float32),
    }

    x = jax.random.normal(keys[11], (batch, nc, H, W), dtype=jnp.float32)

    fwd = jax.jit(functools.partial(discriminator_forward, ndf=ndf))
    out = jax.block_until_ready(fwd(x, params))

    ref = jax.block_until_ready(reference_forward(x, params, ndf))

    assert out.shape == (batch,), out.shape
    assert bool(jnp.all(jnp.isfinite(out)))
    assert bool(jnp.all((out > 0.0) & (out < 1.0)))
    assert bool(jnp.allclose(out, ref, atol=2e-2, rtol=2e-2)), (out, ref)

    print("KERNEL_OK")
</pallas_src>

<mosaic_0001>
module attributes {stable_mosaic.version = 11 : i64} {
  func.func @_conv_act_kernel(%arg0: i32, %arg1: memref<512x128xbf16, #tpu.memory_space<vmem>>, %arg2: memref<128x128xbf16, #tpu.memory_space<vmem>>, %arg3: memref<512x128xf32, #tpu.memory_space<vmem>>) attributes {dimension_semantics = [#tpu.dimension_semantics<parallel>], iteration_bounds = array<i64: 4>, scalar_prefetch = 0 : i64, scratch_operands = 0 : i64, tpu.core_type = #tpu.core_type<tc>, window_params = [{transform_indices = @transform_0, window_bounds = array<i64: 512, 128>}, {pipeline_mode = #tpu.pipeline_mode<synchronous>, transform_indices = @transform_1, window_bounds = array<i64: 128, 128>}, {transform_indices = @transform_2, window_bounds = array<i64: 512, 128>}]} {
    %c0 = arith.constant 0 : index
    %c0_0 = arith.constant 0 : index
    %0 = vector.load %arg1[%c0, %c0_0] : memref<512x128xbf16, #tpu.memory_space<vmem>>, vector<512x128xbf16>
    %c0_1 = arith.constant 0 : index
    %c0_2 = arith.constant 0 : index
    %1 = vector.load %arg2[%c0_1, %c0_2] : memref<128x128xbf16, #tpu.memory_space<vmem>>, vector<128x128xbf16>
    %cst = arith.constant dense<0.000000e+00> : vector<512x128xf32>
    %2 = tpu.matmul %0, %1, %cst {dimension_numbers = #tpu.dot_dimension_numbers<[1], [0], [0], [1], [0, 0, 1, 1], [], []>} : vector<512x128xbf16>, vector<128x128xbf16>, vector<512x128xf32> -> vector<512x128xf32>
    %cst_3 = arith.constant 0.000000e+00 : f32
    %3 = vector.broadcast %cst_3 : f32 to vector<512x128xf32>
    %4 = arith.cmpf ogt, %2, %3 : vector<512x128xf32>
    %cst_4 = arith.constant 2.000000e-01 : f32
    %5 = vector.broadcast %cst_4 : f32 to vector<512x128xf32>
    %6 = arith.mulf %5, %2 : vector<512x128xf32>
    %7 = arith.select %4, %2, %6 : vector<512x128xi1>, vector<512x128xf32>
    %c0_5 = arith.constant 0 : index
    %c0_6 = arith.constant 0 : index
    %8 = vector.load %arg3[%c0_5, %c0_6] : memref<512x128xf32, #tpu.memory_space<vmem>>, vector<512x128xf32>
    tpu.vector_store %arg3[%c0_5, %c0_6], %7 {strides = array<i32>} : memref<512x128xf32, #tpu.memory_space<vmem>>, vector<512x128xf32>,
    return
  }
  func.func @transform_0(%arg0: i32) -> (i32, i32) {
    %c0_i32 = arith.constant 0 : i32
    %c0_i32_0 = arith.constant 0 : i32
    return %arg0, %c0_i32 : i32, i32
  }
  func.func @transform_1(%arg0: i32) -> (i32, i32) {
    %c0_i32 = arith.constant 0 : i32
    %c0_i32_0 = arith.constant 0 : i32
    %c0_i32_1 = arith.constant 0 : i32
    return %c0_i32, %c0_i32_0 : i32, i32
  }
  func.func @transform_2(%arg0: i32) -> (i32, i32) {
    %c0_i32 = arith.constant 0 : i32
    %c0_i32_0 = arith.constant 0 : i32
    return %arg0, %c0_i32 : i32, i32
  }
}

module attributes {stable_mosaic.version = 11 : i64} {
  func.func @_conv_bn_lrelu_kernel(%arg0: i32, %arg1: i32, %arg2: memref<512x128xbf16, #tpu.memory_space<vmem>>, %arg3: memref<128x128xbf16, #tpu.memory_space<vmem>>, %arg4: memref<1x128xf32, #tpu.memory_space<vmem>>, %arg5: memref<1x128xf32, #tpu.memory_space<vmem>>, %arg6: memref<512x128xf32, #tpu.memory_space<vmem>>, %arg7: memref<1x128xf32, #tpu.memory_space<vmem>>, %arg8: memref<1x128xf32, #tpu.memory_space<vmem>>) attributes {dimension_semantics = [#tpu.dimension_semantics<arbitrary>, #tpu.dimension_semantics<arbitrary>], iteration_bounds = array<i64: 2, 1>, scalar_prefetch = 0 : i64, scratch_operands = 2 : i64, tpu.core_type = #tpu.core_type<tc>, window_params = [{transform_indices = @transform_0, window_bounds = array<i64: 512, 128>}, {pipeline_mode = #tpu.pipeline_mode<synchronous>, transform_indices = @transform_1, window_bounds = array<i64: 128, 128>}, {pipeline_mode = #tpu.pipeline_mode<synchronous>, transform_indices = @transform_2, window_bounds = array<i64: 1, 128>}, {pipeline_mode = #tpu.pipeline_mode<synchronous>, transform_indices = @transform_3, window_bounds = array<i64: 1, 128>}, {transform_indices = @transform_4, window_bounds = array<i64: 512, 128>}]} {
    %c0 = arith.constant 0 : index
    %c0_0 = arith.constant 0 : index
    %0 = vector.load %arg2[%c0, %c0_0] : memref<512x128xbf16, #tpu.memory_space<vmem>>, vector<512x128xbf16>
    %c0_1 = arith.constant 0 : index
    %c0_2 = arith.constant 0 : index
    %1 = vector.load %arg3[%c0_1, %c0_2] : memref<128x128xbf16, #tpu.memory_space<vmem>>, vector<128x128xbf16>
    %cst = arith.constant dense<0.000000e+00> : vector<512x128xf32>
    %2 = tpu.matmul %0, %1, %cst {dimension_numbers = #tpu.dot_dimension_numbers<[1], [0], [0], [1], [0, 0, 1, 1], [], []>} : vector<512x128xbf16>, vector<128x128xbf16>, vector<512x128xf32> -> vector<512x128xf32>
    %c0_i32 = arith.constant 0 : i32
    %3 = arith.cmpi eq, %arg0, %c0_i32 : i32
    %c0_i32_3 = arith.constant 0 : i32
    %4 = arith.cmpi eq, %arg1, %c0_i32_3 : i32
    %5 = arith.andi %3, %4 : i1
    %6 = arith.extui %5 : i1 to i32
    %c0_i32_4 = arith.constant 0 : i32
    %7 = arith.cmpi ne, %6, %c0_i32_4 : i32
    scf.if %7 {
      %cst_8 = arith.constant 0.000000e+00 : f32
      %14 = vector.broadcast %cst_8 : f32 to vector<1x128xf32>
      %c0_9 = arith.constant 0 : index
      %c0_10 = arith.constant 0 : index
      %15 = vector.load %arg7[%c0_9, %c0_10] : memref<1x128xf32, #tpu.memory_space<vmem>>, vector<1x128xf32>
      tpu.vector_store %arg7[%c0_9, %c0_10], %14 {strides = array<i32>} : memref<1x128xf32, #tpu.memory_space<vmem>>, vector<1x128xf32>,
      %cst_11 = arith.constant 0.000000e+00 : f32
      %16 = vector.broadcast %cst_11 : f32 to vector<1x128xf32>
      %c0_12 = arith.constant 0 : index
      %c0_13 = arith.constant 0 : index
      %17 = vector.load %arg8[%c0_12, %c0_13] : memref<1x128xf32, #tpu.memory_space<vmem>>, vector<1x128xf32>
      tpu.vector_store %arg8[%c0_12, %c0_13], %16 {strides = array<i32>} : memref<1x128xf32, #tpu.memory_space<vmem>>, vector<1x128xf32>,
    } else {
    }
    %c0_i32_5 = arith.constant 0 : i32
    %8 = arith.cmpi eq, %arg0, %c0_i32_5 : i32
    %9 = arith.extui %8 : i1 to i32
    %c0_i32_6 = arith.constant 0 : i32
    %10 = arith.cmpi ne, %9, %c0_i32_6 : i32
    scf.if %10 {
      %c0_8 = arith.constant 0 : index
      %c0_9 = arith.constant 0 : index
      %14 = vector.load %arg7[%c0_8, %c0_9] : memref<1x128xf32, #tpu.memory_space<vmem>>, vector<1x128xf32>
      %cst_10 = arith.constant dense<0.000000e+00> : vector<128xf32>
      %15 = vector.multi_reduction <add>, %2, %cst_10 [0] : vector<512x128xf32> to vector<128xf32>
      %16 = vector.shape_cast %15 : vector<128xf32> to vector<1x128xf32>
      %17 = arith.addf %14, %16 : vector<1x128xf32>
      %c0_11 = arith.constant 0 : index
      %c0_12 = arith.constant 0 : index
      %18 = vector.load %arg7[%c0_11, %c0_12] : memref<1x128xf32, #tpu.memory_space<vmem>>, vector<1x128xf32>
      tpu.vector_store %arg7[%c0_11, %c0_12], %17 {strides = array<i32>} : memref<1x128xf32, #tpu.memory_space<vmem>>, vector<1x128xf32>,
      %c0_13 = arith.constant 0 : index
      %c0_14 = arith.constant 0 : index
      %19 = vector.load %arg8[%c0_13, %c0_14] : memref<1x128xf32, #tpu.memory_space<vmem>>, vector<1x128xf32>
      %20 = arith.mulf %2, %2 : vector<512x128xf32>
      %cst_15 = arith.constant dense<0.000000e+00> : vector<128xf32>
      %21 = vector.multi_reduction <add>, %20, %cst_15 [0] : vector<512x128xf32> to vector<128xf32>
      %22 = vector.shape_cast %21 : vector<128xf32> to vector<1x128xf32>
      %23 = arith.addf %19, %22 : vector<1x128xf32>
      %c0_16 = arith.constant 0 : index
      %c0_17 = arith.constant 0 : index
      %24 = vector.load %arg8[%c0_16, %c0_17] : memref<1x128xf32, #tpu.memory_space<vmem>>, vector<1x128xf32>
      tpu.vector_store %arg8[%c0_16, %c0_17], %23 {strides = array<i32>} : memref<1x128xf32, #tpu.memory_space<vmem>>, vector<1x128xf32>,
      %c0_18 = arith.constant 0 : index
      %c0_19 = arith.constant 0 : index
      %25 = vector.load %arg6[%c0_18, %c0_19] : memref<512x128xf32, #tpu.memory_space<vmem>>, vector<512x128xf32>
      tpu.vector_store %arg6[%c0_18, %c0_19], %2 {strides = array<i32>} : memref<512x128xf32, #tpu.memory_space<vmem>>, vector<512x128xf32>,
    } else {
    }
    %c1_i32 = arith.constant 1 : i32
    %11 = arith.cmpi eq, %arg0, %c1_i32 : i32
    %12 = arith.extui %11 : i1 to i32
    %c0_i32_7 = arith.constant 0 : i32
    %13 = arith.cmpi ne, %12, %c0_i32_7 : i32
    scf.if %13 {
      %c0_8 = arith.constant 0 : index
      %c0_9 = arith.constant 0 : index
      %14 = vector.load %arg7[%c0_8, %c0_9] : memref<1x128xf32, #tpu.memory_space<vmem>>, vector<1x128xf32>
      %cst_10 = arith.constant 0.001953125 : f32
      %15 = vector.broadcast %cst_10 : f32 to vector<1x128xf32>
      %16 = arith.mulf %14, %15 : vector<1x128xf32>
      %c0_11 = arith.constant 0 : index
      %c0_12 = arith.constant 0 : index
      %17 = vector.load %arg8[%c0_11, %c0_12] : memref<1x128xf32, #tpu.memory_space<vmem>>, vector<1x128xf32>
      %cst_13 = arith.constant 0.001953125 : f32
      %18 = vector.broadcast %cst_13 : f32 to vector<1x128xf32>
      %19 = arith.mulf %17, %18 : vector<1x128xf32>
      %20 = arith.mulf %16, %16 : vector<1x128xf32>
      %21 = arith.subf %19, %20 : vector<1x128xf32>
      %cst_14 = arith.constant 9.99999974E-6 : f32
      %22 = vector.broadcast %cst_14 : f32 to vector<1x128xf32>
      %23 = arith.addf %21, %22 : vector<1x128xf32>
      %24 = math.rsqrt %23 : vector<1x128xf32>
      %c0_15 = arith.constant 0 : index
      %c0_16 = arith.constant 0 : index
      %25 = vector.load %arg4[%c0_15, %c0_16] : memref<1x128xf32, #tpu.memory_space<vmem>>, vector<1x128xf32>
      %26 = arith.mulf %24, %25 : vector<1x128xf32>
      %27 = vector.broadcast %16 : vector<1x128xf32> to vector<512x128xf32>
      %28 = arith.subf %2, %27 : vector<512x128xf32>
      %29 = vector.broadcast %26 : vector<1x128xf32> to vector<512x128xf32>
      %30 = arith.mulf %28, %29 : vector<512x128xf32>
      %c0_17 = arith.constant 0 : index
      %c0_18 = arith.constant 0 : index
      %31 = vector.load %arg5[%c0_17, %c0_18] : memref<1x128xf32, #tpu.memory_space<vmem>>, vector<1x128xf32>
      %32 = vector.broadcast %31 : vector<1x128xf32> to vector<512x128xf32>
      %33 = arith.addf %30, %32 : vector<512x128xf32>
      %cst_19 = arith.constant 0.000000e+00 : f32
      %34 = vector.broadcast %cst_19 : f32 to vector<512x128xf32>
      %35 = arith.cmpf ogt, %33, %34 : vector<512x128xf32>
      %cst_20 = arith.constant 2.000000e-01 : f32
      %36 = vector.broadcast %cst_20 : f32 to vector<512x128xf32>
      %37 = arith.mulf %36, %33 : vector<512x128xf32>
      %38 = arith.select %35, %33, %37 : vector<512x128xi1>, vector<512x128xf32>
      %c0_21 = arith.constant 0 : index
      %c0_22 = arith.constant 0 : index
      %39 = vector.load %arg6[%c0_21, %c0_22] : memref<512x128xf32, #tpu.memory_space<vmem>>, vector<512x128xf32>
      tpu.vector_store %arg6[%c0_21, %c0_22], %38 {strides = array<i32>} : memref<512x128xf32, #tpu.memory_space<vmem>>, vector<512x128xf32>,
    } else {
    }
    return
  }
  func.func @transform_0(%arg0: i32, %arg1: i32) -> (i32, i32) {
    %c0_i32 = arith.constant 0 : i32
    %c0_i32_0 = arith.constant 0 : i32
    return %arg1, %c0_i32 : i32, i32
  }
  func.func @transform_1(%arg0: i32, %arg1: i32) -> (i32, i32) {
    %c0_i32 = arith.constant 0 : i32
    %c0_i32_0 = arith.constant 0 : i32
    %c0_i32_1 = arith.constant 0 : i32
    return %c0_i32, %c0_i32_0 : i32, i32
  }
  func.func @transform_2(%arg0: i32, %arg1: i32) -> (i32, i32) {
    %c0_i32 = arith.constant 0 : i32
    %c0_i32_0 = arith.constant 0 : i32
    %c0_i32_1 = arith.constant 0 : i32
    return %c0_i32, %c0_i32_0 : i32, i32
  }
  func.func @transform_3(%arg0: i32, %arg1: i32) -> (i32, i32) {
    %c0_i32 = arith.constant 0 : i32
    %c0_i32_0 = arith.constant 0 : i32
    %c0_i32_1 = arith.constant 0 : i32
    return %c0_i32, %c0_i32_0 : i32, i32
  }
  func.func @transform_4(%arg0: i32, %arg1: i32) -> (i32, i32) {
    %c0_i32 = arith.constant 0 : i32
    %c0_i32_0 = arith.constant 0 : i32
    return %arg1, %c0_i32 : i32, i32
  }
}

module attributes {stable_mosaic.version = 11 : i64} {
  func.func @_conv_bn_lrelu_kernel(%arg0: i32, %arg1: i32, %arg2: memref<128x256xbf16, #tpu.memory_space<vmem>>, %arg3: memref<256x128xbf16, #tpu.memory_space<vmem>>, %arg4: memref<1x128xf32, #tpu.memory_space<vmem>>, %arg5: memref<1x128xf32, #tpu.memory_space<vmem>>, %arg6: memref<128x128xf32, #tpu.memory_space<vmem>>, %arg7: memref<1x128xf32, #tpu.memory_space<vmem>>, %arg8: memref<1x128xf32, #tpu.memory_space<vmem>>) attributes {dimension_semantics = [#tpu.dimension_semantics<arbitrary>, #tpu.dimension_semantics<arbitrary>], iteration_bounds = array<i64: 2, 1>, scalar_prefetch = 0 : i64, scratch_operands = 2 : i64, tpu.core_type = #tpu.core_type<tc>, window_params = [{transform_indices = @transform_0, window_bounds = array<i64: 128, 256>}, {pipeline_mode = #tpu.pipeline_mode<synchronous>, transform_indices = @transform_1, window_bounds = array<i64: 256, 128>}, {pipeline_mode = #tpu.pipeline_mode<synchronous>, transform_indices = @transform_2, window_bounds = array<i64: 1, 128>}, {pipeline_mode = #tpu.pipeline_mode<synchronous>, transform_indices = @transform_3, window_bounds = array<i64: 1, 128>}, {transform_indices = @transform_4, window_bounds = array<i64: 128, 128>}]} {
    %c0 = arith.constant 0 : index
    %c0_0 = arith.constant 0 : index
    %0 = vector.load %arg2[%c0, %c0_0] : memref<128x256xbf16, #tpu.memory_space<vmem>>, vector<128x256xbf16>
    %c0_1 = arith.constant 0 : index
    %c0_2 = arith.constant 0 : index
    %1 = vector.load %arg3[%c0_1, %c0_2] : memref<256x128xbf16, #tpu.memory_space<vmem>>, vector<256x128xbf16>
    %cst = arith.constant dense<0.000000e+00> : vector<128x128xf32>
    %2 = tpu.matmul %0, %1, %cst {dimension_numbers = #tpu.dot_dimension_numbers<[1], [0], [0], [1], [0, 0, 1, 1], [], []>} : vector<128x256xbf16>, vector<256x128xbf16>, vector<128x128xf32> -> vector<128x128xf32>
    %c0_i32 = arith.constant 0 : i32
    %3 = arith.cmpi eq, %arg0, %c0_i32 : i32
    %c0_i32_3 = arith.constant 0 : i32
    %4 = arith.cmpi eq, %arg1, %c0_i32_3 : i32
    %5 = arith.andi %3, %4 : i1
    %6 = arith.extui %5 : i1 to i32
    %c0_i32_4 = arith.constant 0 : i32
    %7 = arith.cmpi ne, %6, %c0_i32_4 : i32
    scf.if %7 {
      %cst_8 = arith.constant 0.000000e+00 : f32
      %14 = vector.broadcast %cst_8 : f32 to vector<1x128xf32>
      %c0_9 = arith.constant 0 : index
      %c0_10 = arith.constant 0 : index
      %15 = vector.load %arg7[%c0_9, %c0_10] : memref<1x128xf32, #tpu.memory_space<vmem>>, vector<1x128xf32>
      tpu.vector_store %arg7[%c0_9, %c0_10], %14 {strides = array<i32>} : memref<1x128xf32, #tpu.memory_space<vmem>>, vector<1x128xf32>,
      %cst_11 = arith.constant 0.000000e+00 : f32
      %16 = vector.broadcast %cst_11 : f32 to vector<1x128xf32>
      %c0_12 = arith.constant 0 : index
      %c0_13 = arith.constant 0 : index
      %17 = vector.load %arg8[%c0_12, %c0_13] : memref<1x128xf32, #tpu.memory_space<vmem>>, vector<1x128xf32>
      tpu.vector_store %arg8[%c0_12, %c0_13], %16 {strides = array<i32>} : memref<1x128xf32, #tpu.memory_space<vmem>>, vector<1x128xf32>,
    } else {
    }
    %c0_i32_5 = arith.constant 0 : i32
    %8 = arith.cmpi eq, %arg0, %c0_i32_5 : i32
    %9 = arith.extui %8 : i1 to i32
    %c0_i32_6 = arith.constant 0 : i32
    %10 = arith.cmpi ne, %9, %c0_i32_6 : i32
    scf.if %10 {
      %c0_8 = arith.constant 0 : index
      %c0_9 = arith.constant 0 : index
      %14 = vector.load %arg7[%c0_8, %c0_9] : memref<1x128xf32, #tpu.memory_space<vmem>>, vector<1x128xf32>
      %cst_10 = arith.constant dense<0.000000e+00> : vector<128xf32>
      %15 = vector.multi_reduction <add>, %2, %cst_10 [0] : vector<128x128xf32> to vector<128xf32>
      %16 = vector.shape_cast %15 : vector<128xf32> to vector<1x128xf32>
      %17 = arith.addf %14, %16 : vector<1x128xf32>
      %c0_11 = arith.constant 0 : index
      %c0_12 = arith.constant 0 : index
      %18 = vector.load %arg7[%c0_11, %c0_12] : memref<1x128xf32, #tpu.memory_space<vmem>>, vector<1x128xf32>
      tpu.vector_store %arg7[%c0_11, %c0_12], %17 {strides = array<i32>} : memref<1x128xf32, #tpu.memory_space<vmem>>, vector<1x128xf32>,
      %c0_13 = arith.constant 0 : index
      %c0_14 = arith.constant 0 : index
      %19 = vector.load %arg8[%c0_13, %c0_14] : memref<1x128xf32, #tpu.memory_space<vmem>>, vector<1x128xf32>
      %20 = arith.mulf %2, %2 : vector<128x128xf32>
      %cst_15 = arith.constant dense<0.000000e+00> : vector<128xf32>
      %21 = vector.multi_reduction <add>, %20, %cst_15 [0] : vector<128x128xf32> to vector<128xf32>
      %22 = vector.shape_cast %21 : vector<128xf32> to vector<1x128xf32>
      %23 = arith.addf %19, %22 : vector<1x128xf32>
      %c0_16 = arith.constant 0 : index
      %c0_17 = arith.constant 0 : index
      %24 = vector.load %arg8[%c0_16, %c0_17] : memref<1x128xf32, #tpu.memory_space<vmem>>, vector<1x128xf32>
      tpu.vector_store %arg8[%c0_16, %c0_17], %23 {strides = array<i32>} : memref<1x128xf32, #tpu.memory_space<vmem>>, vector<1x128xf32>,
      %c0_18 = arith.constant 0 : index
      %c0_19 = arith.constant 0 : index
      %25 = vector.load %arg6[%c0_18, %c0_19] : memref<128x128xf32, #tpu.memory_space<vmem>>, vector<128x128xf32>
      tpu.vector_store %arg6[%c0_18, %c0_19], %2 {strides = array<i32>} : memref<128x128xf32, #tpu.memory_space<vmem>>, vector<128x128xf32>,
    } else {
    }
    %c1_i32 = arith.constant 1 : i32
    %11 = arith.cmpi eq, %arg0, %c1_i32 : i32
    %12 = arith.extui %11 : i1 to i32
    %c0_i32_7 = arith.constant 0 : i32
    %13 = arith.cmpi ne, %12, %c0_i32_7 : i32
    scf.if %13 {
      %c0_8 = arith.constant 0 : index
      %c0_9 = arith.constant 0 : index
      %14 = vector.load %arg7[%c0_8, %c0_9] : memref<1x128xf32, #tpu.memory_space<vmem>>, vector<1x128xf32>
      %cst_10 = arith.constant 7.812500e-03 : f32
      %15 = vector.broadcast %cst_10 : f32 to vector<1x128xf32>
      %16 = arith.mulf %14, %15 : vector<1x128xf32>
      %c0_11 = arith.constant 0 : index
      %c0_12 = arith.constant 0 : index
      %17 = vector.load %arg8[%c0_11, %c0_12] : memref<1x128xf32, #tpu.memory_space<vmem>>, vector<1x128xf32>
      %cst_13 = arith.constant 7.812500e-03 : f32
      %18 = vector.broadcast %cst_13 : f32 to vector<1x128xf32>
      %19 = arith.mulf %17, %18 : vector<1x128xf32>
      %20 = arith.mulf %16, %16 : vector<1x128xf32>
      %21 = arith.subf %19, %20 : vector<1x128xf32>
      %cst_14 = arith.constant 9.99999974E-6 : f32
      %22 = vector.broadcast %cst_14 : f32 to vector<1x128xf32>
      %23 = arith.addf %21, %22 : vector<1x128xf32>
      %24 = math.rsqrt %23 : vector<1x128xf32>
      %c0_15 = arith.constant 0 : index
      %c0_16 = arith.constant 0 : index
      %25 = vector.load %arg4[%c0_15, %c0_16] : memref<1x128xf32, #tpu.memory_space<vmem>>, vector<1x128xf32>
      %26 = arith.mulf %24, %25 : vector<1x128xf32>
      %27 = vector.broadcast %16 : vector<1x128xf32> to vector<128x128xf32>
      %28 = arith.subf %2, %27 : vector<128x128xf32>
      %29 = vector.broadcast %26 : vector<1x128xf32> to vector<128x128xf32>
      %30 = arith.mulf %28, %29 : vector<128x128xf32>
      %c0_17 = arith.constant 0 : index
      %c0_18 = arith.constant 0 : index
      %31 = vector.load %arg5[%c0_17, %c0_18] : memref<1x128xf32, #tpu.memory_space<vmem>>, vector<1x128xf32>
      %32 = vector.broadcast %31 : vector<1x128xf32> to vector<128x128xf32>
      %33 = arith.addf %30, %32 : vector<128x128xf32>
      %cst_19 = arith.constant 0.000000e+00 : f32
      %34 = vector.broadcast %cst_19 : f32 to vector<128x128xf32>
      %35 = arith.cmpf ogt, %33, %34 : vector<128x128xf32>
      %cst_20 = arith.constant 2.000000e-01 : f32
      %36 = vector.broadcast %cst_20 : f32 to vector<128x128xf32>
      %37 = arith.mulf %36, %33 : vector<128x128xf32>
      %38 = arith.select %35, %33, %37 : vector<128x128xi1>, vector<128x128xf32>
      %c0_21 = arith.constant 0 : index
      %c0_22 = arith.constant 0 : index
      %39 = vector.load %arg6[%c0_21, %c0_22] : memref<128x128xf32, #tpu.memory_space<vmem>>, vector<128x128xf32>
      tpu.vector_store %arg6[%c0_21, %c0_22], %38 {strides = array<i32>} : memref<128x128xf32, #tpu.memory_space<vmem>>, vector<128x128xf32>,
    } else {
    }
    return
  }
  func.func @transform_0(%arg0: i32, %arg1: i32) -> (i32, i32) {
    %c0_i32 = arith.constant 0 : i32
    %c0_i32_0 = arith.constant 0 : i32
    return %arg1, %c0_i32 : i32, i32
  }
  func.func @transform_1(%arg0: i32, %arg1: i32) -> (i32, i32) {
    %c0_i32 = arith.constant 0 : i32
    %c0_i32_0 = arith.constant 0 : i32
    %c0_i32_1 = arith.constant 0 : i32
    return %c0_i32, %c0_i32_0 : i32, i32
  }
  func.func @transform_2(%arg0: i32, %arg1: i32) -> (i32, i32) {
    %c0_i32 = arith.constant 0 : i32
    %c0_i32_0 = arith.constant 0 : i32
    %c0_i32_1 = arith.constant 0 : i32
    return %c0_i32, %c0_i32_0 : i32, i32
  }
  func.func @transform_3(%arg0: i32, %arg1: i32) -> (i32, i32) {
    %c0_i32 = arith.constant 0 : i32
    %c0_i32_0 = arith.constant 0 : i32
    %c0_i32_1 = arith.constant 0 : i32
    return %c0_i32, %c0_i32_0 : i32, i32
  }
  func.func @transform_4(%arg0: i32, %arg1: i32) -> (i32, i32) {
    %c0_i32 = arith.constant 0 : i32
    %c0_i32_0 = arith.constant 0 : i32
    return %arg1, %c0_i32 : i32, i32
  }
}

module attributes {stable_mosaic.version = 11 : i64} {
  func.func @_conv_bn_lrelu_kernel(%arg0: i32, %arg1: i32, %arg2: memref<32x512xbf16, #tpu.memory_space<vmem>>, %arg3: memref<512x128xbf16, #tpu.memory_space<vmem>>, %arg4: memref<1x128xf32, #tpu.memory_space<vmem>>, %arg5: memref<1x128xf32, #tpu.memory_space<vmem>>, %arg6: memref<32x128xf32, #tpu.memory_space<vmem>>, %arg7: memref<1x128xf32, #tpu.memory_space<vmem>>, %arg8: memref<1x128xf32, #tpu.memory_space<vmem>>) attributes {dimension_semantics = [#tpu.dimension_semantics<arbitrary>, #tpu.dimension_semantics<arbitrary>], iteration_bounds = array<i64: 2, 1>, scalar_prefetch = 0 : i64, scratch_operands = 2 : i64, tpu.core_type = #tpu.core_type<tc>, window_params = [{transform_indices = @transform_0, window_bounds = array<i64: 32, 512>}, {pipeline_mode = #tpu.pipeline_mode<synchronous>, transform_indices = @transform_1, window_bounds = array<i64: 512, 128>}, {pipeline_mode = #tpu.pipeline_mode<synchronous>, transform_indices = @transform_2, window_bounds = array<i64: 1, 128>}, {pipeline_mode = #tpu.pipeline_mode<synchronous>, transform_indices = @transform_3, window_bounds = array<i64: 1, 128>}, {transform_indices = @transform_4, window_bounds = array<i64: 32, 128>}]} {
    %c0 = arith.constant 0 : index
    %c0_0 = arith.constant 0 : index
    %0 = vector.load %arg2[%c0, %c0_0] : memref<32x512xbf16, #tpu.memory_space<vmem>>, vector<32x512xbf16>
    %c0_1 = arith.constant 0 : index
    %c0_2 = arith.constant 0 : index
    %1 = vector.load %arg3[%c0_1, %c0_2] : memref<512x128xbf16, #tpu.memory_space<vmem>>, vector<512x128xbf16>
    %cst = arith.constant dense<0.000000e+00> : vector<32x128xf32>
    %2 = tpu.matmul %0, %1, %cst {dimension_numbers = #tpu.dot_dimension_numbers<[1], [0], [0], [1], [0, 0, 1, 1], [], []>} : vector<32x512xbf16>, vector<512x128xbf16>, vector<32x128xf32> -> vector<32x128xf32>
    %c0_i32 = arith.constant 0 : i32
    %3 = arith.cmpi eq, %arg0, %c0_i32 : i32
    %c0_i32_3 = arith.constant 0 : i32
    %4 = arith.cmpi eq, %arg1, %c0_i32_3 : i32
    %5 = arith.andi %3, %4 : i1
    %6 = arith.extui %5 : i1 to i32
    %c0_i32_4 = arith.constant 0 : i32
    %7 = arith.cmpi ne, %6, %c0_i32_4 : i32
    scf.if %7 {
      %cst_8 = arith.constant 0.000000e+00 : f32
      %14 = vector.broadcast %cst_8 : f32 to vector<1x128xf32>
      %c0_9 = arith.constant 0 : index
      %c0_10 = arith.constant 0 : index
      %15 = vector.load %arg7[%c0_9, %c0_10] : memref<1x128xf32, #tpu.memory_space<vmem>>, vector<1x128xf32>
      tpu.vector_store %arg7[%c0_9, %c0_10], %14 {strides = array<i32>} : memref<1x128xf32, #tpu.memory_space<vmem>>, vector<1x128xf32>,
      %cst_11 = arith.constant 0.000000e+00 : f32
      %16 = vector.broadcast %cst_11 : f32 to vector<1x128xf32>
      %c0_12 = arith.constant 0 : index
      %c0_13 = arith.constant 0 : index
      %17 = vector.load %arg8[%c0_12, %c0_13] : memref<1x128xf32, #tpu.memory_space<vmem>>, vector<1x128xf32>
      tpu.vector_store %arg8[%c0_12, %c0_13], %16 {strides = array<i32>} : memref<1x128xf32, #tpu.memory_space<vmem>>, vector<1x128xf32>,
    } else {
    }
    %c0_i32_5 = arith.constant 0 : i32
    %8 = arith.cmpi eq, %arg0, %c0_i32_5 : i32
    %9 = arith.extui %8 : i1 to i32
    %c0_i32_6 = arith.constant 0 : i32
    %10 = arith.cmpi ne, %9, %c0_i32_6 : i32
    scf.if %10 {
      %c0_8 = arith.constant 0 : index
      %c0_9 = arith.constant 0 : index
      %14 = vector.load %arg7[%c0_8, %c0_9] : memref<1x128xf32, #tpu.memory_space<vmem>>, vector<1x128xf32>
      %cst_10 = arith.constant dense<0.000000e+00> : vector<128xf32>
      %15 = vector.multi_reduction <add>, %2, %cst_10 [0] : vector<32x128xf32> to vector<128xf32>
      %16 = vector.shape_cast %15 : vector<128xf32> to vector<1x128xf32>
      %17 = arith.addf %14, %16 : vector<1x128xf32>
      %c0_11 = arith.constant 0 : index
      %c0_12 = arith.constant 0 : index
      %18 = vector.load %arg7[%c0_11, %c0_12] : memref<1x128xf32, #tpu.memory_space<vmem>>, vector<1x128xf32>
      tpu.vector_store %arg7[%c0_11, %c0_12], %17 {strides = array<i32>} : memref<1x128xf32, #tpu.memory_space<vmem>>, vector<1x128xf32>,
      %c0_13 = arith.constant 0 : index
      %c0_14 = arith.constant 0 : index
      %19 = vector.load %arg8[%c0_13, %c0_14] : memref<1x128xf32, #tpu.memory_space<vmem>>, vector<1x128xf32>
      %20 = arith.mulf %2, %2 : vector<32x128xf32>
      %cst_15 = arith.constant dense<0.000000e+00> : vector<128xf32>
      %21 = vector.multi_reduction <add>, %20, %cst_15 [0] : vector<32x128xf32> to vector<128xf32>
      %22 = vector.shape_cast %21 : vector<128xf32> to vector<1x128xf32>
      %23 = arith.addf %19, %22 : vector<1x128xf32>
      %c0_16 = arith.constant 0 : index
      %c0_17 = arith.constant 0 : index
      %24 = vector.load %arg8[%c0_16, %c0_17] : memref<1x128xf32, #tpu.memory_space<vmem>>, vector<1x128xf32>
      tpu.vector_store %arg8[%c0_16, %c0_17], %23 {strides = array<i32>} : memref<1x128xf32, #tpu.memory_space<vmem>>, vector<1x128xf32>,
      %c0_18 = arith.constant 0 : index
      %c0_19 = arith.constant 0 : index
      %25 = vector.load %arg6[%c0_18, %c0_19] : memref<32x128xf32, #tpu.memory_space<vmem>>, vector<32x128xf32>
      tpu.vector_store %arg6[%c0_18, %c0_19], %2 {strides = array<i32>} : memref<32x128xf32, #tpu.memory_space<vmem>>, vector<32x128xf32>,
    } else {
    }
    %c1_i32 = arith.constant 1 : i32
    %11 = arith.cmpi eq, %arg0, %c1_i32 : i32
    %12 = arith.extui %11 : i1 to i32
    %c0_i32_7 = arith.constant 0 : i32
    %13 = arith.cmpi ne, %12, %c0_i32_7 : i32
    scf.if %13 {
      %c0_8 = arith.constant 0 : index
      %c0_9 = arith.constant 0 : index
      %14 = vector.load %arg7[%c0_8, %c0_9] : memref<1x128xf32, #tpu.memory_space<vmem>>, vector<1x128xf32>
      %cst_10 = arith.constant 3.125000e-02 : f32
      %15 = vector.broadcast %cst_10 : f32 to vector<1x128xf32>
      %16 = arith.mulf %14, %15 : vector<1x128xf32>
      %c0_11 = arith.constant 0 : index
      %c0_12 = arith.constant 0 : index
      %17 = vector.load %arg8[%c0_11, %c0_12] : memref<1x128xf32, #tpu.memory_space<vmem>>, vector<1x128xf32>
      %cst_13 = arith.constant 3.125000e-02 : f32
      %18 = vector.broadcast %cst_13 : f32 to vector<1x128xf32>
      %19 = arith.mulf %17, %18 : vector<1x128xf32>
      %20 = arith.mulf %16, %16 : vector<1x128xf32>
      %21 = arith.subf %19, %20 : vector<1x128xf32>
      %cst_14 = arith.constant 9.99999974E-6 : f32
      %22 = vector.broadcast %cst_14 : f32 to vector<1x128xf32>
      %23 = arith.addf %21, %22 : vector<1x128xf32>
      %24 = math.rsqrt %23 : vector<1x128xf32>
      %c0_15 = arith.constant 0 : index
      %c0_16 = arith.constant 0 : index
      %25 = vector.load %arg4[%c0_15, %c0_16] : memref<1x128xf32, #tpu.memory_space<vmem>>, vector<1x128xf32>
      %26 = arith.mulf %24, %25 : vector<1x128xf32>
      %27 = vector.broadcast %16 : vector<1x128xf32> to vector<32x128xf32>
      %28 = arith.subf %2, %27 : vector<32x128xf32>
      %29 = vector.broadcast %26 : vector<1x128xf32> to vector<32x128xf32>
      %30 = arith.mulf %28, %29 : vector<32x128xf32>
      %c0_17 = arith.constant 0 : index
      %c0_18 = arith.constant 0 : index
      %31 = vector.load %arg5[%c0_17, %c0_18] : memref<1x128xf32, #tpu.memory_space<vmem>>, vector<1x128xf32>
      %32 = vector.broadcast %31 : vector<1x128xf32> to vector<32x128xf32>
      %33 = arith.addf %30, %32 : vector<32x128xf32>
      %cst_19 = arith.constant 0.000000e+00 : f32
      %34 = vector.broadcast %cst_19 : f32 to vector<32x128xf32>
      %35 = arith.cmpf ogt, %33, %34 : vector<32x128xf32>
      %cst_20 = arith.constant 2.000000e-01 : f32
      %36 = vector.broadcast %cst_20 : f32 to vector<32x128xf32>
      %37 = arith.mulf %36, %33 : vector<32x128xf32>
      %38 = arith.select %35, %33, %37 : vector<32x128xi1>, vector<32x128xf32>
      %c0_21 = arith.constant 0 : index
      %c0_22 = arith.constant 0 : index
      %39 = vector.load %arg6[%c0_21, %c0_22] : memref<32x128xf32, #tpu.memory_space<vmem>>, vector<32x128xf32>
      tpu.vector_store %arg6[%c0_21, %c0_22], %38 {strides = array<i32>} : memref<32x128xf32, #tpu.memory_space<vmem>>, vector<32x128xf32>,
    } else {
    }
    return
  }
  func.func @transform_0(%arg0: i32, %arg1: i32) -> (i32, i32) {
    %c0_i32 = arith.constant 0 : i32
    %c0_i32_0 = arith.constant 0 : i32
    return %arg1, %c0_i32 : i32, i32
  }
  func.func @transform_1(%arg0: i32, %arg1: i32) -> (i32, i32) {
    %c0_i32 = arith.constant 0 : i32
    %c0_i32_0 = arith.constant 0 : i32
    %c0_i32_1 = arith.constant 0 : i32
    return %c0_i32, %c0_i32_0 : i32, i32
  }
  func.func @transform_2(%arg0: i32, %arg1: i32) -> (i32, i32) {
    %c0_i32 = arith.constant 0 : i32
    %c0_i32_0 = arith.constant 0 : i32
    %c0_i32_1 = arith.constant 0 : i32
    return %c0_i32, %c0_i32_0 : i32, i32
  }
  func.func @transform_3(%arg0: i32, %arg1: i32) -> (i32, i32) {
    %c0_i32 = arith.constant 0 : i32
    %c0_i32_0 = arith.constant 0 : i32
    %c0_i32_1 = arith.constant 0 : i32
    return %c0_i32, %c0_i32_0 : i32, i32
  }
  func.func @transform_4(%arg0: i32, %arg1: i32) -> (i32, i32) {
    %c0_i32 = arith.constant 0 : i32
    %c0_i32_0 = arith.constant 0 : i32
    return %arg1, %c0_i32 : i32, i32
  }
}

module attributes {stable_mosaic.version = 11 : i64} {
  func.func @_conv_act_kernel(%arg0: i32, %arg1: memref<2x1024xbf16, #tpu.memory_space<vmem>>, %arg2: memref<1024x128xbf16, #tpu.memory_space<vmem>>, %arg3: memref<2x128xf32, #tpu.memory_space<vmem>>) attributes {dimension_semantics = [#tpu.dimension_semantics<parallel>], iteration_bounds = array<i64: 1>, scalar_prefetch = 0 : i64, scratch_operands = 0 : i64, tpu.core_type = #tpu.core_type<tc>, window_params = [{transform_indices = @transform_0, window_bounds = array<i64: 2, 1024>}, {pipeline_mode = #tpu.pipeline_mode<synchronous>, transform_indices = @transform_1, window_bounds = array<i64: 1024, 128>}, {transform_indices = @transform_2, window_bounds = array<i64: 2, 128>}]} {
    %c0 = arith.constant 0 : index
    %c0_0 = arith.constant 0 : index
    %0 = vector.load %arg1[%c0, %c0_0] : memref<2x1024xbf16, #tpu.memory_space<vmem>>, vector<2x1024xbf16>
    %c0_1 = arith.constant 0 : index
    %c0_2 = arith.constant 0 : index
    %1 = vector.load %arg2[%c0_1, %c0_2] : memref<1024x128xbf16, #tpu.memory_space<vmem>>, vector<1024x128xbf16>
    %cst = arith.constant dense<0.000000e+00> : vector<2x128xf32>
    %2 = tpu.matmul %0, %1, %cst {dimension_numbers = #tpu.dot_dimension_numbers<[1], [0], [0], [1], [0, 0, 1, 1], [], []>} : vector<2x1024xbf16>, vector<1024x128xbf16>, vector<2x128xf32> -> vector<2x128xf32>
    %cst_3 = arith.constant 0.000000e+00 : f32
    %3 = vector.broadcast %cst_3 : f32 to vector<2x128xf32>
    %4 = arith.subf %3, %2 : vector<2x128xf32>
    %5 = math.exp %4 : vector<2x128xf32>
    %cst_4 = arith.constant 1.000000e+00 : f32
    %6 = vector.broadcast %cst_4 : f32 to vector<2x128xf32>
    %7 = arith.addf %6, %5 : vector<2x128xf32>
    %8 = tpu.reciprocal %7 {approx = true} : vector<2x128xf32> -> vector<2x128xf32>
    %c0_5 = arith.constant 0 : index
    %c0_6 = arith.constant 0 : index
    %9 = vector.load %arg3[%c0_5, %c0_6] : memref<2x128xf32, #tpu.memory_space<vmem>>, vector<2x128xf32>
    tpu.vector_store %arg3[%c0_5, %c0_6], %8 {strides = array<i32>} : memref<2x128xf32, #tpu.memory_space<vmem>>, vector<2x128xf32>,
    return
  }
  func.func @transform_0(%arg0: i32) -> (i32, i32) {
    %c0_i32 = arith.constant 0 : i32
    %c0_i32_0 = arith.constant 0 : i32
    return %arg0, %c0_i32 : i32, i32
  }
  func.func @transform_1(%arg0: i32) -> (i32, i32) {
    %c0_i32 = arith.constant 0 : i32
    %c0_i32_0 = arith.constant 0 : i32
    %c0_i32_1 = arith.constant 0 : i32
    return %c0_i32, %c0_i32_0 : i32, i32
  }
  func.func @transform_2(%arg0: i32) -> (i32, i32) {
    %c0_i32 = arith.constant 0 : i32
    %c0_i32_0 = arith.constant 0 : i32
    return %arg0, %c0_i32 : i32, i32
  }
}

</mosaic_0001>

<bundles_post_ra>
// kernel: discriminator_forward.5
= control target key start
LH: loop header
LB: loop body
LE: loop exit
PB: predicated region body
PF: predicated region fallthrough
CT: control target
= control target key end

     0   :  { %s1327_s9 = smov 0   ;;  %s1472_s0 = inlined_call_operand.vmem [shape: bf16[2048,128], index: 0, kind: input, shape index: {}]   ;;  %s1473_s1 = inlined_call_operand.vmem [shape: bf16[128,128], index: 1, kind: input, shape index: {}]   ;;  %s1474_s2 = inlined_call_operand.vmem [shape: f32[2048,128], index: 2, kind: output, shape index: {}]  }
   0x1 LB: > { %s1069_s10 = sadd.s32 4294967295, %s1310_s9   ;;  %p1073_p0 = scmp.ge.s32.totalorder %s1310_s9, 1  ;;  %s1310_s9 = sphi %s1327_s9, %s12_s9  }
   0x2   : > { %p113_p1 = scmp.lt.s32.totalorder %s1310_s9, 5 }
   0x4   : > { %p114_p2 = pnand %p1073_p0, %p113_p1 }
   0x5   : > { %s1074_s13 = sshll.u32 (!%p114_p2), %s1069_s10, 6 }
   0x6   : > { %117 = sbr.rel (%p114_p2) target bundleno = 304 (0x130), region = 28  ;;  %p136_p3 = scmp.lt.s32.totalorder (!%p114_p2), %s1074_s13, 255 }
   0xb   : > { %v1264_v0 = vld [vmem:[%s1473_s1 + $0x38] sm:$0xff]   ;;  %v1265_v1 = vld [vmem:[%s1473_s1 + $0x30] sm:$0xff]   ;;  %s1476_s13 = smov (!%p136_p3, %s1074_s13), 255  ;;  %v1266_v2 = vld [vmem:[%s1473_s1 + $0x28] sm:$0xff]  }
   0xc   : > { %1160 = vmatprep.subr.bf16.mxu0 %v1264_v0  ;;  %1240 = vmatprep.subr.bf16.mxu1 %v1264_v0  ;;  %s1075_s18 = sshll.u32 %s1476_s13, 2  ;;  %v1267_v3 = vld [vmem:[%s1473_s1 + $0x20] sm:$0xff]   ;;  %v1268_v6 = vld [vmem:[%s1473_s1 + $0x18] sm:$0xff]   ;;  %v1269_v7 = vld [vmem:[%s1473_s1 + $0x10] sm:$0xff]   ;;  %s1077_s4 = sshll.u32 %s1476_s13, 3 }
   0xd   : > { %1161 = vmatpush3.bf16.msra.mxu0 %v1264_v0  ;;  %1248 = vmatpush3.bf16.msra.mxu1 %v1264_v0  ;;  %s1350_s21 = scalar_lea.vmem %s1472_s0, %s1075_s18  ;;  %v1270_v8 = vld [vmem:[%s1473_s1 + $0x8] sm:$0xff]   ;;  %v1271_v9 = vld [vmem:[%s1473_s1] sm:$0xff]   ;;  %s1403_s7 = scalar_lea.vmem %s1474_s2, %s1077_s4 }
   0xe   : > { %1162 = vmatprep.subr.bf16.mxu0 %v1265_v1  ;;  %1241 = vmatprep.subr.bf16.mxu1 %v1265_v1  ;;  %v1272_v4 = vld [vmem:[%s1350_s21] sm:$0xff]   ;;  %v1274_v10 = vld [vmem:[%s1350_s21 + $0x8] sm:$0xff]   ;;  %v1276_v12 = vld [vmem:[%s1350_s21 + $0x10] sm:$0xff]  }
   0xf   : > { %v1273_v5 = vld [vmem:[%s1350_s21 + $0x80] sm:$0xff]   ;;  %1176 = vmatprep.mubr.bf16.mxu0 %v1272_v4  ;;  %v1275_v11 = vld [vmem:[%s1350_s21 + $0x88] sm:$0xff]   ;;  %v1277_v13 = vld [vmem:[%s1350_s21 + $0x90] sm:$0xff]  }
  0x10   : > { %1208 = vmatprep.mubr.bf16.mxu1 %v1273_v5  ;;  %v1278_v14 = vld [vmem:[%s1350_s21 + $0x18] sm:$0xff]   ;;  %v1280_v16 = vld [vmem:[%s1350_s21 + $0x20] sm:$0xff]   ;;  %v1282_v18 = vld [vmem:[%s1350_s21 + $0x28] sm:$0xff]  }
  0x11   : > { %1163 = vmatpush3.bf16.msra.mxu0 %v1265_v1  ;;  %1249 = vmatpush3.bf16.msra.mxu1 %v1265_v1  ;;  %v1279_v15 = vld [vmem:[%s1350_s21 + $0x98] sm:$0xff]   ;;  %v1281_v17 = vld [vmem:[%s1350_s21 + $0xa0] sm:$0xff]   ;;  %v1283_v19 = vld [vmem:[%s1350_s21 + $0xa8] sm:$0xff]  }
  0x12   : > { %1164 = vmatprep.subr.bf16.mxu0 %v1266_v2  ;;  %1242 = vmatprep.subr.bf16.mxu1 %v1266_v2  ;;  %v1284_v20 = vld [vmem:[%s1350_s21 + $0x30] sm:$0xff]   ;;  %v1286_v22 = vld [vmem:[%s1350_s21 + $0x38] sm:$0xff]   ;;  %v1288_v24 = vld [vmem:[%s1350_s21 + $0x40] sm:$0xff]  }
  0x13   : > { %v1285_v21 = vld [vmem:[%s1350_s21 + $0xb0] sm:$0xff]   ;;  %v1287_v23 = vld [vmem:[%s1350_s21 + $0xb8] sm:$0xff]   ;;  %v1289_v25 = vld [vmem:[%s1350_s21 + $0xc0] sm:$0xff]  }
  0x14   : > { %v1290_v26 = vld [vmem:[%s1350_s21 + $0x48] sm:$0xff]   ;;  %v1292_v28 = vld [vmem:[%s1350_s21 + $0x50] sm:$0xff]   ;;  %v1294_v30 = vld [vmem:[%s1350_s21 + $0x58] sm:$0xff]  }
  0x15   : > { %1165 = vmatpush3.bf16.msra.mxu0 %v1266_v2  ;;  %1250 = vmatpush3.bf16.msra.mxu1 %v1266_v2  ;;  %v1291_v27 = vld [vmem:[%s1350_s21 + $0xc8] sm:$0xff]   ;;  %v1293_v29 = vld [vmem:[%s1350_s21 + $0xd0] sm:$0xff]   ;;  %v1295_v31 = vld [vmem:[%s1350_s21 + $0xd8] sm:$0xff]  }
  0x16   : > { %1166 = vmatprep.subr.bf16.mxu0 %v1267_v3  ;;  %1243 = vmatprep.subr.bf16.mxu1 %v1267_v3  ;;  %v1296_v32 = vld [vmem:[%s1350_s21 + $0x60] sm:$0xff]   ;;  %v1298_v34 = vld [vmem:[%s1350_s21 + $0x68] sm:$0xff]   ;;  %v1300_v36 = vld [vmem:[%s1350_s21 + $0x70] sm:$0xff]  }
  0x17   : > { %v1297_v33 = vld [vmem:[%s1350_s21 + $0xe0] sm:$0xff]   ;;  %v1299_v35 = vld [vmem:[%s1350_s21 + $0xe8] sm:$0xff]   ;;  %v1301_v37 = vld [vmem:[%s1350_s21 + $0xf0] sm:$0xff]  }
  0x18   : > { %v1302_v38 = vld [vmem:[%s1350_s21 + $0x78] sm:$0xff]  }
  0x19   : > { %1167 = vmatpush3.bf16.msra.mxu0 %v1267_v3  ;;  %1251 = vmatpush3.bf16.msra.mxu1 %v1267_v3  ;;  %v1303_v39 = vld [vmem:[%s1350_s21 + $0xf8] sm:$0xff]  }
  0x1a   : > { %1168 = vmatprep.subr.bf16.mxu0 %v1268_v6  ;;  %1244 = vmatprep.subr.bf16.mxu1 %v1268_v6 }
  0x1d   : > { %1169 = vmatpush3.bf16.msra.mxu0 %v1268_v6  ;;  %1252 = vmatpush3.bf16.msra.mxu1 %v1268_v6 }
  0x1e   : > { %1170 = vmatprep.subr.bf16.mxu0 %v1269_v7  ;;  %1245 = vmatprep.subr.bf16.mxu1 %v1269_v7 }
  0x21   : > { %1171 = vmatpush3.bf16.msra.mxu0 %v1269_v7  ;;  %1253 = vmatpush3.bf16.msra.mxu1 %v1269_v7 }
  0x22   : > { %1172 = vmatprep.subr.bf16.mxu0 %v1270_v8  ;;  %1246 = vmatprep.subr.bf16.mxu1 %v1270_v8 }
  0x25   : > { %1173 = vmatpush3.bf16.msra.mxu0 %v1270_v8  ;;  %1254 = vmatpush3.bf16.msra.mxu1 %v1270_v8 }
  0x26   : > { %1174 = vmatprep.subr.bf16.mxu0 %v1271_v9  ;;  %1247 = vmatprep.subr.bf16.mxu1 %v1271_v9 }
  0x29   : > { %1175 = vmatpush3.bf16.msra.mxu0 %v1271_v9  ;;  %1255 = vmatpush3.bf16.msra.mxu1 %v1271_v9 }
  0x2c   : > { %1177 = vmatmul.mubr.bf16.vlgmr.msra.gmra.mxu0 %v1274_v10  ;;  %1209 = vmatmul.mubr.bf16.vlgmr.msra.gmra.mxu1 %v1275_v11 }
  0x2d   : > { %1180 = vmatprep.mubr.bf16.mxu0 %v1276_v12  ;;  %1212 = vmatprep.mubr.bf16.mxu1 %v1277_v13 }
  0x34   : > { %1181 = vmatmul.mubr.bf16.gmra.mxu0 %v1278_v14  ;;  %1213 = vmatmul.mubr.bf16.gmra.mxu1 %v1279_v15 }
  0x35   : > { %1184 = vmatprep.mubr.bf16.mxu0 %v1280_v16  ;;  %1216 = vmatprep.mubr.bf16.mxu1 %v1281_v17 }
  0x3c   : > { %1185 = vmatmul.mubr.bf16.gmra.mxu0 %v1282_v18  ;;  %1217 = vmatmul.mubr.bf16.gmra.mxu1 %v1283_v19 }
  0x3d   : > { %1188 = vmatprep.mubr.bf16.mxu0 %v1284_v20  ;;  %1220 = vmatprep.mubr.bf16.mxu1 %v1285_v21 }
  0x44   : > { %1189 = vmatmul.mubr.bf16.gmra.mxu0 %v1286_v22  ;;  %1221 = vmatmul.mubr.bf16.gmra.mxu1 %v1287_v23 }
  0x45   : > { %1192 = vmatprep.mubr.bf16.mxu0 %v1288_v24  ;;  %1224 = vmatprep.mubr.bf16.mxu1 %v1289_v25 }
  0x4c   : > { %1193 = vmatmul.mubr.bf16.gmra.mxu0 %v1290_v26  ;;  %1225 = vmatmul.mubr.bf16.gmra.mxu1 %v1291_v27 }
  0x4d   : > { %1196 = vmatprep.mubr.bf16.mxu0 %v1292_v28  ;;  %1228 = vmatprep.mubr.bf16.mxu1 %v1293_v29 }
  0x54   : > { %1197 = vmatmul.mubr.bf16.gmra.mxu0 %v1294_v30  ;;  %1229 = vmatmul.mubr.bf16.gmra.mxu1 %v1295_v31 }
  0x55   : > { %1200 = vmatprep.mubr.bf16.mxu0 %v1296_v32  ;;  %1232 = vmatprep.mubr.bf16.mxu1 %v1297_v33 }
  0x5c   : > { %1201 = vmatmul.mubr.bf16.gmra.mxu0 %v1298_v34  ;;  %1233 = vmatmul.mubr.bf16.gmra.mxu1 %v1299_v35 }
  0x5d   : > { %1204 = vmatprep.mubr.bf16.mxu0 %v1300_v36  ;;  %1236 = vmatprep.mubr.bf16.mxu1 %v1301_v37 }
  0x64   : > { %1205 = vmatmul.mubr.bf16.gmra.mxu0 %v1302_v38  ;;  %1237 = vmatmul.mubr.bf16.gmra.mxu1 %v1303_v39 }
  0xec   : > { %v1178_v40 = vpop.f32.mrf.mxu0  ;;  %v1210_v41 = vpop.f32.mrf.mxu1 }
  0xed   : > { %vm759_vm0 = vcmp.gt.f32.partialorder %v1178_v40, 0.0  ;;  %v823_v42 = vmul.f32 0.2, %v1178_v40  ;;  %vm791_vm1 = vcmp.gt.f32.partialorder %v1210_v41, 0.0  ;;  %v855_v43 = vmul.f32 0.2, %v1210_v41 }
  0xee   : > { %v502_v44 = vpop.f32.mrf.mxu0  ;;  %v630_v45 = vpop.f32.mrf.mxu1 }
  0xef   : > { %v887_v46 = vsel %vm759_vm0, %v1178_v40, %v823_v42  ;;  %v919_v47 = vsel %vm791_vm1, %v1210_v41, %v855_v43  ;;  %vm757_vm2 = vcmp.gt.f32.partialorder %v502_v44, 0.0  ;;  %v821_v48 = vmul.f32 0.2, %v502_v44 }
  0xf0   : > { %951 = vst [vmem:[%s1403_s7 + $0x10] sm:$0xff] %v887_v46  ;;  %983 = vst [vmem:[%s1403_s7 + $0x110] sm:$0xff] %v919_v47  ;;  %vm789_vm3 = vcmp.gt.f32.partialorder %v630_v45, 0.0  ;;  %v853_v49 = vmul.f32 0.2, %v630_v45  ;;  %v1179_v50 = vpop.f32.mrf.mxu0  ;;  %v1211_v51 = vpop.f32.mrf.mxu1 }
  0xf1   : > { %v885_v52 = vsel %vm757_vm2, %v502_v44, %v821_v48  ;;  %vm760_vm4 = vcmp.gt.f32.partialorder %v1179_v50, 0.0  ;;  %v824_v53 = vmul.f32 0.2, %v1179_v50  ;;  %vm792_vm5 = vcmp.gt.f32.partialorder %v1211_v51, 0.0 }
  0xf2   : > { %949 = vst [vmem:[%s1403_s7] sm:$0xff] %v885_v52  ;;  %v917_v54 = vsel %vm789_vm3, %v630_v45, %v853_v49  ;;  %v856_v55 = vmul.f32 0.2, %v1211_v51  ;;  %v505_v56 = vpop.f32.mrf.mxu0  ;;  %v633_v57 = vpop.f32.mrf.mxu1 }
  0xf3   : > { %981 = vst [vmem:[%s1403_s7 + $0x100] sm:$0xff] %v917_v54  ;;  %v888_v58 = vsel %vm760_vm4, %v1179_v50, %v824_v53  ;;  %vm758_vm6 = vcmp.gt.f32.partialorder %v505_v56, 0.0  ;;  %v822_v59 = vmul.f32 0.2, %v505_v56  ;;  %vm790_vm7 = vcmp.gt.f32.partialorder %v633_v57, 0.0 }
  0xf4   : > { %952 = vst [vmem:[%s1403_s7 + $0x18] sm:$0xff] %v888_v58  ;;  %v920_v60 = vsel %vm792_vm5, %v1211_v51, %v856_v55  ;;  %v854_v61 = vmul.f32 0.2, %v633_v57  ;;  %v1182_v62 = vpop.f32.mrf.mxu0  ;;  %v1214_v63 = vpop.f32.mrf.mxu1 }
  0xf5   : > { %984 = vst [vmem:[%s1403_s7 + $0x118] sm:$0xff] %v920_v60  ;;  %v886_v0 = vsel %vm758_vm6, %v505_v56, %v822_v59  ;;  %vm763_vm8 = vcmp.gt.f32.partialorder %v1182_v62, 0.0  ;;  %v827_v1 = vmul.f32 0.2, %v1182_v62  ;;  %vm795_vm9 = vcmp.gt.f32.partialorder %v1214_v63, 0.0 }
  0xf6   : > { %950 = vst [vmem:[%s1403_s7 + $0x8] sm:$0xff] %v886_v0  ;;  %v918_v2 = vsel %vm790_vm7, %v633_v57, %v854_v61  ;;  %v859_v3 = vmul.f32 0.2, %v1214_v63  ;;  %v518_v4 = vpop.f32.mrf.mxu0  ;;  %v646_v5 = vpop.f32.mrf.mxu1 }
  0xf7   : > { %982 = vst [vmem:[%s1403_s7 + $0x108] sm:$0xff] %v918_v2  ;;  %v891_v6 = vsel %vm763_vm8, %v1182_v62, %v827_v1  ;;  %vm761_vm10 = vcmp.gt.f32.partialorder %v518_v4, 0.0  ;;  %v825_v7 = vmul.f32 0.2, %v518_v4  ;;  %vm793_vm11 = vcmp.gt.f32.partialorder %v646_v5, 0.0 }
  0xf8   : > { %955 = vst [vmem:[%s1403_s7 + $0x30] sm:$0xff] %v891_v6  ;;  %v923_v8 = vsel %vm795_vm9, %v1214_v63, %v859_v3  ;;  %v857_v9 = vmul.f32 0.2, %v646_v5  ;;  %v1183_v10 = vpop.f32.mrf.mxu0  ;;  %v1215_v11 = vpop.f32.mrf.mxu1 }
  0xf9   : > { %987 = vst [vmem:[%s1403_s7 + $0x130] sm:$0xff] %v923_v8  ;;  %v889_v12 = vsel %vm761_vm10, %v518_v4, %v825_v7  ;;  %vm764_vm12 = vcmp.gt.f32.partialorder %v1183_v10, 0.0  ;;  %v828_v13 = vmul.f32 0.2, %v1183_v10  ;;  %vm796_vm13 = vcmp.gt.f32.partialorder %v1215_v11, 0.0 }
  0xfa   : > { %953 = vst [vmem:[%s1403_s7 + $0x20] sm:$0xff] %v889_v12  ;;  %v921_v14 = vsel %vm793_vm11, %v646_v5, %v857_v9  ;;  %v860_v15 = vmul.f32 0.2, %v1215_v11  ;;  %v521_v16 = vpop.f32.mrf.mxu0  ;;  %v649_v17 = vpop.f32.mrf.mxu1 }
  0xfb   : > { %985 = vst [vmem:[%s1403_s7 + $0x120] sm:$0xff] %v921_v14  ;;  %v892_v18 = vsel %vm764_vm12, %v1183_v10, %v828_v13  ;;  %vm762_vm14 = vcmp.gt.f32.partialorder %v521_v16, 0.0  ;;  %v826_v19 = vmul.f32 0.2, %v521_v16  ;;  %vm794_vm15 = vcmp.gt.f32.partialorder %v649_v17, 0.0 }
  0xfc   : > { %956 = vst [vmem:[%s1403_s7 + $0x38] sm:$0xff] %v892_v18  ;;  %v924_v20 = vsel %vm796_vm13, %v1215_v11, %v860_v15  ;;  %v858_v21 = vmul.f32 0.2, %v649_v17  ;;  %v1186_v22 = vpop.f32.mrf.mxu0  ;;  %v1218_v23 = vpop.f32.mrf.mxu1 }
  0xfd   : > { %988 = vst [vmem:[%s1403_s7 + $0x138] sm:$0xff] %v924_v20  ;;  %v890_v24 = vsel %vm762_vm14, %v521_v16, %v826_v19  ;;  %vm767_vm0 = vcmp.gt.f32.partialorder %v1186_v22, 0.0  ;;  %v831_v25 = vmul.f32 0.2, %v1186_v22  ;;  %vm799_vm1 = vcmp.gt.f32.partialorder %v1218_v23, 0.0 }
  0xfe   : > { %954 = vst [vmem:[%s1403_s7 + $0x28] sm:$0xff] %v890_v24  ;;  %v922_v26 = vsel %vm794_vm15, %v649_v17, %v858_v21  ;;  %v863_v27 = vmul.f32 0.2, %v1218_v23  ;;  %v534_v28 = vpop.f32.mrf.mxu0  ;;  %v662_v29 = vpop.f32.mrf.mxu1 }
  0xff   : > { %986 = vst [vmem:[%s1403_s7 + $0x128] sm:$0xff] %v922_v26  ;;  %v895_v30 = vsel %vm767_vm0, %v1186_v22, %v831_v25  ;;  %vm765_vm2 = vcmp.gt.f32.partialorder %v534_v28, 0.0  ;;  %v829_v31 = vmul.f32 0.2, %v534_v28  ;;  %vm797_vm3 = vcmp.gt.f32.partialorder %v662_v29, 0.0 }
 0x100   : > { %959 = vst [vmem:[%s1403_s7 + $0x50] sm:$0xff] %v895_v30  ;;  %v927_v32 = vsel %vm799_vm1, %v1218_v23, %v863_v27  ;;  %v861_v33 = vmul.f32 0.2, %v662_v29  ;;  %v1187_v34 = vpop.f32.mrf.mxu0  ;;  %v1219_v35 = vpop.f32.mrf.mxu1 }
 0x101   : > { %991 = vst [vmem:[%s1403_s7 + $0x150] sm:$0xff] %v927_v32  ;;  %v893_v36 = vsel %vm765_vm2, %v534_v28, %v829_v31  ;;  %vm768_vm4 = vcmp.gt.f32.partialorder %v1187_v34, 0.0  ;;  %v832_v37 = vmul.f32 0.2, %v1187_v34  ;;  %vm800_vm5 = vcmp.gt.f32.partialorder %v1219_v35, 0.0 }
 0x102   : > { %957 = vst [vmem:[%s1403_s7 + $0x40] sm:$0xff] %v893_v36  ;;  %v925_v38 = vsel %vm797_vm3, %v662_v29, %v861_v33  ;;  %v864_v39 = vmul.f32 0.2, %v1219_v35  ;;  %v537_v40 = vpop.f32.mrf.mxu0  ;;  %v665_v41 = vpop.f32.mrf.mxu1 }
 0x103   : > { %989 = vst [vmem:[%s1403_s7 + $0x140] sm:$0xff] %v925_v38  ;;  %v896_v42 = vsel %vm768_vm4, %v1187_v34, %v832_v37  ;;  %vm766_vm6 = vcmp.gt.f32.partialorder %v537_v40, 0.0  ;;  %v830_v43 = vmul.f32 0.2, %v537_v40  ;;  %vm798_vm7 = vcmp.gt.f32.partialorder %v665_v41, 0.0 }
 0x104   : > { %960 = vst [vmem:[%s1403_s7 + $0x58] sm:$0xff] %v896_v42  ;;  %v928_v44 = vsel %vm800_vm5, %v1219_v35, %v864_v39  ;;  %v862_v45 = vmul.f32 0.2, %v665_v41  ;;  %v1190_v46 = vpop.f32.mrf.mxu0  ;;  %v1222_v47 = vpop.f32.mrf.mxu1 }
 0x105   : > { %992 = vst [vmem:[%s1403_s7 + $0x158] sm:$0xff] %v928_v44  ;;  %v894_v48 = vsel %vm766_vm6, %v537_v40, %v830_v43  ;;  %vm771_vm8 = vcmp.gt.f32.partialorder %v1190_v46, 0.0  ;;  %v835_v49 = vmul.f32 0.2, %v1190_v46  ;;  %vm803_vm9 = vcmp.gt.f32.partialorder %v1222_v47, 0.0 }
 0x106   : > { %958 = vst [vmem:[%s1403_s7 + $0x48] sm:$0xff] %v894_v48  ;;  %v926_v50 = vsel %vm798_vm7, %v665_v41, %v862_v45  ;;  %v867_v51 = vmul.f32 0.2, %v1222_v47  ;;  %v550_v52 = vpop.f32.mrf.mxu0  ;;  %v678_v53 = vpop.f32.mrf.mxu1 }
 0x107   : > { %990 = vst [vmem:[%s1403_s7 + $0x148] sm:$0xff] %v926_v50  ;;  %v899_v54 = vsel %vm771_vm8, %v1190_v46, %v835_v49  ;;  %vm769_vm10 = vcmp.gt.f32.partialorder %v550_v52, 0.0  ;;  %v833_v55 = vmul.f32 0.2, %v550_v52  ;;  %vm801_vm11 = vcmp.gt.f32.partialorder %v678_v53, 0.0 }
 0x108   : > { %963 = vst [vmem:[%s1403_s7 + $0x70] sm:$0xff] %v899_v54  ;;  %v931_v56 = vsel %vm803_vm9, %v1222_v47, %v867_v51  ;;  %v865_v57 = vmul.f32 0.2, %v678_v53  ;;  %v1191_v58 = vpop.f32.mrf.mxu0  ;;  %v1223_v59 = vpop.f32.mrf.mxu1 }
 0x109   : > { %995 = vst [vmem:[%s1403_s7 + $0x170] sm:$0xff] %v931_v56  ;;  %v897_v60 = vsel %vm769_vm10, %v550_v52, %v833_v55  ;;  %vm772_vm12 = vcmp.gt.f32.partialorder %v1191_v58, 0.0  ;;  %v836_v61 = vmul.f32 0.2, %v1191_v58  ;;  %vm804_vm13 = vcmp.gt.f32.partialorder %v1223_v59, 0.0 }
 0x10a   : > { %961 = vst [vmem:[%s1403_s7 + $0x60] sm:$0xff] %v897_v60  ;;  %v929_v62 = vsel %vm801_vm11, %v678_v53, %v865_v57  ;;  %v868_v63 = vmul.f32 0.2, %v1223_v59  ;;  %v553_v0 = vpop.f32.mrf.mxu0  ;;  %v681_v1 = vpop.f32.mrf.mxu1 }
 0x10b   : > { %993 = vst [vmem:[%s1403_s7 + $0x160] sm:$0xff] %v929_v62  ;;  %v900_v2 = vsel %vm772_vm12, %v1191_v58, %v836_v61  ;;  %vm770_vm14 = vcmp.gt.f32.partialorder %v553_v0, 0.0  ;;  %v834_v3 = vmul.f32 0.2, %v553_v0  ;;  %vm802_vm15 = vcmp.gt.f32.partialorder %v681_v1, 0.0 }
 0x10c   : > { %964 = vst [vmem:[%s1403_s7 + $0x78] sm:$0xff] %v900_v2  ;;  %v932_v4 = vsel %vm804_vm13, %v1223_v59, %v868_v63  ;;  %v866_v5 = vmul.f32 0.2, %v681_v1  ;;  %v1194_v6 = vpop.f32.mrf.mxu0  ;;  %v1226_v7 = vpop.f32.mrf.mxu1 }
 0x10d   : > { %996 = vst [vmem:[%s1403_s7 + $0x178] sm:$0xff] %v932_v4  ;;  %v898_v8 = vsel %vm770_vm14, %v553_v0, %v834_v3  ;;  %vm775_vm0 = vcmp.gt.f32.partialorder %v1194_v6, 0.0  ;;  %v839_v9 = vmul.f32 0.2, %v1194_v6  ;;  %vm807_vm1 = vcmp.gt.f32.partialorder %v1226_v7, 0.0 }
 0x10e   : > { %962 = vst [vmem:[%s1403_s7 + $0x68] sm:$0xff] %v898_v8  ;;  %v930_v10 = vsel %vm802_vm15, %v681_v1, %v866_v5  ;;  %v871_v11 = vmul.f32 0.2, %v1226_v7  ;;  %v566_v12 = vpop.f32.mrf.mxu0  ;;  %v694_v13 = vpop.f32.mrf.mxu1 }
 0x10f   : > { %994 = vst [vmem:[%s1403_s7 + $0x168] sm:$0xff] %v930_v10  ;;  %v903_v14 = vsel %vm775_vm0, %v1194_v6, %v839_v9  ;;  %vm773_vm2 = vcmp.gt.f32.partialorder %v566_v12, 0.0  ;;  %v837_v15 = vmul.f32 0.2, %v566_v12  ;;  %vm805_vm3 = vcmp.gt.f32.partialorder %v694_v13, 0.0 }
 0x110   : > { %967 = vst [vmem:[%s1403_s7 + $0x90] sm:$0xff] %v903_v14  ;;  %v935_v16 = vsel %vm807_vm1, %v1226_v7, %v871_v11  ;;  %v869_v17 = vmul.f32 0.2, %v694_v13  ;;  %v1195_v18 = vpop.f32.mrf.mxu0  ;;  %v1227_v19 = vpop.f32.mrf.mxu1 }
 0x111   : > { %999 = vst [vmem:[%s1403_s7 + $0x190] sm:$0xff] %v935_v16  ;;  %v901_v20 = vsel %vm773_vm2, %v566_v12, %v837_v15  ;;  %vm776_vm4 = vcmp.gt.f32.partialorder %v1195_v18, 0.0  ;;  %v840_v21 = vmul.f32 0.2, %v1195_v18  ;;  %vm808_vm5 = vcmp.gt.f32.partialorder %v1227_v19, 0.0 }
 0x112   : > { %965 = vst [vmem:[%s1403_s7 + $0x80] sm:$0xff] %v901_v20  ;;  %v933_v22 = vsel %vm805_vm3, %v694_v13, %v869_v17  ;;  %v872_v23 = vmul.f32 0.2, %v1227_v19  ;;  %v569_v24 = vpop.f32.mrf.mxu0  ;;  %v697_v25 = vpop.f32.mrf.mxu1 }
 0x113   : > { %997 = vst [vmem:[%s1403_s7 + $0x180] sm:$0xff] %v933_v22  ;;  %v904_v26 = vsel %vm776_vm4, %v1195_v18, %v840_v21  ;;  %vm774_vm6 = vcmp.gt.f32.partialorder %v569_v24, 0.0  ;;  %v838_v27 = vmul.f32 0.2, %v569_v24  ;;  %vm806_vm7 = vcmp.gt.f32.partialorder %v697_v25, 0.0 }
 0x114   : > { %968 = vst [vmem:[%s1403_s7 + $0x98] sm:$0xff] %v904_v26  ;;  %v936_v28 = vsel %vm808_vm5, %v1227_v19, %v872_v23  ;;  %v870_v29 = vmul.f32 0.2, %v697_v25  ;;  %v1198_v30 = vpop.f32.mrf.mxu0  ;;  %v1230_v31 = vpop.f32.mrf.mxu1 }
 0x115   : > { %1000 = vst [vmem:[%s1403_s7 + $0x198] sm:$0xff] %v936_v28  ;;  %v902_v32 = vsel %vm774_vm6, %v569_v24, %v838_v27  ;;  %vm779_vm8 = vcmp.gt.f32.partialorder %v1198_v30, 0.0  ;;  %v843_v33 = vmul.f32 0.2, %v1198_v30  ;;  %vm811_vm9 = vcmp.gt.f32.partialorder %v1230_v31, 0.0 }
 0x116   : > { %966 = vst [vmem:[%s1403_s7 + $0x88] sm:$0xff] %v902_v32  ;;  %v934_v34 = vsel %vm806_vm7, %v697_v25, %v870_v29  ;;  %v875_v35 = vmul.f32 0.2, %v1230_v31  ;;  %v582_v36 = vpop.f32.mrf.mxu0  ;;  %v710_v37 = vpop.f32.mrf.mxu1 }
 0x117   : > { %998 = vst [vmem:[%s1403_s7 + $0x188] sm:$0xff] %v934_v34  ;;  %v907_v38 = vsel %vm779_vm8, %v1198_v30, %v843_v33  ;;  %vm777_vm10 = vcmp.gt.f32.partialorder %v582_v36, 0.0  ;;  %v841_v39 = vmul.f32 0.2, %v582_v36  ;;  %vm809_vm11 = vcmp.gt.f32.partialorder %v710_v37, 0.0 }
 0x118   : > { %971 = vst [vmem:[%s1403_s7 + $0xb0] sm:$0xff] %v907_v38  ;;  %v939_v40 = vsel %vm811_vm9, %v1230_v31, %v875_v35  ;;  %v873_v41 = vmul.f32 0.2, %v710_v37  ;;  %v1199_v42 = vpop.f32.mrf.mxu0  ;;  %v1231_v43 = vpop.f32.mrf.mxu1 }
 0x119   : > { %1003 = vst [vmem:[%s1403_s7 + $0x1b0] sm:$0xff] %v939_v40  ;;  %v905_v44 = vsel %vm777_vm10, %v582_v36, %v841_v39  ;;  %vm780_vm12 = vcmp.gt.f32.partialorder %v1199_v42, 0.0  ;;  %v844_v45 = vmul.f32 0.2, %v1199_v42  ;;  %vm812_vm13 = vcmp.gt.f32.partialorder %v1231_v43, 0.0 }
 0x11a   : > { %969 = vst [vmem:[%s1403_s7 + $0xa0] sm:$0xff] %v905_v44  ;;  %v937_v46 = vsel %vm809_vm11, %v710_v37, %v873_v41  ;;  %v876_v47 = vmul.f32 0.2, %v1231_v43  ;;  %v585_v48 = vpop.f32.mrf.mxu0  ;;  %v713_v49 = vpop.f32.mrf.mxu1 }
 0x11b   : > { %1001 = vst [vmem:[%s1403_s7 + $0x1a0] sm:$0xff] %v937_v46  ;;  %v908_v50 = vsel %vm780_vm12, %v1199_v42, %v844_v45  ;;  %vm778_vm14 = vcmp.gt.f32.partialorder %v585_v48, 0.0  ;;  %v842_v51 = vmul.f32 0.2, %v585_v48  ;;  %vm810_vm15 = vcmp.gt.f32.partialorder %v713_v49, 0.0 }
 0x11c   : > { %972 = vst [vmem:[%s1403_s7 + $0xb8] sm:$0xff] %v908_v50  ;;  %v940_v52 = vsel %vm812_vm13, %v1231_v43, %v876_v47  ;;  %v874_v53 = vmul.f32 0.2, %v713_v49  ;;  %v1202_v54 = vpop.f32.mrf.mxu0  ;;  %v1234_v55 = vpop.f32.mrf.mxu1 }
 0x11d   : > { %1004 = vst [vmem:[%s1403_s7 + $0x1b8] sm:$0xff] %v940_v52  ;;  %v906_v56 = vsel %vm778_vm14, %v585_v48, %v842_v51  ;;  %vm783_vm0 = vcmp.gt.f32.partialorder %v1202_v54, 0.0  ;;  %v847_v57 = vmul.f32 0.2, %v1202_v54  ;;  %vm815_vm1 = vcmp.gt.f32.partialorder %v1234_v55, 0.0 }
 0x11e   : > { %970 = vst [vmem:[%s1403_s7 + $0xa8] sm:$0xff] %v906_v56  ;;  %v938_v58 = vsel %vm810_vm15, %v713_v49, %v874_v53  ;;  %v879_v59 = vmul.f32 0.2, %v1234_v55  ;;  %v598_v60 = vpop.f32.mrf.mxu0  ;;  %v726_v61 = vpop.f32.mrf.mxu1 }
 0x11f   : > { %1002 = vst [vmem:[%s1403_s7 + $0x1a8] sm:$0xff] %v938_v58  ;;  %v911_v62 = vsel %vm783_vm0, %v1202_v54, %v847_v57  ;;  %vm781_vm2 = vcmp.gt.f32.partialorder %v598_v60, 0.0  ;;  %v845_v63 = vmul.f32 0.2, %v598_v60  ;;  %vm813_vm3 = vcmp.gt.f32.partialorder %v726_v61, 0.0 }
 0x120   : > { %975 = vst [vmem:[%s1403_s7 + $0xd0] sm:$0xff] %v911_v62  ;;  %v943_v0 = vsel %vm815_vm1, %v1234_v55, %v879_v59  ;;  %v877_v1 = vmul.f32 0.2, %v726_v61  ;;  %v1203_v2 = vpop.f32.mrf.mxu0  ;;  %v1235_v3 = vpop.f32.mrf.mxu1 }
 0x121   : > { %1007 = vst [vmem:[%s1403_s7 + $0x1d0] sm:$0xff] %v943_v0  ;;  %v909_v4 = vsel %vm781_vm2, %v598_v60, %v845_v63  ;;  %vm784_vm4 = vcmp.gt.f32.partialorder %v1203_v2, 0.0  ;;  %v848_v5 = vmul.f32 0.2, %v1203_v2  ;;  %vm816_vm5 = vcmp.gt.f32.partialorder %v1235_v3, 0.0 }
 0x122   : > { %973 = vst [vmem:[%s1403_s7 + $0xc0] sm:$0xff] %v909_v4  ;;  %v941_v6 = vsel %vm813_vm3, %v726_v61, %v877_v1  ;;  %v880_v7 = vmul.f32 0.2, %v1235_v3  ;;  %v601_v8 = vpop.f32.mrf.mxu0  ;;  %v729_v9 = vpop.f32.mrf.mxu1 }
 0x123   : > { %1005 = vst [vmem:[%s1403_s7 + $0x1c0] sm:$0xff] %v941_v6  ;;  %v912_v10 = vsel %vm784_vm4, %v1203_v2, %v848_v5  ;;  %vm782_vm6 = vcmp.gt.f32.partialorder %v601_v8, 0.0  ;;  %v846_v11 = vmul.f32 0.2, %v601_v8  ;;  %vm814_vm7 = vcmp.gt.f32.partialorder %v729_v9, 0.0 }
 0x124   : > { %976 = vst [vmem:[%s1403_s7 + $0xd8] sm:$0xff] %v912_v10  ;;  %v944_v12 = vsel %vm816_vm5, %v1235_v3, %v880_v7  ;;  %v878_v13 = vmul.f32 0.2, %v729_v9  ;;  %v1206_v14 = vpop.f32.mrf.mxu0  ;;  %v1238_v15 = vpop.f32.mrf.mxu1 }
 0x125   : > { %1008 = vst [vmem:[%s1403_s7 + $0x1d8] sm:$0xff] %v944_v12  ;;  %v910_v16 = vsel %vm782_vm6, %v601_v8, %v846_v11  ;;  %vm787_vm8 = vcmp.gt.f32.partialorder %v1206_v14, 0.0  ;;  %v851_v17 = vmul.f32 0.2, %v1206_v14  ;;  %vm819_vm9 = vcmp.gt.f32.partialorder %v1238_v15, 0.0 }
 0x126   : > { %974 = vst [vmem:[%s1403_s7 + $0xc8] sm:$0xff] %v910_v16  ;;  %v942_v18 = vsel %vm814_vm7, %v729_v9, %v878_v13  ;;  %v883_v19 = vmul.f32 0.2, %v1238_v15  ;;  %v614_v20 = vpop.f32.mrf.mxu0  ;;  %v742_v21 = vpop.f32.mrf.mxu1 }
 0x127   : > { %1006 = vst [vmem:[%s1403_s7 + $0x1c8] sm:$0xff] %v942_v18  ;;  %v915_v22 = vsel %vm787_vm8, %v1206_v14, %v851_v17  ;;  %vm785_vm10 = vcmp.gt.f32.partialorder %v614_v20, 0.0  ;;  %v849_v23 = vmul.f32 0.2, %v614_v20  ;;  %vm817_vm11 = vcmp.gt.f32.partialorder %v742_v21, 0.0 }
 0x128   : > { %979 = vst [vmem:[%s1403_s7 + $0xf0] sm:$0xff] %v915_v22  ;;  %v947_v24 = vsel %vm819_vm9, %v1238_v15, %v883_v19  ;;  %v881_v25 = vmul.f32 0.2, %v742_v21  ;;  %v1207_v26 = vpop.f32.mrf.mxu0  ;;  %v1239_v27 = vpop.f32.mrf.mxu1 }
 0x129   : > { %1011 = vst [vmem:[%s1403_s7 + $0x1f0] sm:$0xff] %v947_v24  ;;  %v913_v28 = vsel %vm785_vm10, %v614_v20, %v849_v23  ;;  %vm788_vm12 = vcmp.gt.f32.partialorder %v1207_v26, 0.0  ;;  %v852_v29 = vmul.f32 0.2, %v1207_v26  ;;  %vm820_vm13 = vcmp.gt.f32.partialorder %v1239_v27, 0.0 }
 0x12a   : > { %977 = vst [vmem:[%s1403_s7 + $0xe0] sm:$0xff] %v913_v28  ;;  %v945_v30 = vsel %vm817_vm11, %v742_v21, %v881_v25  ;;  %v884_v31 = vmul.f32 0.2, %v1239_v27  ;;  %v617_v32 = vpop.f32.mrf.mxu0  ;;  %v745_v33 = vpop.f32.mrf.mxu1 }
 0x12b   : > { %1009 = vst [vmem:[%s1403_s7 + $0x1e0] sm:$0xff] %v945_v30  ;;  %v916_v34 = vsel %vm788_vm12, %v1207_v26, %v852_v29  ;;  %vm786_vm14 = vcmp.gt.f32.partialorder %v617_v32, 0.0  ;;  %v850_v35 = vmul.f32 0.2, %v617_v32  ;;  %vm818_vm15 = vcmp.gt.f32.partialorder %v745_v33, 0.0 }
 0x12c   : > { %980 = vst [vmem:[%s1403_s7 + $0xf8] sm:$0xff] %v916_v34  ;;  %v948_v36 = vsel %vm820_vm13, %v1239_v27, %v884_v31  ;;  %v882_v37 = vmul.f32 0.2, %v745_v33 }
 0x12d   : > { %1012 = vst [vmem:[%s1403_s7 + $0x1f8] sm:$0xff] %v948_v36  ;;  %v914_v38 = vsel %vm786_vm14, %v617_v32, %v850_v35 }
 0x12e   : > { %978 = vst [vmem:[%s1403_s7 + $0xe8] sm:$0xff] %v914_v38  ;;  %v946_v39 = vsel %vm818_vm15, %v745_v33, %v882_v37 }
 0x12f   : > { %1010 = vst [vmem:[%s1403_s7 + $0x1e8] sm:$0xff] %v946_v39 }
 0x130 PF: > { %s12_s9 = sadd.s32 1, %s1310_s9  }
 0x131   : > { %p9_p4 = scmp.ge.s32.totalorder %s12_s9, 6  }
 0x133   :  { %11 = sbr.rel (!%p9_p4) target bundleno = 1 (0x1), region = 58 }

// kernel: discriminator_forward.6
= control target key start
LH: loop header
LB: loop body
LE: loop exit
PB: predicated region body
PF: predicated region fallthrough
CT: control target
= control target key end

     0   :  { %s1958_s15 = smov 0   ;;  %s1960_s16 = smov 0   ;;  %s3350_s0 = inlined_call_operand.vmem [shape: bf16[512,128], index: 0, kind: input, shape index: {}]   ;;  %s3351_s1 = inlined_call_operand.vmem [shape: bf16[128,128], index: 1, kind: input, shape index: {}]   ;;  %s3352_s2 = inlined_call_operand.vmem [shape: f32[1,128], index: 2, kind: input, shape index: {}]   ;;  %s3353_s3 = inlined_call_operand.vmem [shape: f32[1,128], index: 3, kind: input, shape index: {}]   ;;  %s3354_s4 = inlined_call_operand.vmem [shape: f32[512,128], index: 4, kind: output, shape index: {}]  }
   0x1   :  { %s1962_s17 = smov 0  }
   0x2 LB: > { %s26_s18 = sadd.s32 1, %s1926_s16  ;;  %p1655_p0 = scmp.ge.s32.totalorder %s1930_s17, 1  ;;  %s1930_s17 = sphi %s1962_s17, %s14_s17   ;;  %s1926_s16 = sphi %s1960_s16, %s3564_s16   ;;  %s1922_s15 = sphi %s1958_s15, %s3563_s15  }
   0x3   : > { %p28_p1 = scmp.ge.s32.totalorder %s26_s18, 2  ;;  %p175_p2 = scmp.lt.s32.totalorder %s1930_s17, 3 }
   0x5   : > { %s3566_s18 = smov (%p28_p1, %s26_s18), 0  ;;  %p176_p3 = pnand %p1655_p0, %p175_p2 }
   0x7   : > { %179 = sbr.rel (%p176_p3) target bundleno = 622 (0x26e), region = 36 }
   0xc   : > { %v1866_v0 = vld [vmem:[%s3351_s1 + $0x38] sm:$0xff]   ;;  %v1867_v1 = vld [vmem:[%s3351_s1 + $0x30] sm:$0xff]   ;;  %v1868_v2 = vld [vmem:[%s3351_s1 + $0x28] sm:$0xff]   ;;  %p823_p4 = scmp.eq.s32.totalorder %s1922_s15, 0 }
   0xd   : > { %1745 = vmatprep.subr.bf16.mxu0 %v1866_v0  ;;  %1825 = vmatprep.subr.bf16.mxu1 %v1866_v0  ;;  %v1869_v3 = vld [vmem:[%s3351_s1 + $0x20] sm:$0xff]   ;;  %v1870_v6 = vld [vmem:[%s3351_s1 + $0x18] sm:$0xff]   ;;  %v1871_v7 = vld [vmem:[%s3351_s1 + $0x10] sm:$0xff]  }
   0xe   : > { %1746 = vmatpush3.bf16.msra.mxu0 %v1866_v0  ;;  %1833 = vmatpush3.bf16.msra.mxu1 %v1866_v0  ;;  %v1874_v4 = vld [vmem:[%s3350_s0] sm:$0xff]   ;;  %v1872_v8 = vld [vmem:[%s3351_s1 + $0x8] sm:$0xff]   ;;  %v1878_v12 = vld [vmem:[%s3350_s0 + $0x10] sm:$0xff]  }
   0xf   : > { %1747 = vmatprep.subr.bf16.mxu0 %v1867_v1  ;;  %1826 = vmatprep.subr.bf16.mxu1 %v1867_v1  ;;  %v1875_v5 = vld [vmem:[%s3350_s0 + $0x80] sm:$0xff]   ;;  %v1876_v10 = vld [vmem:[%s3350_s0 + $0x8] sm:$0xff]   ;;  %v1879_v13 = vld [vmem:[%s3350_s0 + $0x90] sm:$0xff]  }
  0x10   : > { %1761 = vmatprep.mubr.bf16.mxu0 %v1874_v4  ;;  %1793 = vmatprep.mubr.bf16.mxu1 %v1875_v5  ;;  %v1873_v9 = vld [vmem:[%s3351_s1] sm:$0xff]   ;;  %v1877_v11 = vld [vmem:[%s3350_s0 + $0x88] sm:$0xff]   ;;  %v1880_v14 = vld [vmem:[%s3350_s0 + $0x18] sm:$0xff]  }
  0x11   : > { %v1881_v15 = vld [vmem:[%s3350_s0 + $0x98] sm:$0xff]   ;;  %v1882_v16 = vld [vmem:[%s3350_s0 + $0x20] sm:$0xff]   ;;  %v1884_v18 = vld [vmem:[%s3350_s0 + $0x28] sm:$0xff]  }
  0x12   : > { %1748 = vmatpush3.bf16.msra.mxu0 %v1867_v1  ;;  %1834 = vmatpush3.bf16.msra.mxu1 %v1867_v1  ;;  %v1883_v17 = vld [vmem:[%s3350_s0 + $0xa0] sm:$0xff]   ;;  %v1885_v19 = vld [vmem:[%s3350_s0 + $0xa8] sm:$0xff]   ;;  %v1886_v20 = vld [vmem:[%s3350_s0 + $0x30] sm:$0xff]  }
  0x13   : > { %1749 = vmatprep.subr.bf16.mxu0 %v1868_v2  ;;  %1827 = vmatprep.subr.bf16.mxu1 %v1868_v2  ;;  %v1887_v21 = vld [vmem:[%s3350_s0 + $0xb0] sm:$0xff]   ;;  %v1888_v22 = vld [vmem:[%s3350_s0 + $0x38] sm:$0xff]   ;;  %v1890_v24 = vld [vmem:[%s3350_s0 + $0x40] sm:$0xff]  }
  0x14   : > { %v1889_v23 = vld [vmem:[%s3350_s0 + $0xb8] sm:$0xff]   ;;  %v1891_v25 = vld [vmem:[%s3350_s0 + $0xc0] sm:$0xff]   ;;  %v1892_v26 = vld [vmem:[%s3350_s0 + $0x48] sm:$0xff]  }
  0x15   : > { %v1893_v27 = vld [vmem:[%s3350_s0 + $0xc8] sm:$0xff]   ;;  %v1894_v28 = vld [vmem:[%s3350_s0 + $0x50] sm:$0xff]   ;;  %v1896_v30 = vld [vmem:[%s3350_s0 + $0x58] sm:$0xff]  }
  0x16   : > { %1750 = vmatpush3.bf16.msra.mxu0 %v1868_v2  ;;  %1835 = vmatpush3.bf16.msra.mxu1 %v1868_v2  ;;  %v1895_v29 = vld [vmem:[%s3350_s0 + $0xd0] sm:$0xff]   ;;  %v1897_v31 = vld [vmem:[%s3350_s0 + $0xd8] sm:$0xff]   ;;  %v1898_v32 = vld [vmem:[%s3350_s0 + $0x60] sm:$0xff]  }
  0x17   : > { %1751 = vmatprep.subr.bf16.mxu0 %v1869_v3  ;;  %1828 = vmatprep.subr.bf16.mxu1 %v1869_v3  ;;  %v1899_v33 = vld [vmem:[%s3350_s0 + $0xe0] sm:$0xff]   ;;  %v1900_v34 = vld [vmem:[%s3350_s0 + $0x68] sm:$0xff]   ;;  %v1902_v36 = vld [vmem:[%s3350_s0 + $0x70] sm:$0xff]  }
  0x18   : > { %v1901_v35 = vld [vmem:[%s3350_s0 + $0xe8] sm:$0xff]   ;;  %v1903_v37 = vld [vmem:[%s3350_s0 + $0xf0] sm:$0xff]   ;;  %v1904_v38 = vld [vmem:[%s3350_s0 + $0x78] sm:$0xff]  }
  0x19   : > { %v1905_v39 = vld [vmem:[%s3350_s0 + $0xf8] sm:$0xff]  }
  0x1a   : > { %1752 = vmatpush3.bf16.msra.mxu0 %v1869_v3  ;;  %1836 = vmatpush3.bf16.msra.mxu1 %v1869_v3 }
  0x1b   : > { %1753 = vmatprep.subr.bf16.mxu0 %v1870_v6  ;;  %1829 = vmatprep.subr.bf16.mxu1 %v1870_v6 }
  0x1e   : > { %1754 = vmatpush3.bf16.msra.mxu0 %v1870_v6  ;;  %1837 = vmatpush3.bf16.msra.mxu1 %v1870_v6 }
  0x1f   : > { %1755 = vmatprep.subr.bf16.mxu0 %v1871_v7  ;;  %1830 = vmatprep.subr.bf16.mxu1 %v1871_v7 }
  0x22   : > { %1756 = vmatpush3.bf16.msra.mxu0 %v1871_v7  ;;  %1838 = vmatpush3.bf16.msra.mxu1 %v1871_v7 }
  0x23   : > { %1757 = vmatprep.subr.bf16.mxu0 %v1872_v8  ;;  %1831 = vmatprep.subr.bf16.mxu1 %v1872_v8 }
  0x26   : > { %1758 = vmatpush3.bf16.msra.mxu0 %v1872_v8  ;;  %1839 = vmatpush3.bf16.msra.mxu1 %v1872_v8 }
  0x27   : > { %1759 = vmatprep.subr.bf16.mxu0 %v1873_v9  ;;  %1832 = vmatprep.subr.bf16.mxu1 %v1873_v9 }
  0x2a   : > { %1760 = vmatpush3.bf16.msra.mxu0 %v1873_v9  ;;  %1840 = vmatpush3.bf16.msra.mxu1 %v1873_v9 }
  0x2d   : > { %1762 = vmatmul.mubr.bf16.vlgmr.msra.gmra.mxu0 %v1876_v10  ;;  %1794 = vmatmul.mubr.bf16.vlgmr.msra.gmra.mxu1 %v1877_v11 }
  0x2e   : > { %1765 = vmatprep.mubr.bf16.mxu0 %v1878_v12  ;;  %1797 = vmatprep.mubr.bf16.mxu1 %v1879_v13 }
  0x35   : > { %1766 = vmatmul.mubr.bf16.gmra.mxu0 %v1880_v14  ;;  %1798 = vmatmul.mubr.bf16.gmra.mxu1 %v1881_v15 }
  0x36   : > { %1769 = vmatprep.mubr.bf16.mxu0 %v1882_v16  ;;  %1801 = vmatprep.mubr.bf16.mxu1 %v1883_v17 }
  0x3d   : > { %1770 = vmatmul.mubr.bf16.gmra.mxu0 %v1884_v18  ;;  %1802 = vmatmul.mubr.bf16.gmra.mxu1 %v1885_v19 }
  0x3e   : > { %1773 = vmatprep.mubr.bf16.mxu0 %v1886_v20  ;;  %1805 = vmatprep.mubr.bf16.mxu1 %v1887_v21 }
  0x45   : > { %1774 = vmatmul.mubr.bf16.gmra.mxu0 %v1888_v22  ;;  %1806 = vmatmul.mubr.bf16.gmra.mxu1 %v1889_v23 }
  0x46   : > { %1777 = vmatprep.mubr.bf16.mxu0 %v1890_v24  ;;  %1809 = vmatprep.mubr.bf16.mxu1 %v1891_v25 }
  0x4d   : > { %1778 = vmatmul.mubr.bf16.gmra.mxu0 %v1892_v26  ;;  %1810 = vmatmul.mubr.bf16.gmra.mxu1 %v1893_v27 }
  0x4e   : > { %1781 = vmatprep.mubr.bf16.mxu0 %v1894_v28  ;;  %1813 = vmatprep.mubr.bf16.mxu1 %v1895_v29 }
  0x55   : > { %1782 = vmatmul.mubr.bf16.gmra.mxu0 %v1896_v30  ;;  %1814 = vmatmul.mubr.bf16.gmra.mxu1 %v1897_v31 }
  0x56   : > { %1785 = vmatprep.mubr.bf16.mxu0 %v1898_v32  ;;  %1817 = vmatprep.mubr.bf16.mxu1 %v1899_v33 }
  0x5d   : > { %1786 = vmatmul.mubr.bf16.gmra.mxu0 %v1900_v34  ;;  %1818 = vmatmul.mubr.bf16.gmra.mxu1 %v1901_v35 }
  0x5e   : > { %1789 = vmatprep.mubr.bf16.mxu0 %v1902_v36  ;;  %1821 = vmatprep.mubr.bf16.mxu1 %v1903_v37 }
  0x65   : > { %1790 = vmatmul.mubr.bf16.gmra.mxu0 %v1904_v38  ;;  %1822 = vmatmul.mubr.bf16.gmra.mxu1 %v1905_v39 }
  0xed   : > { %v2099_v40 = vpop.f32.mrf.mxu0  ;;  %v2101_v41 = vpop.f32.mrf.mxu1 }
  0xee   : > { %3418 = vst [vmem:[#allocation4_spill] sm:$0xff] %v2099_v40 }
  0xef   : > { %v2103_v42 = vpop.f32.mrf.mxu0  ;;  %v2105_v43 = vpop.f32.mrf.mxu1 }
  0xf0   : > { %3419 = vst [vmem:[#allocation5_spill] sm:$0xff] %v2103_v42 }
  0xf1   : > { %v2107_v44 = vpop.f32.mrf.mxu0  ;;  %v2109_v45 = vpop.f32.mrf.mxu1 }
  0xf3   : > { %v2111_v46 = vpop.f32.mrf.mxu0  ;;  %v2113_v47 = vpop.f32.mrf.mxu1 }
  0xf4   : > { %3420 = vst [vmem:[#allocation6_spill] sm:$0xff] %v2111_v46 }
  0xf5   : > { %v2115_v48 = vpop.f32.mrf.mxu0  ;;  %v2117_v49 = vpop.f32.mrf.mxu1 }
  0xf7   : > { %v2119_v50 = vpop.f32.mrf.mxu0  ;;  %v2121_v51 = vpop.f32.mrf.mxu1 }
  0xf9   : > { %v2123_v52 = vpop.f32.mrf.mxu0  ;;  %v2125_v53 = vpop.f32.mrf.mxu1 }
  0xfb   : > { %v2127_v54 = vpop.f32.mrf.mxu0  ;;  %v2129_v55 = vpop.f32.mrf.mxu1 }
  0xfd   : > { %v2131_v56 = vpop.f32.mrf.mxu0  ;;  %v2133_v57 = vpop.f32.mrf.mxu1 }
  0xfe   : > { %3421 = vst [vmem:[#allocation7_spill] sm:$0xff] %v2133_v57 }
  0xff   : > { %v2135_v58 = vpop.f32.mrf.mxu0  ;;  %v2137_v59 = vpop.f32.mrf.mxu1 }
 0x101   : > { %v2139_v60 = vpop.f32.mrf.mxu0  ;;  %v2141_v61 = vpop.f32.mrf.mxu1 }
 0x102   : > { %3422 = vst [vmem:[#allocation8_spill] sm:$0xff] %v2141_v61 }
 0x103   : > { %v2143_v62 = vpop.f32.mrf.mxu0  ;;  %v2145_v63 = vpop.f32.mrf.mxu1 }
 0x104   : > { %3423 = vst [vmem:[#allocation9_spill] sm:$0xff] %v2145_v63 }
 0x105   : > { %v2147_v0 = vpop.f32.mrf.mxu0  ;;  %v2149_v1 = vpop.f32.mrf.mxu1 }
 0x106   : > { %3424 = vst [vmem:[#allocation10_spill] sm:$0xff] %v2149_v1 }
 0x107   : > { %v2151_v2 = vpop.f32.mrf.mxu0  ;;  %v2153_v3 = vpop.f32.mrf.mxu1 }
 0x108   : > { %3425 = vst [vmem:[#allocation11_spill] sm:$0xff] %v2153_v3 }
 0x109   : > { %v2155_v4 = vpop.f32.mrf.mxu0  ;;  %v2157_v5 = vpop.f32.mrf.mxu1 }
 0x10a   : > { %3426 = vst [vmem:[#allocation12_spill] sm:$0xff] %v2157_v5 }
 0x10b   : > { %v2159_v6 = vpop.f32.mrf.mxu0  ;;  %v2161_v7 = vpop.f32.mrf.mxu1 }
 0x10c   : > { %3427 = vst [vmem:[#allocation13_spill] sm:$0xff] %v2161_v7 }
 0x10d   : > { %v2163_v8 = vpop.f32.mrf.mxu0  ;;  %v2165_v9 = vpop.f32.mrf.mxu1 }
 0x10e   : > { %3428 = vst [vmem:[#allocation14_spill] sm:$0xff] %v2165_v9 }
 0x10f   : > { %v2167_v10 = vpop.f32.mrf.mxu0  ;;  %v2169_v11 = vpop.f32.mrf.mxu1 }
 0x110   : > { %3429 = vst [vmem:[#allocation15_spill] sm:$0xff] %v2169_v11 }
 0x111   : > { %v2171_v12 = vpop.f32.mrf.mxu0  ;;  %v2173_v13 = vpop.f32.mrf.mxu1 }
 0x112   : > { %3430 = vst [vmem:[#allocation16_spill] sm:$0xff] %v2173_v13 }
 0x113   : > { %v2175_v14 = vpop.f32.mrf.mxu0  ;;  %v2177_v15 = vpop.f32.mrf.mxu1 }
 0x114   : > { %3431 = vst [vmem:[#allocation17_spill] sm:$0xff] %v2177_v15 }
 0x115   : > { %v2179_v16 = vpop.f32.mrf.mxu0  ;;  %v2181_v17 = vpop.f32.mrf.mxu1 }
 0x116   : > { %3432 = vst [vmem:[#allocation18_spill] sm:$0xff] %v2181_v17 }
 0x117   : > { %v2183_v18 = vpop.f32.mrf.mxu0  ;;  %v2185_v19 = vpop.f32.mrf.mxu1 }
 0x118   : > { %3433 = vst [vmem:[#allocation19_spill] sm:$0xff] %v2185_v19 }
 0x119   : > { %v2187_v20 = vpop.f32.mrf.mxu0  ;;  %v2189_v21 = vpop.f32.mrf.mxu1 }
 0x11a   : > { %3434 = vst [vmem:[#allocation20_spill] sm:$0xff] %v2189_v21 }
 0x11b   : > { %v2191_v22 = vpop.f32.mrf.mxu0  ;;  %v2193_v23 = vpop.f32.mrf.mxu1 }
 0x11c   : > { %3435 = vst [vmem:[#allocation21_spill] sm:$0xff] %v2193_v23 }
 0x11d   : > { %v2195_v24 = vpop.f32.mrf.mxu0  ;;  %v2197_v25 = vpop.f32.mrf.mxu1 }
 0x11e   : > { %3436 = vst [vmem:[#allocation22_spill] sm:$0xff] %v2197_v25 }
 0x11f   : > { %v2199_v26 = vpop.f32.mrf.mxu0  ;;  %v2201_v27 = vpop.f32.mrf.mxu1 }
 0x120   : > { %3437 = vst [vmem:[#allocation23_spill] sm:$0xff] %v2201_v27 }
 0x121   : > { %v2203_v28 = vpop.f32.mrf.mxu0  ;;  %v2205_v29 = vpop.f32.mrf.mxu1 }
 0x122   : > { %3438 = vst [vmem:[#allocation24_spill] sm:$0xff] %v2205_v29  ;;  %v1932_v29 = vmov (%p823_p4), 0.0  }
 0x123   : > { %v2207_v30 = vpop.f32.mrf.mxu0  ;;  %v2209_v31 = vpop.f32.mrf.mxu1  ;;  %829 = vst [vmem:[#allocation2] sm:$0x1] (%p823_p4), %v1932_v29  ;;  %830 = vst [vmem:[#allocation3] sm:$0x1] (%p823_p4), %v1932_v29 }
 0x124   : > { %3439 = vst [vmem:[#allocation25_spill] sm:$0xff] %v2209_v31 }
 0x125   : > { %v2211_v32 = vpop.f32.mrf.mxu0  ;;  %v2213_v33 = vpop.f32.mrf.mxu1 }
 0x126   : > { %3440 = vst [vmem:[#allocation26_spill] sm:$0xff] %v2213_v33 }
 0x127   : > { %v2215_v34 = vpop.f32.mrf.mxu0  ;;  %v2217_v35 = vpop.f32.mrf.mxu1 }
 0x128   : > { %3441 = vst [vmem:[#allocation27_spill] sm:$0xff] %v2217_v35  ;;  %828 = sbr.rel (!%p823_p4) target bundleno = 301 (0x12d), region = 40 }
 0x129   : > { %v2219_v36 = vpop.f32.mrf.mxu0  ;;  %v2221_v37 = vpop.f32.mrf.mxu1 }
 0x12a   : > { %3442 = vst [vmem:[#allocation28_spill] sm:$0xff] %v2221_v37 }
 0x12b   : > { %v2223_v38 = vpop.f32.mrf.mxu0  ;;  %v2225_v39 = vpop.f32.mrf.mxu1 }
 0x12c   : > { %3443 = vst [vmem:[#allocation29_spill] sm:$0xff] %v2225_v39 }
 0x12d PF: > { %p1697_p5 = scmp.ne.s32.totalorder %s1922_s15, 0 }
 0x12f   : > { %833 = sbr.rel (%p1697_p5) target bundleno = 488 (0x1e8), region = 44 }
 0x134   : > { %v2232_v33 = vadd.f32 %v2111_v46, %v2103_v42  ;;  %1042 = vst [vmem:[%s3354_s4] sm:$0xff] %v2103_v42  ;;  %1043 = vst [vmem:[%s3354_s4 + $0x8] sm:$0xff] %v2111_v46  ;;  %v3444_v29 = vld [vmem:[#allocation24_spill] sm:$0xff] }
 0x135   : > { %1044 = vst [vmem:[%s3354_s4 + $0x10] sm:$0xff] %v2099_v40  ;;  %1045 = vst [vmem:[%s3354_s4 + $0x18] sm:$0xff] %v2107_v44 }
 0x136   : > { %1046 = vst [vmem:[%s3354_s4 + $0x20] sm:$0xff] %v2119_v50  ;;  %1047 = vst [vmem:[%s3354_s4 + $0x28] sm:$0xff] %v2127_v54 }
 0x137   : > { %1048 = vst [vmem:[%s3354_s4 + $0x30] sm:$0xff] %v2115_v48  ;;  %1049 = vst [vmem:[%s3354_s4 + $0x38] sm:$0xff] %v2123_v52 }
 0x138   : > { %1050 = vst [vmem:[%s3354_s4 + $0x40] sm:$0xff] %v2135_v58  ;;  %1051 = vst [vmem:[%s3354_s4 + $0x48] sm:$0xff] %v2143_v62 }
 0x139   : > { %1052 = vst [vmem:[%s3354_s4 + $0x50] sm:$0xff] %v2131_v56  ;;  %1053 = vst [vmem:[%s3354_s4 + $0x58] sm:$0xff] %v2139_v60 }
 0x13a   : > { %1054 = vst [vmem:[%s3354_s4 + $0x60] sm:$0xff] %v2151_v2  ;;  %1055 = vst [vmem:[%s3354_s4 + $0x68] sm:$0xff] %v2159_v6 }
 0x13b   : > { %1056 = vst [vmem:[%s3354_s4 + $0x70] sm:$0xff] %v2147_v0  ;;  %1057 = vst [vmem:[%s3354_s4 + $0x78] sm:$0xff] %v2155_v4 }
 0x13c   : > { %1058 = vst [vmem:[%s3354_s4 + $0x80] sm:$0xff] %v2167_v10  ;;  %1059 = vst [vmem:[%s3354_s4 + $0x88] sm:$0xff] %v2175_v14 }
 0x13d   : > { %1060 = vst [vmem:[%s3354_s4 + $0x90] sm:$0xff] %v2163_v8  ;;  %1061 = vst [vmem:[%s3354_s4 + $0x98] sm:$0xff] %v2171_v12 }
 0x13e   : > { %1062 = vst [vmem:[%s3354_s4 + $0xa0] sm:$0xff] %v2183_v18  ;;  %1063 = vst [vmem:[%s3354_s4 + $0xa8] sm:$0xff] %v2191_v22 }
 0x13f   : > { %1064 = vst [vmem:[%s3354_s4 + $0xb0] sm:$0xff] %v2179_v16  ;;  %1065 = vst [vmem:[%s3354_s4 + $0xb8] sm:$0xff] %v2187_v20 }
 0x140   : > { %1066 = vst [vmem:[%s3354_s4 + $0xc0] sm:$0xff] %v2199_v26  ;;  %1067 = vst [vmem:[%s3354_s4 + $0xc8] sm:$0xff] %v2207_v30 }
 0x141   : > { %1068 = vst [vmem:[%s3354_s4 + $0xd0] sm:$0xff] %v2195_v24  ;;  %1069 = vst [vmem:[%s3354_s4 + $0xd8] sm:$0xff] %v2203_v28 }
 0x142   : > { %1070 = vst [vmem:[%s3354_s4 + $0xe0] sm:$0xff] %v2215_v34  ;;  %1071 = vst [vmem:[%s3354_s4 + $0xe8] sm:$0xff] %v2223_v38 }
 0x143   : > { %1072 = vst [vmem:[%s3354_s4 + $0xf0] sm:$0xff] %v2211_v32  ;;  %1073 = vst [vmem:[%s3354_s4 + $0xf8] sm:$0xff] %v2219_v36 }
 0x144   : > { %1074 = vst [vmem:[%s3354_s4 + $0x100] sm:$0xff] %v2105_v43  ;;  %1075 = vst [vmem:[%s3354_s4 + $0x108] sm:$0xff] %v2113_v47 }
 0x145   : > { %1076 = vst [vmem:[%s3354_s4 + $0x110] sm:$0xff] %v2101_v41  ;;  %1077 = vst [vmem:[%s3354_s4 + $0x118] sm:$0xff] %v2109_v45 }
 0x146   : > { %1078 = vst [vmem:[%s3354_s4 + $0x120] sm:$0xff] %v2121_v51  ;;  %1079 = vst [vmem:[%s3354_s4 + $0x128] sm:$0xff] %v2129_v55 }
 0x147   : > { %1080 = vst [vmem:[%s3354_s4 + $0x130] sm:$0xff] %v2117_v49  ;;  %1081 = vst [vmem:[%s3354_s4 + $0x138] sm:$0xff] %v2125_v53 }
 0x148   : > { %1082 = vst [vmem:[%s3354_s4 + $0x140] sm:$0xff] %v2137_v59  ;;  %1083 = vst [vmem:[%s3354_s4 + $0x148] sm:$0xff] %v2145_v63 }
 0x149   : > { %1084 = vst [vmem:[%s3354_s4 + $0x150] sm:$0xff] %v2133_v57  ;;  %1085 = vst [vmem:[%s3354_s4 + $0x158] sm:$0xff] %v2141_v61 }
 0x14a   : > { %1086 = vst [vmem:[%s3354_s4 + $0x160] sm:$0xff] %v2153_v3  ;;  %1087 = vst [vmem:[%s3354_s4 + $0x168] sm:$0xff] %v2161_v7 }
 0x14b   : > { %1088 = vst [vmem:[%s3354_s4 + $0x170] sm:$0xff] %v2149_v1  ;;  %1089 = vst [vmem:[%s3354_s4 + $0x178] sm:$0xff] %v2157_v5 }
 0x14c   : > { %1090 = vst [vmem:[%s3354_s4 + $0x180] sm:$0xff] %v2169_v11  ;;  %1091 = vst [vmem:[%s3354_s4 + $0x188] sm:$0xff] %v2177_v15 }
 0x14d   : > { %1092 = vst [vmem:[%s3354_s4 + $0x190] sm:$0xff] %v2165_v9  ;;  %1093 = vst [vmem:[%s3354_s4 + $0x198] sm:$0xff] %v2173_v13 }
 0x14e   : > { %1094 = vst [vmem:[%s3354_s4 + $0x1a0] sm:$0xff] %v2185_v19  ;;  %1095 = vst [vmem:[%s3354_s4 + $0x1a8] sm:$0xff] %v2193_v23 }
 0x14f   : > { %1096 = vst [vmem:[%s3354_s4 + $0x1b0] sm:$0xff] %v2181_v17  ;;  %1097 = vst [vmem:[%s3354_s4 + $0x1b8] sm:$0xff] %v2189_v21  ;;  %v907_v17 = vmul.f32 %v2103_v42, %v2103_v42 }
 0x150   : > { %1098 = vst [vmem:[%s3354_s4 + $0x1c0] sm:$0xff] %v2201_v27  ;;  %1099 = vst [vmem:[%s3354_s4 + $0x1c8] sm:$0xff] %v2209_v31  ;;  %v3445_v31 = vld [vmem:[#allocation26_spill] sm:$0xff] }
 0x151   : > { %1100 = vst [vmem:[%s3354_s4 + $0x1d0] sm:$0xff] %v2197_v25  ;;  %1101 = vst [vmem:[%s3354_s4 + $0x1d8] sm:$0xff] %v3444_v29  ;;  %v836_v29 = vadd.f32 %v2099_v40, %v2232_v33 }
 0x152   : > { %1102 = vst [vmem:[%s3354_s4 + $0x1e0] sm:$0xff] %v2217_v35  ;;  %1103 = vst [vmem:[%s3354_s4 + $0x1e8] sm:$0xff] %v2225_v39 }
 0x153   : > { %1104 = vst [vmem:[%s3354_s4 + $0x1f0] sm:$0xff] %v3445_v31  ;;  %1105 = vst [vmem:[%s3354_s4 + $0x1f8] sm:$0xff] %v2221_v37  ;;  %v837_v35 = vadd.f32 %v2107_v44, %v836_v29  ;;  %v908_v37 = vmul.f32 %v2111_v46, %v2111_v46  ;;  %v909_v29 = vmul.f32 %v2099_v40, %v2099_v40 }
 0x155   : > { %v838_v25 = vadd.f32 %v837_v35, %v2119_v50 }
 0x157   : > { %v839_v27 = vadd.f32 %v838_v25, %v2127_v54  ;;  %v910_v25 = vmul.f32 %v2107_v44, %v2107_v44 }
 0x159   : > { %v840_v39 = vadd.f32 %v2115_v48, %v839_v27  ;;  %v971_v27 = vadd.f32 %v908_v37, %v907_v17  ;;  %v914_v37 = vmul.f32 %v2123_v52, %v2123_v52 }
 0x15b   : > { %v841_v21 = vadd.f32 %v2123_v52, %v840_v39  ;;  %v972_v42 = vadd.f32 %v971_v27, %v909_v29  ;;  %v915_v27 = vmul.f32 %v2135_v58, %v2135_v58 }
 0x15d   : > { %v842_v31 = vadd.f32 %v841_v21, %v2135_v58  ;;  %v911_v21 = vmul.f32 %v2119_v50, %v2119_v50  ;;  %v973_v46 = vadd.f32 %v972_v42, %v910_v25 }
 0x15f   : > { %v843_v33 = vadd.f32 %v842_v31, %v2143_v62  ;;  %v912_v31 = vmul.f32 %v2127_v54, %v2127_v54  ;;  %v974_v19 = vadd.f32 %v973_v46, %v911_v21 }
 0x161   : > { %v844_v35 = vadd.f32 %v2131_v56, %v843_v33  ;;  %v913_v33 = vmul.f32 %v2115_v48, %v2115_v48 }
 0x163   : > { %v845_v39 = vadd.f32 %v2139_v60, %v844_v35  ;;  %v975_v35 = vadd.f32 %v974_v19, %v912_v31  ;;  %v918_v31 = vmul.f32 %v2139_v60, %v2139_v60 }
 0x165   : > { %v846_v23 = vadd.f32 %v845_v39, %v2151_v2  ;;  %v976_v39 = vadd.f32 %v975_v35, %v913_v33  ;;  %v919_v35 = vmul.f32 %v2151_v2, %v2151_v2 }
 0x167   : > { %v847_v40 = vadd.f32 %v846_v23, %v2159_v6  ;;  %v916_v23 = vmul.f32 %v2143_v62, %v2143_v62  ;;  %v977_v25 = vadd.f32 %v976_v39, %v914_v37  ;;  %v920_v39 = vmul.f32 %v2159_v6, %v2159_v6 }
 0x169   : > { %v848_v17 = vadd.f32 %v2147_v0, %v847_v40  ;;  %v917_v40 = vmul.f32 %v2131_v56, %v2131_v56  ;;  %v978_v21 = vadd.f32 %v977_v25, %v915_v27  ;;  %v921_v25 = vmul.f32 %v2147_v0, %v2147_v0 }
 0x16b   : > { %v849_v29 = vadd.f32 %v2155_v4, %v848_v17  ;;  %v979_v17 = vadd.f32 %v978_v21, %v916_v23  ;;  %v922_v21 = vmul.f32 %v2155_v4, %v2155_v4 }
 0x16d   : > { %v850_v42 = vadd.f32 %v849_v29, %v2167_v10  ;;  %v980_v29 = vadd.f32 %v979_v17, %v917_v40  ;;  %v923_v17 = vmul.f32 %v2167_v10, %v2167_v10 }
 0x16f   : > { %v851_v46 = vadd.f32 %v850_v42, %v2175_v14  ;;  %v981_v42 = vadd.f32 %v980_v29, %v918_v31  ;;  %v924_v29 = vmul.f32 %v2175_v14, %v2175_v14 }
 0x171   : > { %v852_v19 = vadd.f32 %v2163_v8, %v851_v46  ;;  %v982_v46 = vadd.f32 %v981_v42, %v919_v35  ;;  %v925_v42 = vmul.f32 %v2163_v8, %v2163_v8 }
 0x173   : > { %v853_v33 = vadd.f32 %v2171_v12, %v852_v19  ;;  %v983_v19 = vadd.f32 %v982_v46, %v920_v39  ;;  %v926_v46 = vmul.f32 %v2171_v12, %v2171_v12 }
 0x175   : > { %v854_v37 = vadd.f32 %v853_v33, %v2183_v18  ;;  %v984_v33 = vadd.f32 %v983_v19, %v921_v25  ;;  %v927_v19 = vmul.f32 %v2183_v18, %v2183_v18 }
 0x177   : > { %v855_v27 = vadd.f32 %v854_v37, %v2191_v22  ;;  %v985_v37 = vadd.f32 %v984_v33, %v922_v21  ;;  %v928_v33 = vmul.f32 %v2191_v22, %v2191_v22 }
 0x179   : > { %v856_v23 = vadd.f32 %v2179_v16, %v855_v27  ;;  %v986_v27 = vadd.f32 %v985_v37, %v923_v17  ;;  %v929_v37 = vmul.f32 %v2179_v16, %v2179_v16 }
 0x17b   : > { %v857_v40 = vadd.f32 %v2187_v20, %v856_v23  ;;  %v987_v23 = vadd.f32 %v986_v27, %v924_v29  ;;  %v930_v27 = vmul.f32 %v2187_v20, %v2187_v20 }
 0x17d   : > { %v858_v31 = vadd.f32 %v857_v40, %v2199_v26  ;;  %v988_v40 = vadd.f32 %v987_v23, %v925_v42  ;;  %v931_v23 = vmul.f32 %v2199_v26, %v2199_v26 }
 0x17f   : > { %v859_v35 = vadd.f32 %v858_v31, %v2207_v30  ;;  %v989_v31 = vadd.f32 %v988_v40, %v926_v46  ;;  %v932_v40 = vmul.f32 %v2207_v30, %v2207_v30 }
 0x181   : > { %v860_v39 = vadd.f32 %v2195_v24, %v859_v35  ;;  %v990_v35 = vadd.f32 %v989_v31, %v927_v19  ;;  %v933_v31 = vmul.f32 %v2195_v24, %v2195_v24 }
 0x183   : > { %v861_v25 = vadd.f32 %v2203_v28, %v860_v39  ;;  %v991_v39 = vadd.f32 %v990_v35, %v928_v33  ;;  %v934_v35 = vmul.f32 %v2203_v28, %v2203_v28 }
 0x185   : > { %v862_v21 = vadd.f32 %v861_v25, %v2215_v34  ;;  %v992_v25 = vadd.f32 %v991_v39, %v929_v37  ;;  %v935_v39 = vmul.f32 %v2215_v34, %v2215_v34 }
 0x187   : > { %v863_v17 = vadd.f32 %v862_v21, %v2223_v38  ;;  %v993_v21 = vadd.f32 %v992_v25, %v930_v27  ;;  %v936_v25 = vmul.f32 %v2223_v38, %v2223_v38 }
 0x189   : > { %v864_v29 = vadd.f32 %v2211_v32, %v863_v17  ;;  %v994_v17 = vadd.f32 %v993_v21, %v931_v23  ;;  %v937_v21 = vmul.f32 %v2211_v32, %v2211_v32 }
 0x18b   : > { %v865_v42 = vadd.f32 %v2219_v36, %v864_v29  ;;  %v995_v29 = vadd.f32 %v994_v17, %v932_v40  ;;  %v938_v17 = vmul.f32 %v2219_v36, %v2219_v36 }
 0x18d   : > { %v866_v46 = vadd.f32 %v865_v42, %v2105_v43  ;;  %v996_v42 = vadd.f32 %v995_v29, %v933_v31  ;;  %v939_v29 = vmul.f32 %v2105_v43, %v2105_v43 }
 0x18f   : > { %v867_v19 = vadd.f32 %v866_v46, %v2113_v47  ;;  %v997_v46 = vadd.f32 %v996_v42, %v934_v35  ;;  %v940_v42 = vmul.f32 %v2113_v47, %v2113_v47 }
 0x191   : > { %v868_v33 = vadd.f32 %v2101_v41, %v867_v19  ;;  %v998_v19 = vadd.f32 %v997_v46, %v935_v39  ;;  %v941_v46 = vmul.f32 %v2101_v41, %v2101_v41 }
 0x193   : > { %v869_v37 = vadd.f32 %v2109_v45, %v868_v33  ;;  %v999_v33 = vadd.f32 %v998_v19, %v936_v25  ;;  %v942_v19 = vmul.f32 %v2109_v45, %v2109_v45 }
 0x195   : > { %v870_v27 = vadd.f32 %v869_v37, %v2121_v51  ;;  %v1000_v37 = vadd.f32 %v999_v33, %v937_v21  ;;  %v943_v33 = vmul.f32 %v2121_v51, %v2121_v51 }
 0x197   : > { %v871_v23 = vadd.f32 %v870_v27, %v2129_v55  ;;  %v1001_v27 = vadd.f32 %v1000_v37, %v938_v17  ;;  %v944_v37 = vmul.f32 %v2129_v55, %v2129_v55 }
 0x199   : > { %v872_v40 = vadd.f32 %v2117_v49, %v871_v23  ;;  %v1002_v23 = vadd.f32 %v1001_v27, %v939_v29  ;;  %v945_v27 = vmul.f32 %v2117_v49, %v2117_v49 }
 0x19b   : > { %v873_v31 = vadd.f32 %v2125_v53, %v872_v40  ;;  %v1003_v40 = vadd.f32 %v1002_v23, %v940_v42  ;;  %v946_v23 = vmul.f32 %v2125_v53, %v2125_v53 }
 0x19d   : > { %v874_v35 = vadd.f32 %v873_v31, %v2137_v59  ;;  %v1004_v31 = vadd.f32 %v1003_v40, %v941_v46  ;;  %v947_v40 = vmul.f32 %v2137_v59, %v2137_v59 }
 0x19f   : > { %v875_v39 = vadd.f32 %v874_v35, %v2145_v63  ;;  %v1005_v35 = vadd.f32 %v1004_v31, %v942_v19  ;;  %v948_v31 = vmul.f32 %v2145_v63, %v2145_v63  ;;  %v3446_v63 = vld [vmem:[#allocation19_spill] sm:$0xff] }
 0x1a1   : > { %v876_v25 = vadd.f32 %v2133_v57, %v875_v39  ;;  %v1006_v39 = vadd.f32 %v1005_v35, %v943_v33  ;;  %v949_v35 = vmul.f32 %v2133_v57, %v2133_v57  ;;  %v3447_v57 = vld [vmem:[#allocation21_spill] sm:$0xff] }
 0x1a3   : > { %v877_v21 = vadd.f32 %v2141_v61, %v876_v25  ;;  %v1007_v25 = vadd.f32 %v1006_v39, %v944_v37  ;;  %v950_v39 = vmul.f32 %v2141_v61, %v2141_v61  ;;  %v3448_v61 = vld [vmem:[#allocation18_spill] sm:$0xff] }
 0x1a5   : > { %v878_v17 = vadd.f32 %v877_v21, %v2153_v3  ;;  %v1008_v21 = vadd.f32 %v1007_v25, %v945_v27  ;;  %v951_v25 = vmul.f32 %v2153_v3, %v2153_v3  ;;  %v3449_v3 = vld [vmem:[#allocation20_spill] sm:$0xff] }
 0x1a7   : > { %v879_v29 = vadd.f32 %v878_v17, %v2161_v7  ;;  %v1009_v17 = vadd.f32 %v1008_v21, %v946_v23  ;;  %v952_v21 = vmul.f32 %v2161_v7, %v2161_v7  ;;  %v3450_v7 = vld [vmem:[#allocation23_spill] sm:$0xff] }
 0x1a9   : > { %v880_v42 = vadd.f32 %v2149_v1, %v879_v29  ;;  %v1010_v29 = vadd.f32 %v1009_v17, %v947_v40  ;;  %v953_v17 = vmul.f32 %v2149_v1, %v2149_v1  ;;  %v3451_v1 = vld [vmem:[#allocation25_spill] sm:$0xff] }
 0x1ab   : > { %v881_v46 = vadd.f32 %v2157_v5, %v880_v42  ;;  %v1011_v42 = vadd.f32 %v1010_v29, %v948_v31  ;;  %v954_v29 = vmul.f32 %v2157_v5, %v2157_v5  ;;  %v3452_v5 = vld [vmem:[#allocation22_spill] sm:$0xff] }
 0x1ad   : > { %v882_v19 = vadd.f32 %v881_v46, %v2169_v11  ;;  %v1012_v46 = vadd.f32 %v1011_v42, %v949_v35  ;;  %v955_v42 = vmul.f32 %v2169_v11, %v2169_v11  ;;  %v3453_v11 = vld [vmem:[#allocation24_spill] sm:$0xff] }
 0x1af   : > { %v883_v33 = vadd.f32 %v882_v19, %v2177_v15  ;;  %v1013_v19 = vadd.f32 %v1012_v46, %v950_v39  ;;  %v956_v46 = vmul.f32 %v2177_v15, %v2177_v15  ;;  %v3454_v15 = vld [vmem:[#allocation27_spill] sm:$0xff] }
 0x1b1   : > { %v884_v37 = vadd.f32 %v2165_v9, %v883_v33  ;;  %v1014_v33 = vadd.f32 %v1013_v19, %v951_v25  ;;  %v957_v19 = vmul.f32 %v2165_v9, %v2165_v9  ;;  %v3455_v9 = vld [vmem:[#allocation29_spill] sm:$0xff] }
 0x1b3   : > { %v885_v27 = vadd.f32 %v2173_v13, %v884_v37  ;;  %v1015_v37 = vadd.f32 %v1014_v33, %v952_v21  ;;  %v958_v33 = vmul.f32 %v2173_v13, %v2173_v13  ;;  %v3456_v13 = vld [vmem:[#allocation26_spill] sm:$0xff] }
 0x1b5   : > { %v886_v23 = vadd.f32 %v885_v27, %v3446_v63  ;;  %v1016_v27 = vadd.f32 %v1015_v37, %v953_v17  ;;  %v959_v37 = vmul.f32 %v3446_v63, %v3446_v63  ;;  %v3457_v63 = vld [vmem:[#allocation28_spill] sm:$0xff] }
 0x1b7   : > { %v887_v40 = vadd.f32 %v886_v23, %v3447_v57  ;;  %v1017_v23 = vadd.f32 %v1016_v27, %v954_v29  ;;  %v960_v27 = vmul.f32 %v3447_v57, %v3447_v57 }
 0x1b9   : > { %v888_v31 = vadd.f32 %v3448_v61, %v887_v40  ;;  %v1018_v40 = vadd.f32 %v1017_v23, %v955_v42  ;;  %v961_v23 = vmul.f32 %v3448_v61, %v3448_v61  ;;  %v965_v61 = vmul.f32 %v3452_v5, %v3452_v5 }
 0x1bb   : > { %v889_v35 = vadd.f32 %v3449_v3, %v888_v31  ;;  %v1019_v31 = vadd.f32 %v1018_v40, %v956_v46  ;;  %v962_v40 = vmul.f32 %v3449_v3, %v3449_v3  ;;  %v966_v3 = vmul.f32 %v3453_v11, %v3453_v11 }
 0x1bd   : > { %v890_v39 = vadd.f32 %v889_v35, %v3450_v7  ;;  %v1020_v35 = vadd.f32 %v1019_v31, %v957_v19  ;;  %v963_v31 = vmul.f32 %v3450_v7, %v3450_v7  ;;  %v967_v7 = vmul.f32 %v3454_v15, %v3454_v15 }
 0x1bf   : > { %v891_v25 = vadd.f32 %v890_v39, %v3451_v1  ;;  %v1021_v39 = vadd.f32 %v1020_v35, %v958_v33  ;;  %v964_v33 = vmul.f32 %v3451_v1, %v3451_v1  ;;  %v968_v1 = vmul.f32 %v3455_v9, %v3455_v9 }
 0x1c1   : > { %v892_v21 = vadd.f32 %v3452_v5, %v891_v25  ;;  %v1022_v25 = vadd.f32 %v1021_v39, %v959_v37  ;;  %v969_v5 = vmul.f32 %v3456_v13, %v3456_v13 }
 0x1c3   : > { %v893_v17 = vadd.f32 %v3453_v11, %v892_v21  ;;  %v1023_v21 = vadd.f32 %v1022_v25, %v960_v27  ;;  %v970_v11 = vmul.f32 %v3457_v63, %v3457_v63 }
 0x1c5   : > { %v894_v29 = vadd.f32 %v893_v17, %v3454_v15  ;;  %v1024_v17 = vadd.f32 %v1023_v21, %v961_v23 }
 0x1c7   : > { %v895_v42 = vadd.f32 %v894_v29, %v3455_v9  ;;  %v1025_v35 = vadd.f32 %v1024_v17, %v962_v40  ;;  %v834_v40 = vld [vmem:[#allocation2] sm:$0x1] }
 0x1c9   : > { %v896_v46 = vadd.f32 %v3456_v13, %v895_v42  ;;  %v1026_v37 = vadd.f32 %v1025_v35, %v963_v31 }
 0x1cb   : > { %v897_v19 = vadd.f32 %v3457_v63, %v896_v46  ;;  %v1027_v27 = vadd.f32 %v1026_v37, %v964_v33  ;;  %v906_v37 = vld [vmem:[#allocation3] sm:$0x1] }
 0x1cd   : > { %v898_v57 = vrot.slane %v897_v19, 4  ;;  %v1028_v23 = vadd.f32 %v1027_v27, %v965_v61 }
 0x1cf   : > { %v899_v29 = vadd.f32 %v898_v57, %v897_v19  ;;  %v1029_v46 = vadd.f32 %v1028_v23, %v966_v3 }
 0x1d1   : > { %v900_v39 = vrot.slane %v899_v29, 2  ;;  %v1030_v19 = vadd.f32 %v1029_v46, %v967_v7 }
 0x1d3   : > { %v901_v42 = vadd.f32 %v900_v39, %v899_v29  ;;  %v1031_v17 = vadd.f32 %v1030_v19, %v968_v1 }
 0x1d5   : > { %v902_v25 = vrot.slane %v901_v42, 1  ;;  %v1032_v57 = vadd.f32 %v1031_v17, %v969_v5 }
 0x1d7   : > { %v903_v21 = vadd.f32 %v902_v25, %v901_v42  ;;  %v1033_v15 = vadd.f32 %v1032_v57, %v970_v11 }
 0x1d9   : > { %v904_v31 = vadd.f32 %v903_v21, %v834_v40  ;;  %v1034_v33 = vrot.slane %v1033_v15, 4 }
 0x1db   : > { %905 = vst [vmem:[#allocation2] sm:$0x1] %v904_v31  ;;  %v1035_v35 = vadd.f32 %v1034_v33, %v1033_v15 }
 0x1dd   : > { %v1036_v29 = vrot.slane %v1035_v35, 2 }
 0x1df   : > { %v1037_v61 = vadd.f32 %v1036_v29, %v1035_v35 }
 0x1e1   : > { %v1038_v9 = vrot.slane %v1037_v61, 1 }
 0x1e3   : > { %v1039_v39 = vadd.f32 %v1038_v9, %v1037_v61 }
 0x1e5   : > { %v1040_v3 = vadd.f32 %v1039_v39, %v906_v37 }
 0x1e7   : > { %1041 = vst [vmem:[#allocation3] sm:$0x1] %v1040_v3 }
 0x1e8 PF: > { %p1698_p6 = scmp.ne.s32.totalorder %s1922_s15, 1 }
 0x1ea   : > { %1109 = sbr.rel (%p1698_p6) target bundleno = 622 (0x26e), region = 48 }
 0x1ef   : > { %v1110_v13 = vld [vmem:[#allocation2] sm:$0x1]  ;;  %v1112_v27 = vld [vmem:[#allocation3] sm:$0x1]  ;;  %v1121_v63 = vlaneseq  ;;  %v3458_v5 = vld [vmem:[#allocation5_spill] sm:$0xff] }
 0x1f0   : > { %v1111_v42 = vmul.f32 0.001953125, %v1110_v13  ;;  %v1113_v7 = vmul.f32 0.001953125, %v1112_v27  ;;  %v3459_v31 = vld [vmem:[#allocation6_spill] sm:$0xff]  ;;  %v3460_v17 = vld [vmem:[#allocation4_spill] sm:$0xff]  ;;  %v3464_v37 = vld [vmem:[#allocation11_spill] sm:$0xff] }
 0x1f1   : > { %v2682_v23 = vshrl.u32 %v1121_v63, 7  ;;  %v3461_v63 = vld [vmem:[#allocation9_spill] sm:$0xff]  ;;  %v3470_v11 = vld [vmem:[#allocation14_spill] sm:$0xff]  ;;  %v3475_v15 = vld [vmem:[#allocation20_spill] sm:$0xff] }
 0x1f2   : > { %v1114_v25 = vmul.f32 %v1111_v42, %v1111_v42  ;;  %v3469_v3 = vld [vmem:[#allocation17_spill] sm:$0xff]  ;;  %v3474_v33 = vld [vmem:[#allocation18_spill] sm:$0xff]  ;;  %v2819_v13 = vld [vmem:[%s3353_s3] ss:$0 sm:$0xff] }
 0x1f3   : > { %v3417_v1 = vsub.s32 0, %v2682_v23  ;;  %v3477_v9 = vsub.s32 0, %v2682_v23 }
 0x1f4   : > { %v1115_v46 = vsub.f32 %v1113_v7, %v1114_v25  ;;  %v1118_v25 = vld [vmem:[%s3352_s2] sm:$0x1]  ;;  %v3463_v7 = vld [vmem:[#allocation8_spill] sm:$0xff] }
 0x1f5   : > { %v2687_v40 = vrot.slane %v1111_v42, %v3417_v1  ;;  %v3462_v42 = vld [vmem:[#allocation7_spill] sm:$0xff] }
 0x1f6   : > { %v1116_v21 = vadd.f32 1e-05, %v1115_v46 }
 0x1f7   : > { %v3485_v35 = vsub.f32 %v3458_v5, %v2687_v40  ;;  %v3486_v46 = vsub.f32 %v3459_v31, %v2687_v40  ;;  %v3487_v27 = vsub.f32 %v3460_v17, %v2687_v40  ;;  %v3488_v19 = vsub.f32 %v2107_v44, %v2687_v40 }
 0x1f8   : > { %1906 = vrsqrt.f32 %v1116_v21  ;;  %v3489_v5 = vsub.f32 %v2119_v50, %v2687_v40  ;;  %v3490_v31 = vsub.f32 %v2127_v54, %v2687_v40  ;;  %v3491_v17 = vsub.f32 %v2115_v48, %v2687_v40 }
 0x1f9   : > { %v3492_v44 = vsub.f32 %v2123_v52, %v2687_v40 }
 0x205   : > { %v1907_v29 = vpop.eup %1906 }
 0x206   : > { %v1119_v39 = vmul.f32 %v1907_v29, %v1118_v25  ;;  %v3481_v25 = vld [vmem:[#allocation27_spill] sm:$0xff] }
 0x208   : > { %v2808_v57 = vrot.slane %v1119_v39, %v3477_v9 }
 0x20a   : > { %v1196_v21 = vmul.f32 %v2808_v57, %v3485_v35  ;;  %v1197_v29 = vmul.f32 %v2808_v57, %v3486_v46  ;;  %v1198_v9 = vmul.f32 %v2808_v57, %v3487_v27  ;;  %v1199_v1 = vmul.f32 %v2808_v57, %v3488_v19 }
 0x20b   : > { %v1200_v35 = vmul.f32 %v2808_v57, %v3489_v5  ;;  %v1201_v46 = vmul.f32 %v2808_v57, %v3490_v31  ;;  %v1202_v27 = vmul.f32 %v2808_v57, %v3491_v17  ;;  %v1203_v19 = vmul.f32 %v2808_v57, %v3492_v44 }
 0x20c   : > { %v1267_v61 = vadd.f32 %v2819_v13, %v1196_v21  ;;  %v1268_v50 = vadd.f32 %v2819_v13, %v1197_v29  ;;  %v1269_v5 = vadd.f32 %v2819_v13, %v1198_v9  ;;  %v1270_v54 = vadd.f32 %v2819_v13, %v1199_v1 }
 0x20d   : > { %v1271_v31 = vadd.f32 %v2819_v13, %v1200_v35  ;;  %v1272_v39 = vadd.f32 %v2819_v13, %v1201_v46  ;;  %v1273_v48 = vadd.f32 %v2819_v13, %v1202_v27  ;;  %v1274_v17 = vadd.f32 %v2819_v13, %v1203_v19 }
 0x20e   : > { %vm1331_vm0 = vcmp.gt.f32.partialorder %v1267_v61, 0.0  ;;  %v1395_v52 = vmul.f32 0.2, %v1267_v61  ;;  %vm1332_vm1 = vcmp.gt.f32.partialorder %v1268_v50, 0.0  ;;  %v1396_v44 = vmul.f32 0.2, %v1268_v50 }
 0x20f   : > { %vm1333_vm2 = vcmp.gt.f32.partialorder %v1269_v5, 0.0  ;;  %v1397_v21 = vmul.f32 0.2, %v1269_v5  ;;  %vm1334_vm3 = vcmp.gt.f32.partialorder %v1270_v54, 0.0  ;;  %v1398_v29 = vmul.f32 0.2, %v1270_v54 }
 0x210   : > { %v1459_v23 = vsel %vm1331_vm0, %v1267_v61, %v1395_v52  ;;  %v1460_v9 = vsel %vm1332_vm1, %v1268_v50, %v1396_v44  ;;  %vm1335_vm4 = vcmp.gt.f32.partialorder %v1271_v31, 0.0  ;;  %v1399_v1 = vmul.f32 0.2, %v1271_v31 }
 0x211   : > { %1523 = vst [vmem:[%s3354_s4] sm:$0xff] %v1459_v23  ;;  %1524 = vst [vmem:[%s3354_s4 + $0x8] sm:$0xff] %v1460_v9  ;;  %v1461_v35 = vsel %vm1333_vm2, %v1269_v5, %v1397_v21  ;;  %v1462_v46 = vsel %vm1334_vm3, %v1270_v54, %v1398_v29  ;;  %vm1336_vm5 = vcmp.gt.f32.partialorder %v1272_v39, 0.0  ;;  %v1400_v27 = vmul.f32 0.2, %v1272_v39 }
 0x212   : > { %1525 = vst [vmem:[%s3354_s4 + $0x10] sm:$0xff] %v1461_v35  ;;  %1526 = vst [vmem:[%s3354_s4 + $0x18] sm:$0xff] %v1462_v46  ;;  %v1463_v61 = vsel %vm1335_vm4, %v1271_v31, %v1399_v1  ;;  %vm1337_vm6 = vcmp.gt.f32.partialorder %v1273_v48, 0.0  ;;  %v1401_v19 = vmul.f32 0.2, %v1273_v48  ;;  %vm1338_vm7 = vcmp.gt.f32.partialorder %v1274_v17, 0.0 }
 0x213   : > { %1527 = vst [vmem:[%s3354_s4 + $0x20] sm:$0xff] %v1463_v61  ;;  %v1464_v23 = vsel %vm1336_vm5, %v1272_v39, %v1400_v27  ;;  %v1402_v50 = vmul.f32 0.2, %v1274_v17  ;;  %v3493_v5 = vsub.f32 %v2135_v58, %v2687_v40  ;;  %v3494_v52 = vsub.f32 %v2143_v62, %v2687_v40 }
 0x214   : > { %1528 = vst [vmem:[%s3354_s4 + $0x28] sm:$0xff] %v1464_v23  ;;  %v1465_v31 = vsel %vm1337_vm6, %v1273_v48, %v1401_v19  ;;  %v3495_v21 = vsub.f32 %v2131_v56, %v2687_v40  ;;  %v3496_v58 = vsub.f32 %v2139_v60, %v2687_v40  ;;  %v3497_v62 = vsub.f32 %v2151_v2, %v2687_v40 }
 0x215   : > { %v1204_v54 = vmul.f32 %v2808_v57, %v3493_v5  ;;  %v1205_v44 = vmul.f32 %v2808_v57, %v3494_v52  ;;  %1529 = vst [vmem:[%s3354_s4 + $0x30] sm:$0xff] %v1465_v31  ;;  %v1466_v48 = vsel %vm1338_vm7, %v1274_v17, %v1402_v50  ;;  %v3498_v35 = vsub.f32 %v2159_v6, %v2687_v40 }
 0x216   : > { %v1206_v39 = vmul.f32 %v2808_v57, %v3495_v21  ;;  %v1207_v29 = vmul.f32 %v2808_v57, %v3496_v58  ;;  %v1208_v9 = vmul.f32 %v2808_v57, %v3497_v62  ;;  %1530 = vst [vmem:[%s3354_s4 + $0x38] sm:$0xff] %v1466_v48  ;;  %v3499_v17 = vsub.f32 %v2147_v0, %v2687_v40 }
 0x217   : > { %v1275_v1 = vadd.f32 %v2819_v13, %v1204_v54  ;;  %v1276_v56 = vadd.f32 %v2819_v13, %v1205_v44  ;;  %v1209_v60 = vmul.f32 %v2808_v57, %v3498_v35  ;;  %v3500_v58 = vsub.f32 %v2155_v4, %v2687_v40 }
 0x218   : > { %v1277_v2 = vadd.f32 %v2819_v13, %v1206_v39  ;;  %v1278_v46 = vadd.f32 %v2819_v13, %v1207_v29  ;;  %v1279_v27 = vadd.f32 %v2819_v13, %v1208_v9  ;;  %v1210_v61 = vmul.f32 %v2808_v57, %v3499_v17 }
 0x219   : > { %vm1339_vm8 = vcmp.gt.f32.partialorder %v1275_v1, 0.0  ;;  %v1403_v19 = vmul.f32 0.2, %v1275_v1  ;;  %vm1340_vm9 = vcmp.gt.f32.partialorder %v1276_v56, 0.0  ;;  %v1404_v6 = vmul.f32 0.2, %v1276_v56 }
 0x21a   : > { %vm1341_vm10 = vcmp.gt.f32.partialorder %v1277_v2, 0.0  ;;  %v1405_v23 = vmul.f32 0.2, %v1277_v2  ;;  %vm1342_vm11 = vcmp.gt.f32.partialorder %v1278_v46, 0.0  ;;  %v1406_v50 = vmul.f32 0.2, %v1278_v46 }
 0x21b   : > { %v1467_v5 = vsel %vm1339_vm8, %v1275_v1, %v1403_v19  ;;  %v1468_v54 = vsel %vm1340_vm9, %v1276_v56, %v1404_v6  ;;  %vm1343_vm12 = vcmp.gt.f32.partialorder %v1279_v27, 0.0  ;;  %v1407_v52 = vmul.f32 0.2, %v1279_v27 }
 0x21c   : > { %1531 = vst [vmem:[%s3354_s4 + $0x40] sm:$0xff] %v1467_v5  ;;  %1532 = vst [vmem:[%s3354_s4 + $0x48] sm:$0xff] %v1468_v54  ;;  %v1469_v0 = vsel %vm1341_vm10, %v1277_v2, %v1405_v23  ;;  %v1470_v44 = vsel %vm1342_vm11, %v1278_v46, %v1406_v50  ;;  %v1280_v31 = vadd.f32 %v2819_v13, %v1209_v60 }
 0x21d   : > { %v1281_v21 = vadd.f32 %v2819_v13, %v1210_v61  ;;  %1533 = vst [vmem:[%s3354_s4 + $0x50] sm:$0xff] %v1469_v0  ;;  %1534 = vst [vmem:[%s3354_s4 + $0x58] sm:$0xff] %v1470_v44  ;;  %v1471_v39 = vsel %vm1343_vm12, %v1279_v27, %v1407_v52  ;;  %v1211_v29 = vmul.f32 %v2808_v57, %v3500_v58 }
 0x21e   : > { %v3501_v62 = vsub.f32 %v2167_v10, %v2687_v40  ;;  %v3502_v48 = vsub.f32 %v2175_v14, %v2687_v40  ;;  %1535 = vst [vmem:[%s3354_s4 + $0x60] sm:$0xff] %v1471_v39  ;;  %vm1344_vm13 = vcmp.gt.f32.partialorder %v1280_v31, 0.0  ;;  %v1408_v56 = vmul.f32 0.2, %v1280_v31 }
 0x21f   : > { %vm1345_vm14 = vcmp.gt.f32.partialorder %v1281_v21, 0.0  ;;  %v1409_v4 = vmul.f32 0.2, %v1281_v21  ;;  %v1282_v35 = vadd.f32 %v2819_v13, %v1211_v29  ;;  %v3503_v2 = vsub.f32 %v2163_v8, %v2687_v40 }
 0x220   : > { %v1212_v9 = vmul.f32 %v2808_v57, %v3501_v62  ;;  %v1213_v1 = vmul.f32 %v2808_v57, %v3502_v48  ;;  %v1472_v46 = vsel %vm1344_vm13, %v1280_v31, %v1408_v56  ;;  %v3504_v17 = vsub.f32 %v2171_v12, %v2687_v40 }
 0x221   : > { %v1214_v14 = vmul.f32 %v2808_v57, %v3503_v2  ;;  %v1473_v27 = vsel %vm1345_vm14, %v1281_v21, %v1409_v4  ;;  %v3505_v19 = vsub.f32 %v2183_v18, %v2687_v40  ;;  %1536 = vst [vmem:[%s3354_s4 + $0x68] sm:$0xff] %v1472_v46  ;;  %vm1346_vm15 = vcmp.gt.f32.partialorder %v1282_v35, 0.0 }
 0x222   : > { %v1283_v60 = vadd.f32 %v2819_v13, %v1212_v9  ;;  %v1284_v10 = vadd.f32 %v2819_v13, %v1213_v1  ;;  %v1215_v61 = vmul.f32 %v2808_v57, %v3504_v17  ;;  %1537 = vst [vmem:[%s3354_s4 + $0x70] sm:$0xff] %v1473_v27  ;;  %v1410_v8 = vmul.f32 0.2, %v1282_v35 }
 0x223   : > { %v1216_v6 = vmul.f32 %v2808_v57, %v3505_v19  ;;  %v1285_v50 = vadd.f32 %v2819_v13, %v1214_v14  ;;  %v3506_v0 = vsub.f32 %v2191_v22, %v2687_v40  ;;  %v3507_v62 = vsub.f32 %v2179_v16, %v2687_v40 }
 0x224   : > { %vm1347_vm0 = vcmp.gt.f32.partialorder %v1283_v60, 0.0  ;;  %v1411_v23 = vmul.f32 0.2, %v1283_v60  ;;  %vm1348_vm1 = vcmp.gt.f32.partialorder %v1284_v10, 0.0  ;;  %v1412_v12 = vmul.f32 0.2, %v1284_v10 }
 0x225   : > { %v1286_v18 = vadd.f32 %v2819_v13, %v1215_v61  ;;  %v1474_v5 = vsel %vm1346_vm15, %v1282_v35, %v1410_v8  ;;  %v1287_v52 = vadd.f32 %v2819_v13, %v1216_v6  ;;  %v1217_v44 = vmul.f32 %v2808_v57, %v3506_v0 }
 0x226   : > { %v1475_v54 = vsel %vm1347_vm0, %v1283_v60, %v1411_v23  ;;  %1538 = vst [vmem:[%s3354_s4 + $0x78] sm:$0xff] %v1474_v5  ;;  %v1476_v31 = vsel %vm1348_vm1, %v1284_v10, %v1412_v12  ;;  %vm1349_vm2 = vcmp.gt.f32.partialorder %v1285_v50, 0.0  ;;  %v1413_v21 = vmul.f32 0.2, %v1285_v50 }
 0x227   : > { %1539 = vst [vmem:[%s3354_s4 + $0x80] sm:$0xff] %v1475_v54  ;;  %vm1350_vm3 = vcmp.gt.f32.partialorder %v1286_v18, 0.0  ;;  %1540 = vst [vmem:[%s3354_s4 + $0x88] sm:$0xff] %v1476_v31  ;;  %v1414_v39 = vmul.f32 0.2, %v1286_v18  ;;  %vm1351_vm4 = vcmp.gt.f32.partialorder %v1287_v52, 0.0  ;;  %v1288_v58 = vadd.f32 %v2819_v13, %v1217_v44 }
 0x228   : > { %v1415_v22 = vmul.f32 0.2, %v1287_v52  ;;  %v1477_v29 = vsel %vm1349_vm2, %v1285_v50, %v1413_v21  ;;  %v1218_v9 = vmul.f32 %v2808_v57, %v3507_v62  ;;  %v3508_v48 = vsub.f32 %v2187_v20, %v2687_v40 }
 0x229   : > { %v3509_v56 = vsub.f32 %v2199_v26, %v2687_v40  ;;  %1541 = vst [vmem:[%s3354_s4 + $0x90] sm:$0xff] %v1477_v29  ;;  %v1478_v35 = vsel %vm1350_vm3, %v1286_v18, %v1414_v39  ;;  %vm1352_vm5 = vcmp.gt.f32.partialorder %v1288_v58, 0.0  ;;  %v1416_v16 = vmul.f32 0.2, %v1288_v58 }
 0x22a   : > { %v1219_v1 = vmul.f32 %v2808_v57, %v3508_v48  ;;  %v1479_v60 = vsel %vm1351_vm4, %v1287_v52, %v1415_v22  ;;  %1542 = vst [vmem:[%s3354_s4 + $0x98] sm:$0xff] %v1478_v35  ;;  %v1289_v20 = vadd.f32 %v2819_v13, %v1218_v9  ;;  %v3510_v2 = vsub.f32 %v2207_v30, %v2687_v40 }
 0x22b   : > { %v1220_v4 = vmul.f32 %v2808_v57, %v3509_v56  ;;  %1543 = vst [vmem:[%s3354_s4 + $0xa0] sm:$0xff] %v1479_v60  ;;  %v1480_v46 = vsel %vm1352_vm5, %v1288_v58, %v1416_v16  ;;  %v3511_v27 = vsub.f32 %v2195_v24, %v2687_v40  ;;  %v3512_v61 = vsub.f32 %v2203_v28, %v2687_v40 }
 0x22c   : > { %v1290_v26 = vadd.f32 %v2819_v13, %v1219_v1  ;;  %v1221_v14 = vmul.f32 %v2808_v57, %v3510_v2  ;;  %v3513_v6 = vsub.f32 %v2215_v34, %v2687_v40  ;;  %1544 = vst [vmem:[%s3354_s4 + $0xa8] sm:$0xff] %v1480_v46  ;;  %vm1353_vm6 = vcmp.gt.f32.partialorder %v1289_v20, 0.0 }
 0x22d   : > { %v1291_v10 = vadd.f32 %v2819_v13, %v1220_v4  ;;  %v1222_v17 = vmul.f32 %v2808_v57, %v3511_v27  ;;  %v1223_v19 = vmul.f32 %v2808_v57, %v3512_v61  ;;  %v1417_v30 = vmul.f32 0.2, %v1289_v20 }
 0x22e   : > { %v1224_v8 = vmul.f32 %v2808_v57, %v3513_v6  ;;  %vm1354_vm7 = vcmp.gt.f32.partialorder %v1290_v26, 0.0  ;;  %v1418_v24 = vmul.f32 0.2, %v1290_v26  ;;  %v1292_v12 = vadd.f32 %v2819_v13, %v1221_v14 }
 0x22f   : > { %vm1355_vm8 = vcmp.gt.f32.partialorder %v1291_v10, 0.0  ;;  %v1419_v23 = vmul.f32 0.2, %v1291_v10  ;;  %v1293_v28 = vadd.f32 %v2819_v13, %v1222_v17  ;;  %v1481_v50 = vsel %vm1353_vm6, %v1289_v20, %v1417_v30 }
 0x230   : > { %v1482_v18 = vsel %vm1354_vm7, %v1290_v26, %v1418_v24  ;;  %v1294_v34 = vadd.f32 %v2819_v13, %v1223_v19  ;;  %v1295_v5 = vadd.f32 %v2819_v13, %v1224_v8  ;;  %1545 = vst [vmem:[%s3354_s4 + $0xb0] sm:$0xff] %v1481_v50  ;;  %vm1356_vm9 = vcmp.gt.f32.partialorder %v1292_v12, 0.0 }
 0x231   : > { %1546 = vst [vmem:[%s3354_s4 + $0xb8] sm:$0xff] %v1482_v18  ;;  %v1483_v54 = vsel %vm1355_vm8, %v1291_v10, %v1419_v23  ;;  %v1420_v52 = vmul.f32 0.2, %v1292_v12  ;;  %vm1357_vm10 = vcmp.gt.f32.partialorder %v1293_v28, 0.0  ;;  %v1421_v0 = vmul.f32 0.2, %v1293_v28 }
 0x232   : > { %1547 = vst [vmem:[%s3354_s4 + $0xc0] sm:$0xff] %v1483_v54  ;;  %vm1358_vm11 = vcmp.gt.f32.partialorder %v1294_v34, 0.0  ;;  %v1422_v44 = vmul.f32 0.2, %v1294_v34  ;;  %vm1359_vm12 = vcmp.gt.f32.partialorder %v1295_v5, 0.0  ;;  %v3514_v39 = vsub.f32 %v2223_v38, %v2687_v40 }
 0x233   : > { %v1484_v31 = vsel %vm1356_vm9, %v1292_v12, %v1420_v52  ;;  %v1423_v21 = vmul.f32 0.2, %v1295_v5  ;;  %v3515_v58 = vsub.f32 %v2211_v32, %v2687_v40  ;;  %v1485_v62 = vsel %vm1357_vm10, %v1293_v28, %v1421_v0 }
 0x234   : > { %v1225_v22 = vmul.f32 %v2808_v57, %v3514_v39  ;;  %1548 = vst [vmem:[%s3354_s4 + $0xc8] sm:$0xff] %v1484_v31  ;;  %v1486_v9 = vsel %vm1358_vm11, %v1294_v34, %v1422_v44  ;;  %v3516_v48 = vsub.f32 %v2219_v36, %v2687_v40  ;;  %v3517_v38 = vsub.f32 %v2105_v43, %v2687_v40 }
 0x235   : > { %v1226_v29 = vmul.f32 %v2808_v57, %v3515_v58  ;;  %1549 = vst [vmem:[%s3354_s4 + $0xd0] sm:$0xff] %v1485_v62  ;;  %1550 = vst [vmem:[%s3354_s4 + $0xd8] sm:$0xff] %v1486_v9  ;;  %v1487_v32 = vsel %vm1359_vm12, %v1295_v5, %v1423_v21  ;;  %v3518_v35 = vsub.f32 %v2113_v47, %v2687_v40 }
 0x236   : > { %v1227_v1 = vmul.f32 %v2808_v57, %v3516_v48  ;;  %v1228_v56 = vmul.f32 %v2808_v57, %v3517_v38  ;;  %v1296_v4 = vadd.f32 %v2819_v13, %v1225_v22  ;;  %1551 = vst [vmem:[%s3354_s4 + $0xe0] sm:$0xff] %v1487_v32  ;;  %v3519_v20 = vsub.f32 %v2101_v41, %v2687_v40 }
 0x237   : > { %v1297_v36 = vadd.f32 %v2819_v13, %v1226_v29  ;;  %v1229_v43 = vmul.f32 %v2808_v57, %v3518_v35  ;;  %v3520_v10 = vsub.f32 %v2109_v45, %v2687_v40  ;;  %v3521_v30 = vsub.f32 %v2121_v51, %v2687_v40 }
 0x238   : > { %v1298_v60 = vadd.f32 %v2819_v13, %v1227_v1  ;;  %v1299_v16 = vadd.f32 %v2819_v13, %v1228_v56  ;;  %v1230_v26 = vmul.f32 %v2808_v57, %v3519_v20  ;;  %vm1360_vm13 = vcmp.gt.f32.partialorder %v1296_v4, 0.0 }
 0x239   : > { %v1231_v47 = vmul.f32 %v2808_v57, %v3520_v10  ;;  %v1424_v2 = vmul.f32 0.2, %v1296_v4  ;;  %vm1361_vm14 = vcmp.gt.f32.partialorder %v1297_v36, 0.0  ;;  %v1425_v14 = vmul.f32 0.2, %v1297_v36 }
 0x23a   : > { %vm1362_vm15 = vcmp.gt.f32.partialorder %v1298_v60, 0.0  ;;  %v1426_v46 = vmul.f32 0.2, %v1298_v60  ;;  %vm1363_vm0 = vcmp.gt.f32.partialorder %v1299_v16, 0.0  ;;  %v1427_v27 = vmul.f32 0.2, %v1299_v16 }
 0x23b   : > { %v1488_v17 = vsel %vm1360_vm13, %v1296_v4, %v1424_v2  ;;  %v1489_v61 = vsel %vm1361_vm14, %v1297_v36, %v1425_v14  ;;  %v1300_v19 = vadd.f32 %v2819_v13, %v1229_v43  ;;  %v1301_v41 = vadd.f32 %v2819_v13, %v1230_v26  ;;  %v3530_v14 = vld [vmem:[#allocation13_spill] sm:$0xff] }
 0x23c   : > { %1552 = vst [vmem:[%s3354_s4 + $0xe8] sm:$0xff] %v1488_v17  ;;  %1553 = vst [vmem:[%s3354_s4 + $0xf0] sm:$0xff] %v1489_v61  ;;  %v1490_v45 = vsel %vm1362_vm15, %v1298_v60, %v1426_v46  ;;  %v1491_v6 = vsel %vm1363_vm0, %v1299_v16, %v1427_v27  ;;  %v1302_v8 = vadd.f32 %v2819_v13, %v1231_v47  ;;  %v3532_v17 = vld [vmem:[#allocation10_spill] sm:$0xff] }
 0x23d   : > { %v1232_v24 = vmul.f32 %v2808_v57, %v3521_v30  ;;  %1554 = vst [vmem:[%s3354_s4 + $0xf8] sm:$0xff] %v1490_v45  ;;  %1555 = vst [vmem:[%s3354_s4 + $0x100] sm:$0xff] %v1491_v6  ;;  %vm1364_vm1 = vcmp.gt.f32.partialorder %v1300_v19, 0.0  ;;  %v1428_v23 = vmul.f32 0.2, %v1300_v19  ;;  %vm1365_vm2 = vcmp.gt.f32.partialorder %v1301_v41, 0.0 }
 0x23e   : > { %v1429_v12 = vmul.f32 0.2, %v1301_v41  ;;  %vm1366_vm3 = vcmp.gt.f32.partialorder %v1302_v8, 0.0  ;;  %v1430_v28 = vmul.f32 0.2, %v1302_v8  ;;  %v3522_v51 = vsub.f32 %v2129_v55, %v2687_v40 }
 0x23f   : > { %v1303_v50 = vadd.f32 %v2819_v13, %v1232_v24  ;;  %v1492_v34 = vsel %vm1364_vm1, %v1300_v19, %v1428_v23  ;;  %v3523_v54 = vsub.f32 %v2117_v49, %v2687_v40  ;;  %v3524_v0 = vsub.f32 %v2125_v53, %v2687_v40  ;;  %v3534_v24 = vld [vmem:[#allocation12_spill] sm:$0xff] }
 0x240   : > { %v1233_v18 = vmul.f32 %v2808_v57, %v3522_v51  ;;  %v1493_v5 = vsel %vm1365_vm2, %v1301_v41, %v1429_v12  ;;  %1556 = vst [vmem:[%s3354_s4 + $0x108] sm:$0xff] %v1492_v34  ;;  %v1494_v55 = vsel %vm1366_vm3, %v1302_v8, %v1430_v28  ;;  %v3525_v39 = vsub.f32 %v2137_v59, %v2687_v40 }
 0x241   : > { %v1234_v52 = vmul.f32 %v2808_v57, %v3523_v54  ;;  %v1235_v44 = vmul.f32 %v2808_v57, %v3524_v0  ;;  %1557 = vst [vmem:[%s3354_s4 + $0x110] sm:$0xff] %v1493_v5  ;;  %vm1367_vm4 = vcmp.gt.f32.partialorder %v1303_v50, 0.0  ;;  %v1431_v31 = vmul.f32 0.2, %v1303_v50  ;;  %1558 = vst [vmem:[%s3354_s4 + $0x118] sm:$0xff] %v1494_v55 }
 0x242   : > { %v1304_v49 = vadd.f32 %v2819_v13, %v1233_v18  ;;  %v1236_v22 = vmul.f32 %v2808_v57, %v3525_v39  ;;  %v3526_v58 = vsub.f32 %v3461_v63, %v2687_v40  ;;  %v3527_v48 = vsub.f32 %v3462_v42, %v2687_v40 }
 0x243   : > { %v1305_v53 = vadd.f32 %v2819_v13, %v1234_v52  ;;  %v1306_v21 = vadd.f32 %v2819_v13, %v1235_v44  ;;  %v1495_v62 = vsel %vm1367_vm4, %v1303_v50, %v1431_v31  ;;  %v3528_v35 = vsub.f32 %v3463_v7, %v2687_v40  ;;  %v3536_v50 = vld [vmem:[#allocation15_spill] sm:$0xff] }
 0x244   : > { %v1237_v29 = vmul.f32 %v2808_v57, %v3526_v58  ;;  %vm1368_vm5 = vcmp.gt.f32.partialorder %v1304_v49, 0.0  ;;  %v1432_v9 = vmul.f32 0.2, %v1304_v49  ;;  %v1238_v1 = vmul.f32 %v2808_v57, %v3527_v48  ;;  %1559 = vst [vmem:[%s3354_s4 + $0x120] sm:$0xff] %v1495_v62  ;;  %v3542_v58 = vld [vmem:[#allocation19_spill] sm:$0xff] }
 0x245   : > { %vm1369_vm6 = vcmp.gt.f32.partialorder %v1305_v53, 0.0  ;;  %v1433_v59 = vmul.f32 0.2, %v1305_v53  ;;  %vm1370_vm7 = vcmp.gt.f32.partialorder %v1306_v21, 0.0  ;;  %v1434_v38 = vmul.f32 0.2, %v1306_v21 }
 0x246   : > { %v1496_v56 = vsel %vm1368_vm5, %v1304_v49, %v1432_v9  ;;  %v1307_v63 = vadd.f32 %v2819_v13, %v1236_v22  ;;  %v1308_v32 = vadd.f32 %v2819_v13, %v1237_v29  ;;  %v1309_v4 = vadd.f32 %v2819_v13, %v1238_v1 }
 0x247   : > { %1560 = vst [vmem:[%s3354_s4 + $0x128] sm:$0xff] %v1496_v56  ;;  %v1497_v42 = vsel %vm1369_vm6, %v1305_v53, %v1433_v59  ;;  %v1498_v36 = vsel %vm1370_vm7, %v1306_v21, %v1434_v38  ;;  %v1239_v43 = vmul.f32 %v2808_v57, %v3528_v35  ;;  %v3529_v60 = vsub.f32 %v3464_v37, %v2687_v40  ;;  %v3540_v21 = vld [vmem:[#allocation16_spill] sm:$0xff] }
 0x248   : > { %1561 = vst [vmem:[%s3354_s4 + $0x130] sm:$0xff] %v1497_v42  ;;  %1562 = vst [vmem:[%s3354_s4 + $0x138] sm:$0xff] %v1498_v36  ;;  %vm1371_vm8 = vcmp.gt.f32.partialorder %v1307_v63, 0.0  ;;  %v1435_v20 = vmul.f32 0.2, %v1307_v63  ;;  %vm1372_vm9 = vcmp.gt.f32.partialorder %v1308_v32, 0.0  ;;  %v3531_v46 = vsub.f32 %v3530_v14, %v2687_v40 }
 0x249   : > { %v1240_v16 = vmul.f32 %v2808_v57, %v3529_v60  ;;  %v1436_v26 = vmul.f32 0.2, %v1308_v32  ;;  %vm1373_vm10 = vcmp.gt.f32.partialorder %v1309_v4, 0.0  ;;  %v1437_v7 = vmul.f32 0.2, %v1309_v4  ;;  %v3544_v36 = vld [vmem:[#allocation21_spill] sm:$0xff] }
 0x24a   : > { %v1310_v10 = vadd.f32 %v2819_v13, %v1239_v43  ;;  %v1499_v47 = vsel %vm1371_vm8, %v1307_v63, %v1435_v20  ;;  %v1241_v27 = vmul.f32 %v2808_v57, %v3531_v46  ;;  %v3533_v61 = vsub.f32 %v3532_v17, %v2687_v40  ;;  %v3548_v14 = vld [vmem:[#allocation23_spill] sm:$0xff]  ;;  %v3550_v17 = vld [vmem:[#allocation25_spill] sm:$0xff] }
 0x24b   : > { %v1311_v37 = vadd.f32 %v2819_v13, %v1240_v16  ;;  %v1500_v2 = vsel %vm1372_vm9, %v1308_v32, %v1436_v26  ;;  %1563 = vst [vmem:[%s3354_s4 + $0x140] sm:$0xff] %v1499_v47  ;;  %v1501_v41 = vsel %vm1373_vm10, %v1309_v4, %v1437_v7  ;;  %v3535_v23 = vsub.f32 %v3534_v24, %v2687_v40 }
 0x24c   : > { %v1242_v19 = vmul.f32 %v2808_v57, %v3533_v61  ;;  %1564 = vst [vmem:[%s3354_s4 + $0x148] sm:$0xff] %v1500_v2  ;;  %vm1374_vm11 = vcmp.gt.f32.partialorder %v1310_v10, 0.0  ;;  %v1438_v45 = vmul.f32 0.2, %v1310_v10  ;;  %1565 = vst [vmem:[%s3354_s4 + $0x150] sm:$0xff] %v1501_v41  ;;  %v1312_v8 = vadd.f32 %v2819_v13, %v1241_v27  ;;  %v3552_v41 = vld [vmem:[#allocation22_spill] sm:$0xff] }
 0x24d   : > { %vm1375_vm12 = vcmp.gt.f32.partialorder %v1311_v37, 0.0  ;;  %v1439_v6 = vmul.f32 0.2, %v1311_v37  ;;  %v1243_v12 = vmul.f32 %v2808_v57, %v3535_v23  ;;  %v3537_v51 = vsub.f32 %v3536_v50, %v2687_v40 }
 0x24e   : > { %v1313_v30 = vadd.f32 %v2819_v13, %v1242_v19  ;;  %v1502_v28 = vsel %vm1374_vm11, %v1310_v10, %v1438_v45  ;;  %v3538_v34 = vsub.f32 %v3469_v3, %v2687_v40  ;;  %v3539_v54 = vsub.f32 %v3470_v11, %v2687_v40 }
 0x24f   : > { %v1244_v18 = vmul.f32 %v2808_v57, %v3537_v51  ;;  %1566 = vst [vmem:[%s3354_s4 + $0x158] sm:$0xff] %v1502_v28  ;;  %v1503_v0 = vsel %vm1375_vm12, %v1311_v37, %v1439_v6  ;;  %vm1376_vm13 = vcmp.gt.f32.partialorder %v1312_v8, 0.0  ;;  %v1440_v44 = vmul.f32 0.2, %v1312_v8  ;;  %v3554_v51 = vld [vmem:[#allocation24_spill] sm:$0xff] }
 0x250   : > { %v1245_v5 = vmul.f32 %v2808_v57, %v3538_v34  ;;  %v1246_v52 = vmul.f32 %v2808_v57, %v3539_v54  ;;  %vm1377_vm14 = vcmp.gt.f32.partialorder %v1313_v30, 0.0  ;;  %1567 = vst [vmem:[%s3354_s4 + $0x160] sm:$0xff] %v1503_v0  ;;  %v1441_v3 = vmul.f32 0.2, %v1313_v30 }
 0x251   : > { %v1314_v55 = vadd.f32 %v2819_v13, %v1243_v12  ;;  %v1315_v31 = vadd.f32 %v2819_v13, %v1244_v18  ;;  %v1504_v49 = vsel %vm1376_vm13, %v1312_v8, %v1440_v44  ;;  %v3541_v39 = vsub.f32 %v3540_v21, %v2687_v40  ;;  %v3557_v21 = vld [vmem:[#allocation29_spill] sm:$0xff] }
 0x252   : > { %v1316_v11 = vadd.f32 %v2819_v13, %v1245_v5  ;;  %v1317_v53 = vadd.f32 %v2819_v13, %v1246_v52  ;;  %v3543_v29 = vsub.f32 %v3542_v58, %v2687_v40  ;;  %1568 = vst [vmem:[%s3354_s4 + $0x168] sm:$0xff] %v1504_v49  ;;  %v1505_v9 = vsel %vm1377_vm14, %v1313_v30, %v1441_v3  ;;  %v3559_v58 = vld [vmem:[#allocation26_spill] sm:$0xff] }
 0x253   : > { %v1247_v22 = vmul.f32 %v2808_v57, %v3541_v39  ;;  %vm1378_vm15 = vcmp.gt.f32.partialorder %v1314_v55, 0.0  ;;  %v1442_v48 = vmul.f32 0.2, %v1314_v55  ;;  %vm1379_vm0 = vcmp.gt.f32.partialorder %v1315_v31, 0.0  ;;  %1569 = vst [vmem:[%s3354_s4 + $0x170] sm:$0xff] %v1505_v9 }
 0x254   : > { %v1248_v62 = vmul.f32 %v2808_v57, %v3543_v29  ;;  %v1443_v1 = vmul.f32 0.2, %v1315_v31  ;;  %vm1380_vm1 = vcmp.gt.f32.partialorder %v1316_v11, 0.0  ;;  %v1444_v59 = vmul.f32 0.2, %v1316_v11 }
 0x255   : > { %vm1381_vm2 = vcmp.gt.f32.partialorder %v1317_v53, 0.0  ;;  %v1506_v38 = vsel %vm1378_vm15, %v1314_v55, %v1442_v48  ;;  %v1445_v56 = vmul.f32 0.2, %v1317_v53  ;;  %v1318_v63 = vadd.f32 %v2819_v13, %v1247_v22 }
 0x256   : > { %v1319_v32 = vadd.f32 %v2819_v13, %v1248_v62  ;;  %1570 = vst [vmem:[%s3354_s4 + $0x178] sm:$0xff] %v1506_v38  ;;  %v1507_v4 = vsel %vm1379_vm0, %v1315_v31, %v1443_v1  ;;  %v1508_v42 = vsel %vm1380_vm1, %v1316_v11, %v1444_v59  ;;  %v3545_v35 = vsub.f32 %v3544_v36, %v2687_v40 }
 0x257   : > { %v3546_v60 = vsub.f32 %v3474_v33, %v2687_v40  ;;  %1571 = vst [vmem:[%s3354_s4 + $0x180] sm:$0xff] %v1507_v4  ;;  %1572 = vst [vmem:[%s3354_s4 + $0x188] sm:$0xff] %v1508_v42  ;;  %v1509_v20 = vsel %vm1381_vm2, %v1317_v53, %v1445_v56  ;;  %vm1382_vm3 = vcmp.gt.f32.partialorder %v1318_v63, 0.0  ;;  %v1446_v26 = vmul.f32 0.2, %v1318_v63  ;;  %v3561_v56 = vld [vmem:[#allocation28_spill] sm:$0xff] }
 0x258   : > { %v1249_v43 = vmul.f32 %v2808_v57, %v3545_v35  ;;  %vm1383_vm4 = vcmp.gt.f32.partialorder %v1319_v32, 0.0  ;;  %1573 = vst [vmem:[%s3354_s4 + $0x190] sm:$0xff] %v1509_v20  ;;  %v1447_v7 = vmul.f32 0.2, %v1319_v32  ;;  %v3547_v37 = vsub.f32 %v3475_v15, %v2687_v40 }
 0x259   : > { %v1250_v16 = vmul.f32 %v2808_v57, %v3546_v60  ;;  %v1510_v2 = vsel %vm1382_vm3, %v1318_v63, %v1446_v26  ;;  %v3549_v46 = vsub.f32 %v3548_v14, %v2687_v40  ;;  %v3551_v61 = vsub.f32 %v3550_v17, %v2687_v40 }
 0x25a   : > { %v1320_v33 = vadd.f32 %v2819_v13, %v1249_v43  ;;  %v1251_v47 = vmul.f32 %v2808_v57, %v3547_v37  ;;  %v3553_v45 = vsub.f32 %v3552_v41, %v2687_v40  ;;  %1574 = vst [vmem:[%s3354_s4 + $0x198] sm:$0xff] %v1510_v2  ;;  %v1511_v15 = vsel %vm1383_vm4, %v1319_v32, %v1447_v7 }
 0x25b   : > { %v1321_v10 = vadd.f32 %v2819_v13, %v1250_v16  ;;  %v1252_v27 = vmul.f32 %v2808_v57, %v3549_v46  ;;  %v1253_v19 = vmul.f32 %v2808_v57, %v3551_v61  ;;  %1575 = vst [vmem:[%s3354_s4 + $0x1a0] sm:$0xff] %v1511_v15  ;;  %v3555_v18 = vsub.f32 %v3554_v51, %v2687_v40 }
 0x25c   : > { %v1254_v6 = vmul.f32 %v2808_v57, %v3553_v45  ;;  %vm1384_vm5 = vcmp.gt.f32.partialorder %v1320_v33, 0.0  ;;  %v1448_v8 = vmul.f32 0.2, %v1320_v33  ;;  %v1322_v24 = vadd.f32 %v2819_v13, %v1251_v47 }
 0x25d   : > { %vm1385_vm6 = vcmp.gt.f32.partialorder %v1321_v10, 0.0  ;;  %v1449_v30 = vmul.f32 0.2, %v1321_v10  ;;  %v1323_v23 = vadd.f32 %v2819_v13, %v1252_v27  ;;  %v1324_v12 = vadd.f32 %v2819_v13, %v1253_v19 }
 0x25e   : > { %v1512_v28 = vsel %vm1384_vm5, %v1320_v33, %v1448_v8  ;;  %v1325_v50 = vadd.f32 %v2819_v13, %v1254_v6  ;;  %v1255_v34 = vmul.f32 %v2808_v57, %v3555_v18  ;;  %v3556_v5 = vsub.f32 %v3481_v25, %v2687_v40 }
 0x25f   : > { %1576 = vst [vmem:[%s3354_s4 + $0x1a8] sm:$0xff] %v1512_v28  ;;  %v1513_v52 = vsel %vm1385_vm6, %v1321_v10, %v1449_v30  ;;  %vm1386_vm7 = vcmp.gt.f32.partialorder %v1322_v24, 0.0  ;;  %v1450_v0 = vmul.f32 0.2, %v1322_v24  ;;  %vm1387_vm8 = vcmp.gt.f32.partialorder %v1323_v23, 0.0 }
 0x260   : > { %v1256_v54 = vmul.f32 %v2808_v57, %v3556_v5  ;;  %1577 = vst [vmem:[%s3354_s4 + $0x1b0] sm:$0xff] %v1513_v52  ;;  %v1451_v44 = vmul.f32 0.2, %v1323_v23  ;;  %vm1388_vm9 = vcmp.gt.f32.partialorder %v1324_v12, 0.0  ;;  %v1452_v3 = vmul.f32 0.2, %v1324_v12 }
 0x261   : > { %vm1389_vm10 = vcmp.gt.f32.partialorder %v1325_v50, 0.0  ;;  %v1514_v55 = vsel %vm1386_vm7, %v1322_v24, %v1450_v0  ;;  %v1453_v25 = vmul.f32 0.2, %v1325_v50  ;;  %v1326_v31 = vadd.f32 %v2819_v13, %v1255_v34 }
 0x262   : > { %v1327_v11 = vadd.f32 %v2819_v13, %v1256_v54  ;;  %1578 = vst [vmem:[%s3354_s4 + $0x1b8] sm:$0xff] %v1514_v55  ;;  %v1515_v49 = vsel %vm1387_vm8, %v1323_v23, %v1451_v44  ;;  %v1516_v53 = vsel %vm1388_vm9, %v1324_v12, %v1452_v3  ;;  %v3558_v39 = vsub.f32 %v3557_v21, %v2687_v40 }
 0x263   : > { %v3560_v29 = vsub.f32 %v3559_v58, %v2687_v40  ;;  %1579 = vst [vmem:[%s3354_s4 + $0x1c0] sm:$0xff] %v1515_v49  ;;  %1580 = vst [vmem:[%s3354_s4 + $0x1c8] sm:$0xff] %v1516_v53  ;;  %v1517_v9 = vsel %vm1389_vm10, %v1325_v50, %v1453_v25  ;;  %vm1390_vm11 = vcmp.gt.f32.partialorder %v1326_v31, 0.0  ;;  %v1454_v48 = vmul.f32 0.2, %v1326_v31 }
 0x264   : > { %v1257_v22 = vmul.f32 %v2808_v57, %v3558_v39  ;;  %vm1391_vm12 = vcmp.gt.f32.partialorder %v1327_v11, 0.0  ;;  %1581 = vst [vmem:[%s3354_s4 + $0x1d0] sm:$0xff] %v1517_v9  ;;  %v1455_v1 = vmul.f32 0.2, %v1327_v11  ;;  %v3562_v63 = vsub.f32 %v3561_v56, %v2687_v40 }
 0x265   : > { %v1258_v62 = vmul.f32 %v2808_v57, %v3560_v29  ;;  %v1518_v4 = vsel %vm1390_vm11, %v1326_v31, %v1454_v48 }
 0x266   : > { %v1328_v59 = vadd.f32 %v2819_v13, %v1257_v22  ;;  %v1259_v32 = vmul.f32 %v2808_v57, %v3562_v63  ;;  %1582 = vst [vmem:[%s3354_s4 + $0x1d8] sm:$0xff] %v1518_v4  ;;  %v1519_v42 = vsel %vm1391_vm12, %v1327_v11, %v1455_v1 }
 0x267   : > { %v1329_v38 = vadd.f32 %v2819_v13, %v1258_v62  ;;  %1583 = vst [vmem:[%s3354_s4 + $0x1e0] sm:$0xff] %v1519_v42 }
 0x268   : > { %vm1392_vm13 = vcmp.gt.f32.partialorder %v1328_v59, 0.0  ;;  %v1456_v36 = vmul.f32 0.2, %v1328_v59  ;;  %v1330_v43 = vadd.f32 %v2819_v13, %v1259_v32 }
 0x269   : > { %vm1393_vm14 = vcmp.gt.f32.partialorder %v1329_v38, 0.0  ;;  %v1457_v35 = vmul.f32 0.2, %v1329_v38 }
 0x26a   : > { %v1520_v60 = vsel %vm1392_vm13, %v1328_v59, %v1456_v36  ;;  %vm1394_vm15 = vcmp.gt.f32.partialorder %v1330_v43, 0.0  ;;  %v1458_v57 = vmul.f32 0.2, %v1330_v43 }
 0x26b   : > { %1584 = vst [vmem:[%s3354_s4 + $0x1e8] sm:$0xff] %v1520_v60  ;;  %v1521_v40 = vsel %vm1393_vm14, %v1329_v38, %v1457_v35 }
 0x26c   : > { %1585 = vst [vmem:[%s3354_s4 + $0x1f0] sm:$0xff] %v1521_v40  ;;  %v1522_v16 = vsel %vm1394_vm15, %v1330_v43, %v1458_v57 }
 0x26d   : > { %1586 = vst [vmem:[%s3354_s4 + $0x1f8] sm:$0xff] %v1522_v16 }
 0x26e PF: > { %s14_s17 = sadd.s32 1, %s1930_s17   ;;  %s3563_s15 = smov %s1926_s16 }
 0x26f   : > { %p11_p7 = scmp.ge.s32.totalorder %s14_s17, 4   ;;  %s3564_s16 = smov %s3566_s18 }
 0x271   :  { %13 = sbr.rel (!%p11_p7) target bundleno = 2 (0x2), region = 78 }

// kernel: discriminator_forward.7
= control target key start
LH: loop header
LB: loop body
LE: loop exit
PB: predicated region body
PF: predicated region fallthrough
CT: control target
= control target key end

     0   :  { %s1081_s15 = smov 0   ;;  %s1083_s16 = smov 0   ;;  %s1482_s0 = inlined_call_operand.vmem [shape: bf16[128,256], index: 0, kind: input, shape index: {}]   ;;  %s1483_s1 = inlined_call_operand.vmem [shape: bf16[256,128], index: 1, kind: input, shape index: {}]   ;;  %s1484_s2 = inlined_call_operand.vmem [shape: f32[1,128], index: 2, kind: input, shape index: {}]   ;;  %s1485_s3 = inlined_call_operand.vmem [shape: f32[1,128], index: 3, kind: input, shape index: {}]   ;;  %s1486_s4 = inlined_call_operand.vmem [shape: f32[128,128], index: 4, kind: output, shape index: {}]  }
   0x1   :  { %s1085_s17 = smov 0  }
   0x2 LB: > { %s26_s18 = sadd.s32 1, %s1049_s16  ;;  %p842_p0 = scmp.ge.s32.totalorder %s1053_s17, 1  ;;  %s1053_s17 = sphi %s1085_s17, %s14_s17   ;;  %s1049_s16 = sphi %s1083_s16, %s1488_s16   ;;  %s1045_s15 = sphi %s1081_s15, %s1487_s15  }
   0x3   : > { %p28_p1 = scmp.ge.s32.totalorder %s26_s18, 2  ;;  %p176_p2 = scmp.lt.s32.totalorder %s1053_s17, 3 }
   0x5   : > { %s1490_s18 = smov (%p28_p1, %s26_s18), 0  ;;  %p177_p3 = pnand %p842_p0, %p176_p2 }
   0x6   : > { %p538_p4 = scmp.eq.s32.totalorder (!%p177_p3), %s1045_s15, 0 }
   0x7   : > { %180 = sbr.rel (%p177_p3) target bundleno = 382 (0x17e), region = 36 }
   0xc   : > { %v989_v0 = vld [vmem:[%s1483_s1 + $0x78] sm:$0xff]   ;;  %v991_v2 = vld [vmem:[%s1483_s1 + $0x70] sm:$0xff]   ;;  %v993_v4 = vld [vmem:[%s1483_s1 + $0x68] sm:$0xff]  }
   0xd   : > { %v990_v1 = vld [vmem:[%s1483_s1 + $0x38] sm:$0xff]   ;;  %884 = vmatprep.subr.bf16.mxu0 %v989_v0  ;;  %948 = vmatprep.subr.bf16.mxu1 %v989_v0  ;;  %v992_v3 = vld [vmem:[%s1483_s1 + $0x30] sm:$0xff]   ;;  %v994_v5 = vld [vmem:[%s1483_s1 + $0x28] sm:$0xff]  }
   0xe   : > { %885 = vmatpush3.bf16.msra.mxu0 %v990_v1  ;;  %956 = vmatpush3.bf16.msra.mxu1 %v990_v1  ;;  %v995_v6 = vld [vmem:[%s1483_s1 + $0x60] sm:$0xff]   ;;  %v997_v8 = vld [vmem:[%s1483_s1 + $0x58] sm:$0xff]   ;;  %v999_v10 = vld [vmem:[%s1483_s1 + $0x50] sm:$0xff]  }
   0xf   : > { %886 = vmatprep.subr.bf16.mxu0 %v991_v2  ;;  %949 = vmatprep.subr.bf16.mxu1 %v991_v2  ;;  %v996_v7 = vld [vmem:[%s1483_s1 + $0x20] sm:$0xff]   ;;  %v998_v9 = vld [vmem:[%s1483_s1 + $0x18] sm:$0xff]   ;;  %v1000_v13 = vld [vmem:[%s1483_s1 + $0x10] sm:$0xff]  }
  0x10   : > { %v1007_v11 = vld [vmem:[%s1482_s0 + $0x4] ss:$8 sps:$4 sm:$0xff]   ;;  %v1005_v18 = vld [vmem:[%s1482_s0] ss:$8 sps:$4 sm:$0xff]   ;;  %v1011_v20 = vld [vmem:[%s1482_s0 + $0x14] ss:$8 sps:$4 sm:$0xff]  }
  0x11   : > { %v1010_v12 = vld [vmem:[%s1482_s0 + $0x44] ss:$8 sps:$4 sm:$0xff]   ;;  %473 = vmatprep.mubr.bf16.mxu0 %v1007_v11  ;;  %v1008_v19 = vld [vmem:[%s1482_s0 + $0x40] ss:$8 sps:$4 sm:$0xff]   ;;  %v1013_v21 = vld [vmem:[%s1482_s0 + $0x54] ss:$8 sps:$4 sm:$0xff]  }
  0x12   : > { %887 = vmatpush3.bf16.msra.mxu0 %v992_v3  ;;  %957 = vmatpush3.bf16.msra.mxu1 %v992_v3  ;;  %v1001_v14 = vld [vmem:[%s1483_s1 + $0x48] sm:$0xff]   ;;  %v1003_v16 = vld [vmem:[%s1483_s1 + $0x40] sm:$0xff]   ;;  %v1015_v22 = vld [vmem:[%s1482_s0 + $0x10] ss:$8 sps:$4 sm:$0xff]  }
  0x13   : > { %888 = vmatprep.subr.bf16.mxu0 %v993_v4  ;;  %950 = vmatprep.subr.bf16.mxu1 %v993_v4  ;;  %v1002_v15 = vld [vmem:[%s1483_s1 + $0x8] sm:$0xff]   ;;  %v1004_v17 = vld [vmem:[%s1483_s1] sm:$0xff]   ;;  %v1016_v23 = vld [vmem:[%s1482_s0 + $0x50] ss:$8 sps:$4 sm:$0xff]  }
  0x14   : > { %505 = vmatprep.mubr.bf16.mxu1 %v1010_v12  ;;  %v1017_v24 = vld [vmem:[%s1482_s0 + $0x24] ss:$8 sps:$4 sm:$0xff]   ;;  %v1021_v26 = vld [vmem:[%s1482_s0 + $0x20] ss:$8 sps:$4 sm:$0xff]   ;;  %v1023_v28 = vld [vmem:[%s1482_s0 + $0x34] ss:$8 sps:$4 sm:$0xff]  }
  0x15   : > { %v1019_v25 = vld [vmem:[%s1482_s0 + $0x64] ss:$8 sps:$4 sm:$0xff]   ;;  %v1022_v27 = vld [vmem:[%s1482_s0 + $0x60] ss:$8 sps:$4 sm:$0xff]   ;;  %v1025_v29 = vld [vmem:[%s1482_s0 + $0x74] ss:$8 sps:$4 sm:$0xff]  }
  0x16   : > { %889 = vmatpush3.bf16.msra.mxu0 %v994_v5  ;;  %958 = vmatpush3.bf16.msra.mxu1 %v994_v5  ;;  %v1027_v30 = vld [vmem:[%s1482_s0 + $0x30] ss:$8 sps:$4 sm:$0xff]  }
  0x17   : > { %890 = vmatprep.subr.bf16.mxu0 %v995_v6  ;;  %951 = vmatprep.subr.bf16.mxu1 %v995_v6  ;;  %v1028_v31 = vld [vmem:[%s1482_s0 + $0x70] ss:$8 sps:$4 sm:$0xff]  }
  0x1a   : > { %891 = vmatpush3.bf16.msra.mxu0 %v996_v7  ;;  %959 = vmatpush3.bf16.msra.mxu1 %v996_v7 }
  0x1b   : > { %892 = vmatprep.subr.bf16.mxu0 %v997_v8  ;;  %952 = vmatprep.subr.bf16.mxu1 %v997_v8 }
  0x1e   : > { %893 = vmatpush3.bf16.msra.mxu0 %v998_v9  ;;  %960 = vmatpush3.bf16.msra.mxu1 %v998_v9 }
  0x1f   : > { %894 = vmatprep.subr.bf16.mxu0 %v999_v10  ;;  %953 = vmatprep.subr.bf16.mxu1 %v999_v10 }
  0x22   : > { %895 = vmatpush3.bf16.msra.mxu0 %v1000_v13  ;;  %961 = vmatpush3.bf16.msra.mxu1 %v1000_v13 }
  0x23   : > { %896 = vmatprep.subr.bf16.mxu0 %v1001_v14  ;;  %954 = vmatprep.subr.bf16.mxu1 %v1001_v14 }
  0x26   : > { %897 = vmatpush3.bf16.msra.mxu0 %v1002_v15  ;;  %962 = vmatpush3.bf16.msra.mxu1 %v1002_v15 }
  0x27   : > { %898 = vmatprep.subr.bf16.mxu0 %v1003_v16  ;;  %955 = vmatprep.subr.bf16.mxu1 %v1003_v16  ;;  %v1055_v16 = vmov (%p538_p4), 0.0  }
  0x28   : > { %544 = vst [vmem:[#allocation2] sm:$0x1] (%p538_p4), %v1055_v16  ;;  %545 = vst [vmem:[#allocation3] sm:$0x1] (%p538_p4), %v1055_v16 }
  0x2a   : > { %899 = vmatpush3.bf16.msra.mxu0 %v1004_v17  ;;  %963 = vmatpush3.bf16.msra.mxu1 %v1004_v17 }
  0x2d   : > { %474 = vmatmul.mubr.bf16.vlgmr.msra.gmra.mxu0 %v1005_v18  ;;  %506 = vmatmul.mubr.bf16.vlgmr.msra.gmra.mxu1 %v1008_v19 }
  0x2e   : > { %481 = vmatprep.mubr.bf16.mxu0 %v1011_v20  ;;  %513 = vmatprep.mubr.bf16.mxu1 %v1013_v21 }
  0x35   : > { %482 = vmatmul.mubr.bf16.gmra.mxu0 %v1015_v22  ;;  %514 = vmatmul.mubr.bf16.gmra.mxu1 %v1016_v23 }
  0x36   : > { %489 = vmatprep.mubr.bf16.mxu0 %v1017_v24  ;;  %521 = vmatprep.mubr.bf16.mxu1 %v1019_v25 }
  0x3d   : > { %490 = vmatmul.mubr.bf16.gmra.mxu0 %v1021_v26  ;;  %522 = vmatmul.mubr.bf16.gmra.mxu1 %v1022_v27 }
  0x3e   : > { %497 = vmatprep.mubr.bf16.mxu0 %v1023_v28  ;;  %529 = vmatprep.mubr.bf16.mxu1 %v1025_v29 }
  0x45   : > { %498 = vmatmul.mubr.bf16.gmra.mxu0 %v1027_v30  ;;  %530 = vmatmul.mubr.bf16.gmra.mxu1 %v1028_v31 }
  0xed   : > { %v900_v32 = vpop.f32.mrf.mxu0  ;;  %v924_v33 = vpop.f32.mrf.mxu1 }
  0xef   : > { %v901_v34 = vpop.f32.mrf.mxu0  ;;  %v925_v35 = vpop.f32.mrf.mxu1 }
  0xf0   : > { %v1198_v36 = vadd.f32 %v901_v34, %v900_v32  ;;  %v1200_v37 = vadd.f32 %v925_v35, %v924_v33 }
  0xf1   : > { %v903_v38 = vpop.f32.mrf.mxu0  ;;  %v927_v39 = vpop.f32.mrf.mxu1 }
  0xf3   : > { %v904_v40 = vpop.f32.mrf.mxu0  ;;  %v928_v41 = vpop.f32.mrf.mxu1 }
  0xf4   : > { %v1202_v42 = vadd.f32 %v904_v40, %v903_v38  ;;  %v1204_v43 = vadd.f32 %v928_v41, %v927_v39 }
  0xf5   : > { %v906_v44 = vpop.f32.mrf.mxu0  ;;  %v930_v45 = vpop.f32.mrf.mxu1 }
  0xf7   : > { %v907_v46 = vpop.f32.mrf.mxu0  ;;  %v931_v47 = vpop.f32.mrf.mxu1 }
  0xf8   : > { %v1206_v48 = vadd.f32 %v907_v46, %v906_v44  ;;  %v1208_v49 = vadd.f32 %v931_v47, %v930_v45 }
  0xf9   : > { %v909_v50 = vpop.f32.mrf.mxu0  ;;  %v933_v51 = vpop.f32.mrf.mxu1 }
  0xfb   : > { %v910_v52 = vpop.f32.mrf.mxu0  ;;  %v934_v53 = vpop.f32.mrf.mxu1 }
  0xfc   : > { %v1210_v54 = vadd.f32 %v910_v52, %v909_v50  ;;  %v1212_v55 = vadd.f32 %v934_v53, %v933_v51 }
  0xfd   : > { %v912_v56 = vpop.f32.mrf.mxu0  ;;  %v936_v57 = vpop.f32.mrf.mxu1 }
  0xff   : > { %v913_v58 = vpop.f32.mrf.mxu0  ;;  %v937_v59 = vpop.f32.mrf.mxu1 }
 0x100   : > { %v1214_v60 = vadd.f32 %v913_v58, %v912_v56  ;;  %v1216_v61 = vadd.f32 %v937_v59, %v936_v57 }
 0x101   : > { %v915_v62 = vpop.f32.mrf.mxu0  ;;  %v939_v63 = vpop.f32.mrf.mxu1 }
 0x103   : > { %v916_v0 = vpop.f32.mrf.mxu0  ;;  %v940_v1 = vpop.f32.mrf.mxu1 }
 0x104   : > { %v1218_v2 = vadd.f32 %v916_v0, %v915_v62  ;;  %v1220_v3 = vadd.f32 %v940_v1, %v939_v63 }
 0x105   : > { %v918_v4 = vpop.f32.mrf.mxu0  ;;  %v942_v5 = vpop.f32.mrf.mxu1 }
 0x107   : > { %v919_v6 = vpop.f32.mrf.mxu0  ;;  %v943_v7 = vpop.f32.mrf.mxu1 }
 0x108   : > { %v1222_v8 = vadd.f32 %v919_v6, %v918_v4  ;;  %v1224_v9 = vadd.f32 %v943_v7, %v942_v5  ;;  %543 = sbr.rel (!%p538_p4) target bundleno = 269 (0x10d), region = 40 }
 0x109   : > { %v921_v10 = vpop.f32.mrf.mxu0  ;;  %v945_v11 = vpop.f32.mrf.mxu1 }
 0x10b   : > { %v922_v12 = vpop.f32.mrf.mxu0  ;;  %v946_v13 = vpop.f32.mrf.mxu1 }
 0x10c   : > { %v1226_v14 = vadd.f32 %v922_v12, %v921_v10  ;;  %v1228_v15 = vadd.f32 %v946_v13, %v945_v11 }
 0x10d PF: > { %p876_p5 = scmp.ne.s32.totalorder %s1045_s15, 0 }
 0x10f   : > { %548 = sbr.rel (%p876_p5) target bundleno = 323 (0x143), region = 44 }
 0x114   : > { %v550_v17 = vadd.f32 %v1202_v42, %v1198_v36  ;;  %v574_v18 = vmul.f32 %v1198_v36, %v1198_v36  ;;  %v575_v19 = vmul.f32 %v1202_v42, %v1202_v42  ;;  %613 = vst [vmem:[%s1486_s4] sm:$0xff] %v1198_v36  ;;  %614 = vst [vmem:[%s1486_s4 + $0x8] sm:$0xff] %v1202_v42 }
 0x115   : > { %615 = vst [vmem:[%s1486_s4 + $0x10] sm:$0xff] %v1206_v48  ;;  %616 = vst [vmem:[%s1486_s4 + $0x18] sm:$0xff] %v1210_v54  ;;  %v576_v21 = vmul.f32 %v1206_v48, %v1206_v48  ;;  %v577_v23 = vmul.f32 %v1210_v54, %v1210_v54  ;;  %v578_v26 = vmul.f32 %v1214_v60, %v1214_v60 }
 0x116   : > { %617 = vst [vmem:[%s1486_s4 + $0x20] sm:$0xff] %v1214_v60  ;;  %618 = vst [vmem:[%s1486_s4 + $0x28] sm:$0xff] %v1218_v2  ;;  %v551_v20 = vadd.f32 %v1206_v48, %v550_v17  ;;  %v590_v24 = vadd.f32 %v575_v19, %v574_v18  ;;  %v579_v29 = vmul.f32 %v1218_v2, %v1218_v2 }
 0x117   : > { %619 = vst [vmem:[%s1486_s4 + $0x30] sm:$0xff] %v1222_v8  ;;  %620 = vst [vmem:[%s1486_s4 + $0x38] sm:$0xff] %v1226_v14  ;;  %v580_v32 = vmul.f32 %v1222_v8, %v1222_v8  ;;  %v581_v35 = vmul.f32 %v1226_v14, %v1226_v14  ;;  %v582_v40 = vmul.f32 %v1200_v37, %v1200_v37 }
 0x118   : > { %621 = vst [vmem:[%s1486_s4 + $0x40] sm:$0xff] %v1200_v37  ;;  %622 = vst [vmem:[%s1486_s4 + $0x48] sm:$0xff] %v1204_v43  ;;  %v552_v22 = vadd.f32 %v1210_v54, %v551_v20  ;;  %v591_v27 = vadd.f32 %v590_v24, %v576_v21  ;;  %v583_v45 = vmul.f32 %v1204_v43, %v1204_v43 }
 0x119   : > { %623 = vst [vmem:[%s1486_s4 + $0x50] sm:$0xff] %v1208_v49  ;;  %624 = vst [vmem:[%s1486_s4 + $0x58] sm:$0xff] %v1212_v55  ;;  %v584_v50 = vmul.f32 %v1208_v49, %v1208_v49  ;;  %v585_v53 = vmul.f32 %v1212_v55, %v1212_v55  ;;  %v586_v58 = vmul.f32 %v1216_v61, %v1216_v61 }
 0x11a   : > { %625 = vst [vmem:[%s1486_s4 + $0x60] sm:$0xff] %v1216_v61  ;;  %626 = vst [vmem:[%s1486_s4 + $0x68] sm:$0xff] %v1220_v3  ;;  %v553_v25 = vadd.f32 %v1214_v60, %v552_v22  ;;  %v592_v30 = vadd.f32 %v591_v27, %v577_v23  ;;  %v587_v63 = vmul.f32 %v1220_v3, %v1220_v3  ;;  %v549_v23 = vld [vmem:[#allocation2] sm:$0x1] }
 0x11b   : > { %627 = vst [vmem:[%s1486_s4 + $0x70] sm:$0xff] %v1224_v9  ;;  %628 = vst [vmem:[%s1486_s4 + $0x78] sm:$0xff] %v1228_v15  ;;  %v588_v4 = vmul.f32 %v1224_v9, %v1224_v9  ;;  %v589_v7 = vmul.f32 %v1228_v15, %v1228_v15 }
 0x11c   : > { %v554_v28 = vadd.f32 %v1218_v2, %v553_v25  ;;  %v593_v33 = vadd.f32 %v592_v30, %v578_v26 }
 0x11e   : > { %v555_v31 = vadd.f32 %v1222_v8, %v554_v28  ;;  %v594_v38 = vadd.f32 %v593_v33, %v579_v29  ;;  %v573_v28 = vld [vmem:[#allocation3] sm:$0x1] }
 0x120   : > { %v556_v34 = vadd.f32 %v1226_v14, %v555_v31  ;;  %v595_v41 = vadd.f32 %v594_v38, %v580_v32 }
 0x122   : > { %v557_v39 = vadd.f32 %v1200_v37, %v556_v34  ;;  %v596_v46 = vadd.f32 %v595_v41, %v581_v35 }
 0x124   : > { %v558_v44 = vadd.f32 %v1204_v43, %v557_v39  ;;  %v597_v51 = vadd.f32 %v596_v46, %v582_v40 }
 0x126   : > { %v559_v47 = vadd.f32 %v1208_v49, %v558_v44  ;;  %v598_v56 = vadd.f32 %v597_v51, %v583_v45 }
 0x128   : > { %v560_v52 = vadd.f32 %v1212_v55, %v559_v47  ;;  %v599_v59 = vadd.f32 %v598_v56, %v584_v50 }
 0x12a   : > { %v561_v57 = vadd.f32 %v1216_v61, %v560_v52  ;;  %v600_v0 = vadd.f32 %v599_v59, %v585_v53 }
 0x12c   : > { %v562_v62 = vadd.f32 %v1220_v3, %v561_v57  ;;  %v601_v5 = vadd.f32 %v600_v0, %v586_v58 }
 0x12e   : > { %v563_v1 = vadd.f32 %v1224_v9, %v562_v62  ;;  %v602_v10 = vadd.f32 %v601_v5, %v587_v63 }
 0x130   : > { %v564_v6 = vadd.f32 %v1228_v15, %v563_v1  ;;  %v603_v12 = vadd.f32 %v602_v10, %v588_v4 }
 0x132   : > { %v565_v11 = vrot.slane %v564_v6, 4  ;;  %v604_v16 = vadd.f32 %v603_v12, %v589_v7 }
 0x134   : > { %v566_v13 = vadd.f32 %v565_v11, %v564_v6  ;;  %v605_v18 = vrot.slane %v604_v16, 4 }
 0x136   : > { %v567_v17 = vrot.slane %v566_v13, 2  ;;  %v606_v20 = vadd.f32 %v605_v18, %v604_v16 }
 0x138   : > { %v568_v19 = vadd.f32 %v567_v17, %v566_v13  ;;  %v607_v22 = vrot.slane %v606_v20, 2 }
 0x13a   : > { %v569_v21 = vrot.slane %v568_v19, 1  ;;  %v608_v25 = vadd.f32 %v607_v22, %v606_v20 }
 0x13c   : > { %v570_v24 = vadd.f32 %v569_v21, %v568_v19  ;;  %v609_v27 = vrot.slane %v608_v25, 1 }
 0x13e   : > { %v571_v26 = vadd.f32 %v570_v24, %v549_v23  ;;  %v610_v29 = vadd.f32 %v609_v27, %v608_v25 }
 0x140   : > { %572 = vst [vmem:[#allocation2] sm:$0x1] %v571_v26  ;;  %v611_v30 = vadd.f32 %v610_v29, %v573_v28 }
 0x142   : > { %612 = vst [vmem:[#allocation3] sm:$0x1] %v611_v30 }
 0x143 PF: > { %p877_p6 = scmp.ne.s32.totalorder %s1045_s15, 1 }
 0x145   : > { %632 = sbr.rel (%p877_p6) target bundleno = 382 (0x17e), region = 48 }
 0x14a   : > { %v633_v31 = vld [vmem:[#allocation2] sm:$0x1]  ;;  %v635_v32 = vld [vmem:[#allocation3] sm:$0x1]  ;;  %v644_v39 = vlaneseq }
 0x14b   : > { %v634_v33 = vmul.f32 0.0078125, %v633_v31  ;;  %v636_v34 = vmul.f32 0.0078125, %v635_v32  ;;  %v641_v46 = vld [vmem:[%s1484_s2] sm:$0x1] }
 0x14c   : > { %v645_v41 = vshrl.u32 %v644_v39, 7 }
 0x14d   : > { %v637_v35 = vmul.f32 %v634_v33, %v634_v33 }
 0x14e   : > { %v646_v44 = vsub.s32 0, %v645_v41 }
 0x14f   : > { %v638_v38 = vsub.f32 %v636_v34, %v637_v35 }
 0x150   : > { %v1346_v45 = vrot.slane %v634_v33, %v646_v44 }
 0x151   : > { %v639_v40 = vadd.f32 1e-05, %v638_v38 }
 0x152   : > { %v649_v50 = vsub.f32 %v1198_v36, %v1346_v45  ;;  %v650_v51 = vsub.f32 %v1202_v42, %v1346_v45  ;;  %v651_v53 = vsub.f32 %v1206_v48, %v1346_v45  ;;  %v652_v56 = vsub.f32 %v1210_v54, %v1346_v45 }
 0x153   : > { %1029 = vrsqrt.f32 %v639_v40  ;;  %v653_v57 = vsub.f32 %v1214_v60, %v1346_v45  ;;  %v654_v58 = vsub.f32 %v1218_v2, %v1346_v45  ;;  %v655_v59 = vsub.f32 %v1222_v8, %v1346_v45  ;;  %v1380_v2 = vld [vmem:[%s1485_s3] ss:$0 sm:$0xff] }
 0x154   : > { %v656_v36 = vsub.f32 %v1226_v14, %v1346_v45  ;;  %v657_v42 = vsub.f32 %v1200_v37, %v1346_v45  ;;  %v658_v48 = vsub.f32 %v1204_v43, %v1346_v45  ;;  %v659_v54 = vsub.f32 %v1208_v49, %v1346_v45 }
 0x155   : > { %v660_v60 = vsub.f32 %v1212_v55, %v1346_v45  ;;  %v661_v8 = vsub.f32 %v1216_v61, %v1346_v45  ;;  %v662_v37 = vsub.f32 %v1220_v3, %v1346_v45  ;;  %v663_v43 = vsub.f32 %v1224_v9, %v1346_v45 }
 0x156   : > { %v664_v49 = vsub.f32 %v1228_v15, %v1346_v45 }
 0x160   : > { %v1030_v47 = vpop.eup %1029 }
 0x161   : > { %v642_v52 = vmul.f32 %v1030_v47, %v641_v46 }
 0x163   : > { %v1369_v62 = vrot.slane %v642_v52, %v646_v44 }
 0x165   : > { %v671_v14 = vmul.f32 %v1369_v62, %v649_v50  ;;  %v672_v55 = vmul.f32 %v1369_v62, %v650_v51  ;;  %v673_v63 = vmul.f32 %v1369_v62, %v651_v53  ;;  %v674_v0 = vmul.f32 %v1369_v62, %v652_v56 }
 0x166   : > { %v675_v1 = vmul.f32 %v1369_v62, %v653_v57  ;;  %v676_v61 = vmul.f32 %v1369_v62, %v654_v58  ;;  %v677_v3 = vmul.f32 %v1369_v62, %v655_v59  ;;  %v678_v4 = vmul.f32 %v1369_v62, %v656_v36 }
 0x167   : > { %v694_v9 = vadd.f32 %v1380_v2, %v671_v14  ;;  %v695_v5 = vadd.f32 %v1380_v2, %v672_v55  ;;  %v696_v6 = vadd.f32 %v1380_v2, %v673_v63  ;;  %v697_v7 = vadd.f32 %v1380_v2, %v674_v0 }
 0x168   : > { %v698_v10 = vadd.f32 %v1380_v2, %v675_v1  ;;  %v699_v11 = vadd.f32 %v1380_v2, %v676_v61  ;;  %v700_v12 = vadd.f32 %v1380_v2, %v677_v3  ;;  %v701_v13 = vadd.f32 %v1380_v2, %v678_v4 }
 0x169   : > { %vm710_vm0 = vcmp.gt.f32.partialorder %v694_v9, 0.0  ;;  %v726_v16 = vmul.f32 0.2, %v694_v9  ;;  %vm711_vm1 = vcmp.gt.f32.partialorder %v695_v5, 0.0  ;;  %v727_v17 = vmul.f32 0.2, %v695_v5 }
 0x16a   : > { %vm712_vm2 = vcmp.gt.f32.partialorder %v696_v6, 0.0  ;;  %v728_v18 = vmul.f32 0.2, %v696_v6  ;;  %vm713_vm3 = vcmp.gt.f32.partialorder %v697_v7, 0.0  ;;  %v729_v19 = vmul.f32 0.2, %v697_v7 }
 0x16b   : > { %v742_v20 = vsel %vm710_vm0, %v694_v9, %v726_v16  ;;  %v743_v21 = vsel %vm711_vm1, %v695_v5, %v727_v17  ;;  %vm714_vm4 = vcmp.gt.f32.partialorder %v698_v10, 0.0  ;;  %v730_v22 = vmul.f32 0.2, %v698_v10 }
 0x16c   : > { %758 = vst [vmem:[%s1486_s4] sm:$0xff] %v742_v20  ;;  %759 = vst [vmem:[%s1486_s4 + $0x8] sm:$0xff] %v743_v21  ;;  %v744_v23 = vsel %vm712_vm2, %v696_v6, %v728_v18  ;;  %v745_v24 = vsel %vm713_vm3, %v697_v7, %v729_v19  ;;  %vm715_vm5 = vcmp.gt.f32.partialorder %v699_v11, 0.0  ;;  %v731_v25 = vmul.f32 0.2, %v699_v11 }
 0x16d   : > { %760 = vst [vmem:[%s1486_s4 + $0x10] sm:$0xff] %v744_v23  ;;  %761 = vst [vmem:[%s1486_s4 + $0x18] sm:$0xff] %v745_v24  ;;  %v746_v26 = vsel %vm714_vm4, %v698_v10, %v730_v22  ;;  %vm716_vm6 = vcmp.gt.f32.partialorder %v700_v12, 0.0  ;;  %v732_v27 = vmul.f32 0.2, %v700_v12  ;;  %vm717_vm7 = vcmp.gt.f32.partialorder %v701_v13, 0.0 }
 0x16e   : > { %762 = vst [vmem:[%s1486_s4 + $0x20] sm:$0xff] %v746_v26  ;;  %v747_v28 = vsel %vm715_vm5, %v699_v11, %v731_v25  ;;  %v733_v29 = vmul.f32 0.2, %v701_v13  ;;  %v679_v30 = vmul.f32 %v1369_v62, %v657_v42  ;;  %v680_v31 = vmul.f32 %v1369_v62, %v658_v48 }
 0x16f   : > { %763 = vst [vmem:[%s1486_s4 + $0x28] sm:$0xff] %v747_v28  ;;  %v748_v32 = vsel %vm716_vm6, %v700_v12, %v732_v27  ;;  %v681_v33 = vmul.f32 %v1369_v62, %v659_v54  ;;  %v682_v34 = vmul.f32 %v1369_v62, %v660_v60  ;;  %v683_v35 = vmul.f32 %v1369_v62, %v661_v8 }
 0x170   : > { %764 = vst [vmem:[%s1486_s4 + $0x30] sm:$0xff] %v748_v32  ;;  %v749_v38 = vsel %vm717_vm7, %v701_v13, %v733_v29  ;;  %v702_v39 = vadd.f32 %v1380_v2, %v679_v30  ;;  %v703_v40 = vadd.f32 %v1380_v2, %v680_v31  ;;  %v684_v41 = vmul.f32 %v1369_v62, %v662_v37 }
 0x171   : > { %765 = vst [vmem:[%s1486_s4 + $0x38] sm:$0xff] %v749_v38  ;;  %v704_v44 = vadd.f32 %v1380_v2, %v681_v33  ;;  %v705_v46 = vadd.f32 %v1380_v2, %v682_v34  ;;  %v706_v47 = vadd.f32 %v1380_v2, %v683_v35  ;;  %v685_v50 = vmul.f32 %v1369_v62, %v663_v43 }
 0x172   : > { %vm718_vm8 = vcmp.gt.f32.partialorder %v702_v39, 0.0  ;;  %v734_v51 = vmul.f32 0.2, %v702_v39  ;;  %vm719_vm9 = vcmp.gt.f32.partialorder %v703_v40, 0.0  ;;  %v735_v52 = vmul.f32 0.2, %v703_v40 }
 0x173   : > { %vm720_vm10 = vcmp.gt.f32.partialorder %v704_v44, 0.0  ;;  %v736_v53 = vmul.f32 0.2, %v704_v44  ;;  %vm721_vm11 = vcmp.gt.f32.partialorder %v705_v46, 0.0  ;;  %v737_v56 = vmul.f32 0.2, %v705_v46 }
 0x174   : > { %v750_v57 = vsel %vm718_vm8, %v702_v39, %v734_v51  ;;  %v751_v58 = vsel %vm719_vm9, %v703_v40, %v735_v52  ;;  %vm722_vm12 = vcmp.gt.f32.partialorder %v706_v47, 0.0  ;;  %v738_v59 = vmul.f32 0.2, %v706_v47 }
 0x175   : > { %766 = vst [vmem:[%s1486_s4 + $0x40] sm:$0xff] %v750_v57  ;;  %767 = vst [vmem:[%s1486_s4 + $0x48] sm:$0xff] %v751_v58  ;;  %v752_v36 = vsel %vm720_vm10, %v704_v44, %v736_v53  ;;  %v753_v42 = vsel %vm721_vm11, %v705_v46, %v737_v56  ;;  %v707_v48 = vadd.f32 %v1380_v2, %v684_v41 }
 0x176   : > { %v708_v54 = vadd.f32 %v1380_v2, %v685_v50  ;;  %768 = vst [vmem:[%s1486_s4 + $0x50] sm:$0xff] %v752_v36  ;;  %769 = vst [vmem:[%s1486_s4 + $0x58] sm:$0xff] %v753_v42  ;;  %v754_v60 = vsel %vm722_vm12, %v706_v47, %v738_v59  ;;  %v686_v8 = vmul.f32 %v1369_v62, %v664_v49 }
 0x177   : > { %770 = vst [vmem:[%s1486_s4 + $0x60] sm:$0xff] %v754_v60  ;;  %vm723_vm13 = vcmp.gt.f32.partialorder %v707_v48, 0.0  ;;  %v739_v37 = vmul.f32 0.2, %v707_v48 }
 0x178   : > { %vm724_vm14 = vcmp.gt.f32.partialorder %v708_v54, 0.0  ;;  %v740_v43 = vmul.f32 0.2, %v708_v54  ;;  %v709_v14 = vadd.f32 %v1380_v2, %v686_v8 }
 0x179   : > { %v755_v55 = vsel %vm723_vm13, %v707_v48, %v739_v37 }
 0x17a   : > { %v756_v63 = vsel %vm724_vm14, %v708_v54, %v740_v43  ;;  %771 = vst [vmem:[%s1486_s4 + $0x68] sm:$0xff] %v755_v55  ;;  %vm725_vm15 = vcmp.gt.f32.partialorder %v709_v14, 0.0  ;;  %v741_v15 = vmul.f32 0.2, %v709_v14 }
 0x17b   : > { %772 = vst [vmem:[%s1486_s4 + $0x70] sm:$0xff] %v756_v63 }
 0x17c   : > { %v757_v45 = vsel %vm725_vm15, %v709_v14, %v741_v15 }
 0x17d   : > { %773 = vst [vmem:[%s1486_s4 + $0x78] sm:$0xff] %v757_v45 }
 0x17e PF: > { %s14_s17 = sadd.s32 1, %s1053_s17   ;;  %s1487_s15 = smov %s1049_s16 }
 0x17f   : > { %p11_p7 = scmp.ge.s32.totalorder %s14_s17, 4   ;;  %s1488_s16 = smov %s1490_s18 }
 0x181   :  { %13 = sbr.rel (!%p11_p7) target bundleno = 2 (0x2), region = 78 }

// kernel: discriminator_forward.8
= control target key start
LH: loop header
LB: loop body
LE: loop exit
PB: predicated region body
PF: predicated region fallthrough
CT: control target
= control target key end

     0   :  { %s1018_s15 = smov 0   ;;  %s1020_s16 = smov 0   ;;  %s1230_s0 = inlined_call_operand.vmem [shape: bf16[32,512], index: 0, kind: input, shape index: {}]   ;;  %s1231_s1 = inlined_call_operand.vmem [shape: bf16[512,128], index: 1, kind: input, shape index: {}]   ;;  %s1232_s2 = inlined_call_operand.vmem [shape: f32[1,128], index: 2, kind: input, shape index: {}]   ;;  %s1233_s3 = inlined_call_operand.vmem [shape: f32[1,128], index: 3, kind: input, shape index: {}]   ;;  %s1234_s4 = inlined_call_operand.vmem [shape: f32[32,128], index: 4, kind: output, shape index: {}]  }
   0x1   :  { %s1022_s17 = smov 0  }
   0x2 LB: > { %s26_s18 = sadd.s32 1, %s986_s16  ;;  %p791_p0 = scmp.ge.s32.totalorder %s990_s17, 1  ;;  %s990_s17 = sphi %s1022_s17, %s14_s17   ;;  %s986_s16 = sphi %s1020_s16, %s1236_s16   ;;  %s982_s15 = sphi %s1018_s15, %s1235_s15  }
   0x3   : > { %p28_p1 = scmp.ge.s32.totalorder %s26_s18, 2  ;;  %p176_p2 = scmp.lt.s32.totalorder %s990_s17, 3 }
   0x5   : > { %s1238_s18 = smov (%p28_p1, %s26_s18), 0  ;;  %p177_p3 = pnand %p791_p0, %p176_p2 }
   0x6   : > { %p619_p4 = scmp.eq.s32.totalorder (!%p177_p3), %s982_s15, 0 }
   0x7   : > { %180 = sbr.rel (%p177_p3) target bundleno = 330 (0x14a), region = 36 }
   0xc   : > { %v922_v0 = vld [vmem:[%s1231_s1 + $0x78] sm:$0xff]   ;;  %v926_v4 = vld [vmem:[%s1231_s1 + $0x70] sm:$0xff]   ;;  %v930_v8 = vld [vmem:[%s1231_s1 + $0x68] sm:$0xff]  }
   0xd   : > { %v923_v1 = vld [vmem:[%s1231_s1 + $0xf8] sm:$0xff]   ;;  %841 = vmatprep.subr.bf16.mxu0 %v922_v0  ;;  %v927_v5 = vld [vmem:[%s1231_s1 + $0xf0] sm:$0xff]   ;;  %v931_v9 = vld [vmem:[%s1231_s1 + $0xe8] sm:$0xff]  }
   0xe   : > { %v924_v2 = vld [vmem:[%s1231_s1 + $0x38] sm:$0xff]   ;;  %869 = vmatprep.subr.bf16.mxu1 %v923_v1  ;;  %v928_v6 = vld [vmem:[%s1231_s1 + $0x30] sm:$0xff]   ;;  %v932_v10 = vld [vmem:[%s1231_s1 + $0x28] sm:$0xff]  }
   0xf   : > { %v925_v3 = vld [vmem:[%s1231_s1 + $0xb8] sm:$0xff]   ;;  %842 = vmatpush3.bf16.msra.mxu0 %v924_v2  ;;  %v929_v7 = vld [vmem:[%s1231_s1 + $0xb0] sm:$0xff]   ;;  %v933_v11 = vld [vmem:[%s1231_s1 + $0xa8] sm:$0xff]  }
  0x10   : > { %870 = vmatpush3.bf16.msra.mxu1 %v925_v3  ;;  %843 = vmatprep.subr.bf16.mxu0 %v926_v4  ;;  %v934_v12 = vld [vmem:[%s1231_s1 + $0x60] sm:$0xff]   ;;  %v938_v16 = vld [vmem:[%s1231_s1 + $0x58] sm:$0xff]   ;;  %v942_v20 = vld [vmem:[%s1231_s1 + $0x50] sm:$0xff]   ;;  %v992_v4 = vmov (%p619_p4), 0.0  }
  0x11   : > { %871 = vmatprep.subr.bf16.mxu1 %v927_v5  ;;  %v935_v13 = vld [vmem:[%s1231_s1 + $0xe0] sm:$0xff]   ;;  %v939_v17 = vld [vmem:[%s1231_s1 + $0xd8] sm:$0xff]   ;;  %v943_v21 = vld [vmem:[%s1231_s1 + $0xd0] sm:$0xff]   ;;  %625 = vst [vmem:[#allocation2] sm:$0x1] (%p619_p4), %v992_v4 }
  0x12   : > { %v936_v14 = vld [vmem:[%s1231_s1 + $0x20] sm:$0xff]   ;;  %v940_v18 = vld [vmem:[%s1231_s1 + $0x18] sm:$0xff]   ;;  %v944_v22 = vld [vmem:[%s1231_s1 + $0x10] sm:$0xff]   ;;  %626 = vst [vmem:[#allocation3] sm:$0x1] (%p619_p4), %v992_v4 }
  0x13   : > { %844 = vmatpush3.bf16.msra.mxu0 %v928_v6  ;;  %v937_v15 = vld [vmem:[%s1231_s1 + $0xa0] sm:$0xff]   ;;  %v941_v19 = vld [vmem:[%s1231_s1 + $0x98] sm:$0xff]   ;;  %v945_v23 = vld [vmem:[%s1231_s1 + $0x90] sm:$0xff]  }
  0x14   : > { %872 = vmatpush3.bf16.msra.mxu1 %v929_v7  ;;  %845 = vmatprep.subr.bf16.mxu0 %v930_v8  ;;  %v946_v24 = vld [vmem:[%s1231_s1 + $0x48] sm:$0xff]   ;;  %v950_v28 = vld [vmem:[%s1231_s1 + $0x40] sm:$0xff]  }
  0x15   : > { %873 = vmatprep.subr.bf16.mxu1 %v931_v9  ;;  %v947_v25 = vld [vmem:[%s1231_s1 + $0xc8] sm:$0xff]   ;;  %v951_v29 = vld [vmem:[%s1231_s1 + $0xc0] sm:$0xff]  }
  0x16   : > { %v948_v26 = vld [vmem:[%s1231_s1 + $0x8] sm:$0xff]   ;;  %v952_v30 = vld [vmem:[%s1231_s1] sm:$0xff]  }
  0x17   : > { %846 = vmatpush3.bf16.msra.mxu0 %v932_v10  ;;  %v949_v27 = vld [vmem:[%s1231_s1 + $0x88] sm:$0xff]   ;;  %v953_v31 = vld [vmem:[%s1231_s1 + $0x80] sm:$0xff]  }
  0x18   : > { %874 = vmatpush3.bf16.msra.mxu1 %v933_v11  ;;  %847 = vmatprep.subr.bf16.mxu0 %v934_v12  ;;  %v954_v32 = vld [vmem:[%s1230_s0] ss:$16 sps:$4 sm:$0xff]   ;;  %v956_v33 = vld [vmem:[%s1230_s0 + $0x4] ss:$16 sps:$4 sm:$0xff]   ;;  %v957_v34 = vld [vmem:[%s1230_s0 + $0x8] ss:$16 sps:$4 sm:$0xff]  }
  0x19   : > { %875 = vmatprep.subr.bf16.mxu1 %v935_v13  ;;  %v959_v35 = vld [vmem:[%s1230_s0 + $0xc] ss:$16 sps:$4 sm:$0xff]   ;;  %553 = vmatprep.mubr.bf16.mxu0 %v956_v33  ;;  %v960_v36 = vld [vmem:[%s1230_s0 + $0x24] ss:$16 sps:$4 sm:$0xff]   ;;  %v964_v38 = vld [vmem:[%s1230_s0 + $0x20] ss:$16 sps:$4 sm:$0xff]  }
  0x1a   : > { %602 = vmatprep.mubr.bf16.mxu1 %v959_v35  ;;  %v962_v37 = vld [vmem:[%s1230_s0 + $0x2c] ss:$16 sps:$4 sm:$0xff]   ;;  %v965_v39 = vld [vmem:[%s1230_s0 + $0x28] ss:$16 sps:$4 sm:$0xff]  }
  0x1b   : > { %848 = vmatpush3.bf16.msra.mxu0 %v936_v14 }
  0x1c   : > { %876 = vmatpush3.bf16.msra.mxu1 %v937_v15  ;;  %849 = vmatprep.subr.bf16.mxu0 %v938_v16 }
  0x1d   : > { %877 = vmatprep.subr.bf16.mxu1 %v939_v17 }
  0x1f   : > { %850 = vmatpush3.bf16.msra.mxu0 %v940_v18 }
  0x20   : > { %878 = vmatpush3.bf16.msra.mxu1 %v941_v19  ;;  %851 = vmatprep.subr.bf16.mxu0 %v942_v20 }
  0x21   : > { %879 = vmatprep.subr.bf16.mxu1 %v943_v21 }
  0x23   : > { %852 = vmatpush3.bf16.msra.mxu0 %v944_v22 }
  0x24   : > { %880 = vmatpush3.bf16.msra.mxu1 %v945_v23  ;;  %853 = vmatprep.subr.bf16.mxu0 %v946_v24 }
  0x25   : > { %881 = vmatprep.subr.bf16.mxu1 %v947_v25 }
  0x27   : > { %854 = vmatpush3.bf16.msra.mxu0 %v948_v26 }
  0x28   : > { %882 = vmatpush3.bf16.msra.mxu1 %v949_v27  ;;  %855 = vmatprep.subr.bf16.mxu0 %v950_v28 }
  0x29   : > { %883 = vmatprep.subr.bf16.mxu1 %v951_v29 }
  0x2b   : > { %856 = vmatpush3.bf16.msra.mxu0 %v952_v30 }
  0x2c   : > { %884 = vmatpush3.bf16.msra.mxu1 %v953_v31 }
  0x2e   : > { %554 = vmatmul.mubr.bf16.vlgmr.msra.gmra.mxu0 %v954_v32 }
  0x2f   : > { %603 = vmatmul.mubr.bf16.vlgmr.msra.gmra.mxu1 %v957_v34  ;;  %561 = vmatprep.mubr.bf16.mxu0 %v960_v36 }
  0x30   : > { %610 = vmatprep.mubr.bf16.mxu1 %v962_v37 }
  0x36   : > { %562 = vmatmul.mubr.bf16.gmra.mxu0 %v964_v38 }
  0x37   : > { %611 = vmatmul.mubr.bf16.gmra.mxu1 %v965_v39 }
  0xee   : > { %v857_v40 = vpop.f32.mrf.mxu0 }
  0xef   : > { %v885_v41 = vpop.f32.mrf.mxu1 }
  0xf0   : > { %v858_v42 = vpop.f32.mrf.mxu0 }
  0xf1   : > { %v859_v43 = vadd.f32 %v858_v42, %v857_v40  ;;  %v886_v44 = vpop.f32.mrf.mxu1 }
  0xf2   : > { %v887_v45 = vadd.f32 %v886_v44, %v885_v41  ;;  %v860_v46 = vpop.f32.mrf.mxu0 }
  0xf3   : > { %v888_v47 = vpop.f32.mrf.mxu1 }
  0xf4   : > { %v1159_v48 = vadd.f32 %v887_v45, %v859_v43  ;;  %v861_v49 = vpop.f32.mrf.mxu0 }
  0xf5   : > { %v862_v50 = vadd.f32 %v861_v49, %v860_v46  ;;  %v889_v51 = vpop.f32.mrf.mxu1 }
  0xf6   : > { %v890_v52 = vadd.f32 %v889_v51, %v888_v47  ;;  %v863_v53 = vpop.f32.mrf.mxu0 }
  0xf7   : > { %v891_v54 = vpop.f32.mrf.mxu1 }
  0xf8   : > { %v1161_v55 = vadd.f32 %v890_v52, %v862_v50  ;;  %v864_v56 = vpop.f32.mrf.mxu0 }
  0xf9   : > { %v865_v57 = vadd.f32 %v864_v56, %v863_v53  ;;  %v892_v58 = vpop.f32.mrf.mxu1 }
  0xfa   : > { %v893_v59 = vadd.f32 %v892_v58, %v891_v54  ;;  %v866_v60 = vpop.f32.mrf.mxu0 }
  0xfb   : > { %v894_v61 = vpop.f32.mrf.mxu1 }
  0xfc   : > { %v1163_v62 = vadd.f32 %v893_v59, %v865_v57  ;;  %v867_v63 = vpop.f32.mrf.mxu0  ;;  %624 = sbr.rel (!%p619_p4) target bundleno = 257 (0x101), region = 40 }
  0xfd   : > { %v868_v0 = vadd.f32 %v867_v63, %v866_v60  ;;  %v895_v1 = vpop.f32.mrf.mxu1 }
  0xfe   : > { %v896_v2 = vadd.f32 %v895_v1, %v894_v61 }
 0x100   : > { %v1165_v3 = vadd.f32 %v896_v2, %v868_v0 }
 0x101 PF: > { %p833_p5 = scmp.ne.s32.totalorder %s982_s15, 0 }
 0x103   : > { %629 = sbr.rel (%p833_p5) target bundleno = 287 (0x11f), region = 44 }
 0x108   : > { %v631_v5 = vadd.f32 %v1161_v55, %v1159_v48  ;;  %v643_v6 = vmul.f32 %v1159_v48, %v1159_v48  ;;  %v644_v7 = vmul.f32 %v1161_v55, %v1161_v55  ;;  %v645_v8 = vmul.f32 %v1163_v62, %v1163_v62  ;;  %658 = vst [vmem:[%s1234_s4] sm:$0xff] %v1159_v48  ;;  %v630_v24 = vld [vmem:[#allocation2] sm:$0x1]  ;;  %v642_v27 = vld [vmem:[#allocation3] sm:$0x1] }
 0x109   : > { %659 = vst [vmem:[%s1234_s4 + $0x8] sm:$0xff] %v1161_v55  ;;  %660 = vst [vmem:[%s1234_s4 + $0x10] sm:$0xff] %v1163_v62  ;;  %v646_v10 = vmul.f32 %v1165_v3, %v1165_v3 }
 0x10a   : > { %661 = vst [vmem:[%s1234_s4 + $0x18] sm:$0xff] %v1165_v3  ;;  %v632_v9 = vadd.f32 %v631_v5, %v1163_v62  ;;  %v647_v11 = vadd.f32 %v644_v7, %v643_v6 }
 0x10c   : > { %v633_v12 = vadd.f32 %v632_v9, %v1165_v3  ;;  %v648_v13 = vadd.f32 %v647_v11, %v645_v8 }
 0x10e   : > { %v634_v14 = vrot.slane %v633_v12, 4  ;;  %v649_v15 = vadd.f32 %v648_v13, %v646_v10 }
 0x110   : > { %v635_v16 = vadd.f32 %v634_v14, %v633_v12  ;;  %v650_v17 = vrot.slane %v649_v15, 4 }
 0x112   : > { %v636_v18 = vrot.slane %v635_v16, 2  ;;  %v651_v19 = vadd.f32 %v650_v17, %v649_v15 }
 0x114   : > { %v637_v20 = vadd.f32 %v636_v18, %v635_v16  ;;  %v652_v21 = vrot.slane %v651_v19, 2 }
 0x116   : > { %v638_v22 = vrot.slane %v637_v20, 1  ;;  %v653_v23 = vadd.f32 %v652_v21, %v651_v19 }
 0x118   : > { %v639_v25 = vadd.f32 %v638_v22, %v637_v20  ;;  %v654_v26 = vrot.slane %v653_v23, 1 }
 0x11a   : > { %v640_v28 = vadd.f32 %v639_v25, %v630_v24  ;;  %v655_v29 = vadd.f32 %v654_v26, %v653_v23 }
 0x11c   : > { %641 = vst [vmem:[#allocation2] sm:$0x1] %v640_v28  ;;  %v656_v30 = vadd.f32 %v655_v29, %v642_v27 }
 0x11e   : > { %657 = vst [vmem:[#allocation3] sm:$0x1] %v656_v30 }
 0x11f PF: > { %p834_p6 = scmp.ne.s32.totalorder %s982_s15, 1 }
 0x121   : > { %665 = sbr.rel (%p834_p6) target bundleno = 330 (0x14a), region = 48 }
 0x126   : > { %v666_v31 = vld [vmem:[#allocation2] sm:$0x1]  ;;  %v668_v32 = vld [vmem:[#allocation3] sm:$0x1]  ;;  %v677_v37 = vlaneseq }
 0x127   : > { %v667_v33 = vmul.f32 0.03125, %v666_v31  ;;  %v669_v34 = vmul.f32 0.03125, %v668_v32  ;;  %v674_v42 = vld [vmem:[%s1232_s2] sm:$0x1] }
 0x128   : > { %v678_v39 = vshrl.u32 %v677_v37, 7  ;;  %v835_v51 = vld [vmem:[%s1233_s3] ss:$0 sm:$0xff] }
 0x129   : > { %v670_v35 = vmul.f32 %v667_v33, %v667_v33 }
 0x12a   : > { %v679_v40 = vsub.s32 0, %v678_v39 }
 0x12b   : > { %v671_v36 = vsub.f32 %v669_v34, %v670_v35 }
 0x12c   : > { %v680_v41 = vrot.slane %v667_v33, %v679_v40 }
 0x12d   : > { %v672_v38 = vadd.f32 1e-05, %v671_v36 }
 0x12e   : > { %v682_v44 = vsub.f32 %v1159_v48, %v680_v41  ;;  %v683_v46 = vsub.f32 %v1161_v55, %v680_v41  ;;  %v684_v47 = vsub.f32 %v1163_v62, %v680_v41  ;;  %v685_v49 = vsub.f32 %v1165_v3, %v680_v41 }
 0x12f   : > { %966 = vrsqrt.f32 %v672_v38 }
 0x13c   : > { %v967_v43 = vpop.eup %966 }
 0x13d   : > { %v675_v45 = vmul.f32 %v967_v43, %v674_v42 }
 0x13f   : > { %v690_v50 = vrot.slane %v675_v45, %v679_v40 }
 0x141   : > { %v692_v52 = vmul.f32 %v690_v50, %v682_v44  ;;  %v693_v53 = vmul.f32 %v690_v50, %v683_v46  ;;  %v694_v54 = vmul.f32 %v690_v50, %v684_v47  ;;  %v695_v56 = vmul.f32 %v690_v50, %v685_v49 }
 0x143   : > { %v703_v57 = vadd.f32 %v835_v51, %v692_v52  ;;  %v704_v58 = vadd.f32 %v835_v51, %v693_v53  ;;  %v705_v59 = vadd.f32 %v835_v51, %v694_v54  ;;  %v706_v48 = vadd.f32 %v835_v51, %v695_v56 }
 0x145   : > { %vm707_vm0 = vcmp.gt.f32.partialorder %v703_v57, 0.0  ;;  %v711_v60 = vmul.f32 0.2, %v703_v57  ;;  %vm708_vm1 = vcmp.gt.f32.partialorder %v704_v58, 0.0  ;;  %v712_v55 = vmul.f32 0.2, %v704_v58 }
 0x146   : > { %vm709_vm2 = vcmp.gt.f32.partialorder %v705_v59, 0.0  ;;  %v713_v61 = vmul.f32 0.2, %v705_v59  ;;  %vm710_vm3 = vcmp.gt.f32.partialorder %v706_v48, 0.0  ;;  %v714_v62 = vmul.f32 0.2, %v706_v48 }
 0x147   : > { %v715_v63 = vsel %vm707_vm0, %v703_v57, %v711_v60  ;;  %v716_v0 = vsel %vm708_vm1, %v704_v58, %v712_v55 }
 0x148   : > { %719 = vst [vmem:[%s1234_s4] sm:$0xff] %v715_v63  ;;  %720 = vst [vmem:[%s1234_s4 + $0x8] sm:$0xff] %v716_v0  ;;  %v717_v1 = vsel %vm709_vm2, %v705_v59, %v713_v61  ;;  %v718_v2 = vsel %vm710_vm3, %v706_v48, %v714_v62 }
 0x149   : > { %721 = vst [vmem:[%s1234_s4 + $0x10] sm:$0xff] %v717_v1  ;;  %722 = vst [vmem:[%s1234_s4 + $0x18] sm:$0xff] %v718_v2 }
 0x14a PF: > { %s14_s17 = sadd.s32 1, %s990_s17   ;;  %s1235_s15 = smov %s986_s16 }
 0x14b   : > { %p11_p7 = scmp.ge.s32.totalorder %s14_s17, 4   ;;  %s1236_s16 = smov %s1238_s18 }
 0x14d   :  { %13 = sbr.rel (!%p11_p7) target bundleno = 2 (0x2), region = 78 }

// kernel: discriminator_forward.9
= control target key start
LH: loop header
LB: loop body
LE: loop exit
PB: predicated region body
PF: predicated region fallthrough
CT: control target
= control target key end

     0   :  { %v975_v22 = vmov 1966171168   ;;  %v146_v24 = vlaneseq  ;;  %s1202_s1 = inlined_call_operand.vmem [shape: bf16[1024,128], index: 1, kind: input, shape index: {}]   ;;  %s1203_s0 = inlined_call_operand.vmem [shape: bf16[2,1024], index: 0, kind: input, shape index: {}]   ;;  %s1204_s2 = inlined_call_operand.vmem [shape: f32[2,128], index: 2, kind: output, shape index: {}]  }
   0x1   :  { %v906_v0 = vld [vmem:[%s1202_s1 + $0x78] sm:$0xff]   ;;  %v910_v4 = vld [vmem:[%s1202_s1 + $0x70] sm:$0xff]   ;;  %v914_v8 = vld [vmem:[%s1202_s1 + $0x68] sm:$0xff]   ;;  %v144_v23 = vunpack.c.l.s4 %v975_v22 }
   0x2   :  { %v907_v1 = vld [vmem:[%s1202_s1 + $0xf8] sm:$0xff]   ;;  %817 = vmatprep.subr.bf16.mxu0 %v906_v0  ;;  %v911_v5 = vld [vmem:[%s1202_s1 + $0xf0] sm:$0xff]   ;;  %v915_v9 = vld [vmem:[%s1202_s1 + $0xe8] sm:$0xff]   ;;  %v147_v30 = vshrl.u32 %v146_v24, 7 }
   0x3   :  { %v908_v2 = vld [vmem:[%s1202_s1 + $0x38] sm:$0xff]   ;;  %839 = vmatprep.subr.bf16.mxu1 %v907_v1  ;;  %v912_v6 = vld [vmem:[%s1202_s1 + $0x30] sm:$0xff]   ;;  %v916_v10 = vld [vmem:[%s1202_s1 + $0x28] sm:$0xff]   ;;  %v145_v29 = vunpack.c.0.s8 %v144_v23 }
   0x4   :  { %v909_v3 = vld [vmem:[%s1202_s1 + $0xb8] sm:$0xff]   ;;  %818 = vmatpush3.bf16.msra.mxu0 %v908_v2  ;;  %v913_v7 = vld [vmem:[%s1202_s1 + $0xb0] sm:$0xff]   ;;  %v917_v11 = vld [vmem:[%s1202_s1 + $0xa8] sm:$0xff]  }
   0x5   :  { %840 = vmatpush3.bf16.msra.mxu1 %v909_v3  ;;  %819 = vmatprep.subr.bf16.mxu0 %v910_v4  ;;  %v918_v12 = vld [vmem:[%s1202_s1 + $0x60] sm:$0xff]   ;;  %v922_v16 = vld [vmem:[%s1202_s1 + $0x58] sm:$0xff]   ;;  %v926_v20 = vld [vmem:[%s1202_s1 + $0x50] sm:$0xff]   ;;  %v1081_v35 = vsub.s32 %v145_v29, %v147_v30 }
   0x6   :  { %841 = vmatprep.subr.bf16.mxu1 %v911_v5  ;;  %v919_v13 = vld [vmem:[%s1202_s1 + $0xe0] sm:$0xff]   ;;  %v923_v17 = vld [vmem:[%s1202_s1 + $0xd8] sm:$0xff]   ;;  %v927_v21 = vld [vmem:[%s1202_s1 + $0xd0] sm:$0xff]  }
   0x7   :  { %v920_v14 = vld [vmem:[%s1202_s1 + $0x20] sm:$0xff]   ;;  %v924_v18 = vld [vmem:[%s1202_s1 + $0x18] sm:$0xff]   ;;  %v928_v25 = vld [vmem:[%s1202_s1 + $0x10] sm:$0xff]  }
   0x8   :  { %820 = vmatpush3.bf16.msra.mxu0 %v912_v6  ;;  %v921_v15 = vld [vmem:[%s1202_s1 + $0xa0] sm:$0xff]   ;;  %v925_v19 = vld [vmem:[%s1202_s1 + $0x98] sm:$0xff]   ;;  %v929_v26 = vld [vmem:[%s1202_s1 + $0x90] sm:$0xff]  }
   0x9   :  { %842 = vmatpush3.bf16.msra.mxu1 %v913_v7  ;;  %821 = vmatprep.subr.bf16.mxu0 %v914_v8  ;;  %v930_v27 = vld [vmem:[%s1202_s1 + $0x48] sm:$0xff]   ;;  %v934_v33 = vld [vmem:[%s1202_s1 + $0x40] sm:$0xff]   ;;  %v939_v41 = vld [vmem:[%s1202_s1 + $0x178] sm:$0xff]  }
   0xa   :  { %843 = vmatprep.subr.bf16.mxu1 %v915_v9  ;;  %v931_v28 = vld [vmem:[%s1202_s1 + $0xc8] sm:$0xff]   ;;  %v935_v34 = vld [vmem:[%s1202_s1 + $0xc0] sm:$0xff]   ;;  %v940_v42 = vld [vmem:[%s1202_s1 + $0x1f8] sm:$0xff]  }
   0xb   :  { %v932_v31 = vld [vmem:[%s1202_s1 + $0x8] sm:$0xff]   ;;  %v936_v36 = vld [vmem:[%s1202_s1] sm:$0xff]   ;;  %v941_v47 = vld [vmem:[%s1202_s1 + $0x138] sm:$0xff]  }
   0xc   :  { %822 = vmatpush3.bf16.msra.mxu0 %v916_v10  ;;  %v933_v32 = vld [vmem:[%s1202_s1 + $0x88] sm:$0xff]   ;;  %v937_v37 = vld [vmem:[%s1202_s1 + $0x80] sm:$0xff]   ;;  %v943_v50 = vld [vmem:[%s1202_s1 + $0x170] sm:$0xff]  }
   0xd   :  { %844 = vmatpush3.bf16.msra.mxu1 %v917_v11  ;;  %823 = vmatprep.subr.bf16.mxu0 %v918_v12  ;;  %v12_v38 = vld [vmem:[%s1203_s0] sm:$0xff]  ;;  %v942_v52 = vld [vmem:[%s1202_s1 + $0x1b8] sm:$0xff]   ;;  %v944_v54 = vld [vmem:[%s1202_s1 + $0x1f0] sm:$0xff]  }
   0xe   :  { %845 = vmatprep.subr.bf16.mxu1 %v919_v13  ;;  %v142_v39 = vcombine.high %v12_v38, %v12_v38  ;;  %v149_v40 = vrot.slane %v12_v38, %v1081_v35  ;;  %v945_v55 = vld [vmem:[%s1202_s1 + $0x130] sm:$0xff]   ;;  %v947_v57 = vld [vmem:[%s1202_s1 + $0x168] sm:$0xff]   ;;  %v951_v61 = vld [vmem:[%s1202_s1 + $0x160] sm:$0xff]  }
   0xf   :  { %v946_v58 = vld [vmem:[%s1202_s1 + $0x1b0] sm:$0xff]   ;;  %v948_v59 = vld [vmem:[%s1202_s1 + $0x1e8] sm:$0xff]   ;;  %v952_v63 = vld [vmem:[%s1202_s1 + $0x1e0] sm:$0xff]  }
  0x10   :  { %824 = vmatpush3.bf16.msra.mxu0 %v920_v14  ;;  %v157_v43 = vcombine.high %v149_v40, %v149_v40  ;;  %v165_v44 = vrot.slane %v149_v40, %v1081_v35  ;;  %v1101_v45 = vrot.slane %v142_v39, %v1081_v35  ;;  %v949_v60 = vld [vmem:[%s1202_s1 + $0x128] sm:$0xff]   ;;  %v953_v0 = vld [vmem:[%s1202_s1 + $0x120] sm:$0xff]   ;;  %v955_v1 = vld [vmem:[%s1202_s1 + $0x158] sm:$0xff]  }
  0x11   :  { %846 = vmatpush3.bf16.msra.mxu1 %v921_v15  ;;  %825 = vmatprep.subr.bf16.mxu0 %v922_v16  ;;  %v950_v62 = vld [vmem:[%s1202_s1 + $0x1a8] sm:$0xff]   ;;  %v954_v2 = vld [vmem:[%s1202_s1 + $0x1a0] sm:$0xff]   ;;  %v956_v3 = vld [vmem:[%s1202_s1 + $0x1d8] sm:$0xff]  }
  0x12   :  { %847 = vmatprep.subr.bf16.mxu1 %v923_v17  ;;  %v179_v46 = vrot.slane %v157_v43, %v1081_v35  ;;  %v158_v48 = vcombine.high %v1101_v45, %v1101_v45  ;;  %v187_v49 = vcombine.high %v165_v44, %v165_v44  ;;  %v957_v4 = vld [vmem:[%s1202_s1 + $0x118] sm:$0xff]   ;;  %v959_v5 = vld [vmem:[%s1202_s1 + $0x150] sm:$0xff]   ;;  %v963_v9 = vld [vmem:[%s1202_s1 + $0x148] sm:$0xff]   ;;  %v172_v17 = vrot.slane %v1101_v45, %v1081_v35 }
  0x13   :  { %v958_v6 = vld [vmem:[%s1202_s1 + $0x198] sm:$0xff]   ;;  %v960_v7 = vld [vmem:[%s1202_s1 + $0x1d0] sm:$0xff]   ;;  %v964_v11 = vld [vmem:[%s1202_s1 + $0x1c8] sm:$0xff]  }
  0x14   :  { %826 = vmatpush3.bf16.msra.mxu0 %v924_v18  ;;  %615 = vmatprep.mubr.bf16.mxu0 %v179_v46  ;;  %v189_v51 = vcombine.high %v179_v46, %v179_v46  ;;  %v186_v53 = vrot.slane %v158_v48, %v1081_v35  ;;  %v961_v8 = vld [vmem:[%s1202_s1 + $0x110] sm:$0xff]   ;;  %v965_v12 = vld [vmem:[%s1202_s1 + $0x108] sm:$0xff]   ;;  %v967_v13 = vld [vmem:[%s1202_s1 + $0x140] sm:$0xff]  }
  0x15   :  { %848 = vmatpush3.bf16.msra.mxu1 %v925_v19  ;;  %827 = vmatprep.subr.bf16.mxu0 %v926_v20  ;;  %v962_v10 = vld [vmem:[%s1202_s1 + $0x190] sm:$0xff]   ;;  %v966_v14 = vld [vmem:[%s1202_s1 + $0x188] sm:$0xff]   ;;  %v968_v15 = vld [vmem:[%s1202_s1 + $0x1c0] sm:$0xff]   ;;  %v188_v19 = vcombine.high %v172_v17, %v172_v17 }
  0x16   :  { %849 = vmatprep.subr.bf16.mxu1 %v927_v21  ;;  %655 = vmatprep.mubr.bf16.mxu1 %v189_v51  ;;  %v190_v56 = vcombine.high %v186_v53, %v186_v53  ;;  %v969_v16 = vld [vmem:[%s1202_s1 + $0x100] sm:$0xff]  }
  0x17   :  { %v970_v18 = vld [vmem:[%s1202_s1 + $0x180] sm:$0xff]  }
  0x18   :  { %828 = vmatpush3.bf16.msra.mxu0 %v928_v25 }
  0x19   :  { %850 = vmatpush3.bf16.msra.mxu1 %v929_v26  ;;  %829 = vmatprep.subr.bf16.mxu0 %v930_v27 }
  0x1a   :  { %851 = vmatprep.subr.bf16.mxu1 %v931_v28 }
  0x1c   :  { %830 = vmatpush3.bf16.msra.mxu0 %v932_v31 }
  0x1d   :  { %852 = vmatpush3.bf16.msra.mxu1 %v933_v32  ;;  %831 = vmatprep.subr.bf16.mxu0 %v934_v33 }
  0x1e   :  { %853 = vmatprep.subr.bf16.mxu1 %v935_v34 }
  0x20   :  { %832 = vmatpush3.bf16.msra.mxu0 %v936_v36 }
  0x21   :  { %854 = vmatpush3.bf16.msra.mxu1 %v937_v37  ;;  %861 = vmatprep.subr.bf16.mxu0 %v939_v41 }
  0x22   :  { %883 = vmatprep.subr.bf16.mxu1 %v940_v42 }
  0x23   :  { %616 = vmatmul.mubr.bf16.vlgmr.msra.gmra.mxu0 %v165_v44 }
  0x24   :  { %862 = vmatpush3.bf16.msra.mxu0 %v941_v47  ;;  %656 = vmatmul.mubr.bf16.vlgmr.msra.gmra.mxu1 %v187_v49 }
  0x25   :  { %863 = vmatprep.subr.bf16.mxu0 %v943_v50  ;;  %884 = vmatpush3.bf16.msra.mxu1 %v942_v52 }
  0x26   :  { %695 = vmatprep.mubr.bf16.mxu0 %v186_v53  ;;  %885 = vmatprep.subr.bf16.mxu1 %v944_v54 }
  0x27   :  { %735 = vmatprep.mubr.bf16.mxu1 %v190_v56 }
  0x28   :  { %864 = vmatpush3.bf16.msra.mxu0 %v945_v55 }
  0x29   :  { %865 = vmatprep.subr.bf16.mxu0 %v947_v57  ;;  %886 = vmatpush3.bf16.msra.mxu1 %v946_v58 }
  0x2a   :  { %887 = vmatprep.subr.bf16.mxu1 %v948_v59 }
  0x2c   :  { %866 = vmatpush3.bf16.msra.mxu0 %v949_v60 }
  0x2d   :  { %867 = vmatprep.subr.bf16.mxu0 %v951_v61  ;;  %888 = vmatpush3.bf16.msra.mxu1 %v950_v62 }
  0x2e   :  { %889 = vmatprep.subr.bf16.mxu1 %v952_v63 }
  0x30   :  { %868 = vmatpush3.bf16.msra.mxu0 %v953_v0 }
  0x31   :  { %869 = vmatprep.subr.bf16.mxu0 %v955_v1  ;;  %890 = vmatpush3.bf16.msra.mxu1 %v954_v2 }
  0x32   :  { %891 = vmatprep.subr.bf16.mxu1 %v956_v3 }
  0x34   :  { %870 = vmatpush3.bf16.msra.mxu0 %v957_v4 }
  0x35   :  { %871 = vmatprep.subr.bf16.mxu0 %v959_v5  ;;  %892 = vmatpush3.bf16.msra.mxu1 %v958_v6 }
  0x36   :  { %893 = vmatprep.subr.bf16.mxu1 %v960_v7 }
  0x38   :  { %872 = vmatpush3.bf16.msra.mxu0 %v961_v8 }
  0x39   :  { %873 = vmatprep.subr.bf16.mxu0 %v963_v9  ;;  %894 = vmatpush3.bf16.msra.mxu1 %v962_v10 }
  0x3a   :  { %895 = vmatprep.subr.bf16.mxu1 %v964_v11 }
  0x3c   :  { %874 = vmatpush3.bf16.msra.mxu0 %v965_v12 }
  0x3d   :  { %875 = vmatprep.subr.bf16.mxu0 %v967_v13  ;;  %896 = vmatpush3.bf16.msra.mxu1 %v966_v14 }
  0x3e   :  { %897 = vmatprep.subr.bf16.mxu1 %v968_v15 }
  0x40   :  { %876 = vmatpush3.bf16.msra.mxu0 %v969_v16 }
  0x41   :  { %898 = vmatpush3.bf16.msra.mxu1 %v970_v18 }
  0x43   :  { %696 = vmatmul.mubr.bf16.vlgmr.msra.gmra.mxu0 %v172_v17 }
  0x44   :  { %736 = vmatmul.mubr.bf16.vlgmr.msra.gmra.mxu1 %v188_v19 }
  0xe3   :  { %v833_v20 = vpop.f32.mrf.mxu0 }
  0xe4   :  { %v855_v21 = vpop.f32.mrf.mxu1 }
  0xe5   :  { %v834_v22 = vpop.f32.mrf.mxu0 }
  0xe6   :  { %v856_v23 = vpop.f32.mrf.mxu1  ;;  %v835_v28 = vadd.f32 %v834_v22, %v833_v20 }
  0xe7   :  { %v836_v24 = vpop.f32.mrf.mxu0  ;;  %v857_v29 = vadd.f32 %v856_v23, %v855_v21 }
  0xe8   :  { %v858_v25 = vpop.f32.mrf.mxu1 }
  0xe9   :  { %v837_v26 = vpop.f32.mrf.mxu0  ;;  %v658_v33 = vadd.f32 %v857_v29, %v835_v28 }
  0xea   :  { %v859_v27 = vpop.f32.mrf.mxu1 }
 0x103   :  { %v877_v30 = vpop.f32.mrf.mxu0 }
 0x104   :  { %v899_v31 = vpop.f32.mrf.mxu1 }
 0x105   :  { %v878_v32 = vpop.f32.mrf.mxu0 }
 0x106   :  { %v879_v34 = vadd.f32 %v878_v32, %v877_v30  ;;  %v900_v35 = vpop.f32.mrf.mxu1 }
 0x107   :  { %v880_v36 = vpop.f32.mrf.mxu0  ;;  %v901_v38 = vadd.f32 %v900_v35, %v899_v31 }
 0x108   :  { %v698_v37 = vadd.f32 %v879_v34, %v658_v33  ;;  %v902_v39 = vpop.f32.mrf.mxu1 }
 0x109   :  { %v881_v40 = vpop.f32.mrf.mxu0 }
 0x10a   :  { %v738_v41 = vadd.f32 %v901_v38, %v698_v37  ;;  %v903_v42 = vpop.f32.mrf.mxu1 }
 0x10c   :  { %v743_v43 = vsub.f32 0.0, %v738_v41 }
 0x10e   :  { %v744_v44 = vmul.f32 1.442695, %v743_v43 }
 0x110   :  { %971 = vpow2.f32 %v744_v44 }
 0x11d   :  { %v972_v45 = vpop.eup %971 }
 0x11e   :  { %v746_v46 = vadd.f32 1.0, %v972_v45 }
 0x120   :  { %973 = vrcp.f32 %v746_v46 }
 0x12d   :  { %v974_v47 = vpop.eup %973 }
 0x12e   :  { %748 = vst [vmem:[%s1204_s2] sm:$0x3] %v974_v47 }

</bundles_post_ra>
